<compile_context>
chip_gen: v7x
topology: tpu7x:2x2x1
jax: 0.10.0
libtpu: 0.0.40
codegen_flags: <defaults>
</compile_context>

<pallas_src>
import functools

import numpy as np

import jax
import jax.numpy as jnp
from jax.experimental import pallas as pl
from jax.experimental.pallas import tpu as pltpu


# ----------------------------------------------------------------------------
# VMEM budgeting (generation-aware)
# ----------------------------------------------------------------------------
def _dsize(dtype):
    return jnp.dtype(dtype).itemsize


_VMEM_LIMIT_CACHE = None


def _vmem_limit_bytes():
    """Scoped-VMEM limit passed to the compiler, derived from the chip."""
    global _VMEM_LIMIT_CACHE
    if _VMEM_LIMIT_CACHE is None:
        try:
            cap = int(pltpu.get_tpu_info().vmem_capacity_bytes)
        except Exception:  # noqa: BLE001 - conservative fallback on any failure
            cap = 64 * 1024 * 1024     # v7x-sized (smallest current generation)
        # keep headroom below physical capacity; never below 32 MiB.
        _VMEM_LIMIT_CACHE = max(32 * 1024 * 1024,
                                min((cap * 3) // 4, 96 * 1024 * 1024))
    return _VMEM_LIMIT_CACHE


def _check_vmem(est_bytes, what):
    limit = _vmem_limit_bytes()
    assert est_bytes <= limit, (
        f"{what}: per-step VMEM estimate {est_bytes / 2**20:.1f} MiB exceeds "
        f"limit {limit / 2**20:.1f} MiB; add spatial row-tiling or reduce "
        f"blocks_per_call")


# ----------------------------------------------------------------------------
# Host-side conv plumbing: im2col weight flattening + border masks
# ----------------------------------------------------------------------------
def _flatten_w(w, compute_dtype):
    """HWIO (3,3,Cin,Cout) -> im2col (9*Cin, Cout), cast to compute dtype."""
    kh, kw, cin, cout = w.shape
    return w.reshape(kh * kw * cin, cout).astype(compute_dtype)


@functools.lru_cache(maxsize=None)
def _border_masks(H, W):
    """(9, H*W, 1) f32 masks (1 inside the image, 0 where the shifted tap
    would read across the zero-padding border / wrap around)."""
    idx = np.arange(H * W)
    row, col = idx // W, idx % W
    ms = []
    for dy in (-1, 0, 1):
        for dx in (-1, 0, 1):
            m = ((row + dy >= 0) & (row + dy < H) &
                 (col + dx >= 0) & (col + dx < W)).astype(np.float32)
            ms.append(m.reshape(H * W, 1))
    return jnp.asarray(np.stack(ms))           # (9, H*W, 1)


# ----------------------------------------------------------------------------
# In-kernel helpers
# ----------------------------------------------------------------------------
def _shift_rows(x, s):
    """out[i] = x[(i + s) mod HW]  (static s; lowers to sublane rotates)."""
    if s == 0:
        return x
    return jnp.concatenate([x[s:], x[:s]], axis=0)


def _conv3x3_im2col(x32, w, b, masks, H, W, compute_dtype):
    """3x3 'SAME' conv + bias as ONE im2col matmul.

    x32:   (H*W, Cin) float32 activation (flattened rows).
    w:     (9*Cin, Cout) weights already in compute dtype.
    b:     (1, Cout) float32 bias.
    masks: list of 9 (H*W, 1) float32 border masks (tap order = dy, dx).
    Returns (H*W, Cout) float32.
    """
    pieces = []
    k = 0
    for dy in (-1, 0, 1):
        for dx in (-1, 0, 1):
            shifted = _shift_rows(x32, dy * W + dx)          # (H*W, Cin)
            pieces.append(shifted * masks[k])                # zero the halo
            k += 1
    col = jnp.concatenate(pieces, axis=-1).astype(compute_dtype)  # (H*W, 9*Cin)
    acc = jnp.dot(col, w, preferred_element_type=jnp.float32)     # one MXU dot
    return acc + b.astype(jnp.float32)


# ----------------------------------------------------------------------------
# Kernel 1: standalone conv (+ optional ReLU / res_scale / residual adds)
# ----------------------------------------------------------------------------
def _conv3x3_kernel(x_ref, mask_ref, w_ref, b_ref, *rest, H, W,
                    relu, res_scale, n_res, compute_dtype):
    # x_ref    : (1, H*W, Cin)
    # mask_ref : (9, H*W, 1) f32
    # w_ref    : (9*Cin, Cout)  (compute dtype)
    # b_ref    : (1, Cout) f32
    # rest     : n_res residual refs (1, H*W, Cout), then o_ref
    res_refs = rest[:n_res]
    o_ref = rest[n_res]

    masks = [mask_ref[k] for k in range(9)]
    acc = _conv3x3_im2col(x_ref[0].astype(jnp.float32), w_ref[...], b_ref[...],
                          masks, H, W, compute_dtype)
    if relu:
        acc = jnp.maximum(acc, 0.0)
    if res_scale != 1.0:
        acc = acc * jnp.float32(res_scale)
    for r in res_refs:
        acc = acc + r[0].astype(jnp.float32)
    o_ref[0] = acc.astype(o_ref.dtype)          # one whole-tile store


# ----------------------------------------------------------------------------
# Kernel 2: fused chain of K ResBlocks  (conv+ReLU+conv)*res_scale + skip
# Intermediate activations never leave VMEM.
# ----------------------------------------------------------------------------
def _resblock_chain_kernel(x_ref, mask_ref, w1_ref, b1_ref, w2_ref, b2_ref,
                           *rest, H, W, n_blocks, res_scale, n_extra,
                           compute_dtype):
    # w1_ref/w2_ref : (K, 9*C, C); b1_ref/b2_ref : (K, 1, C)
    extra = rest[:n_extra]
    o_ref = rest[n_extra]

    masks = [mask_ref[k] for k in range(9)]
    y = x_ref[0].astype(jnp.float32)            # (H*W, C) running activation
    for k in range(n_blocks):
        t = _conv3x3_im2col(y, w1_ref[k], b1_ref[k], masks, H, W, compute_dtype)
        t = jnp.maximum(t, 0.0)
        z = _conv3x3_im2col(t, w2_ref[k], b2_ref[k], masks, H, W, compute_dtype)
        if res_scale != 1.0:
            z = z * jnp.float32(res_scale)
        y = z + y
    for r in extra:                              # fused global EDSR skip
        y = y + r[0].astype(jnp.float32)
    o_ref[0] = y.astype(o_ref.dtype)             # one whole-tile store


# ----------------------------------------------------------------------------
# Wrappers
# ----------------------------------------------------------------------------
def conv3x3(x, w, b, *, relu=False, residuals=(), res_scale=1.0,
            compute_dtype=jnp.bfloat16):
    """x: (N,H,W,Cin) NHWC.  w: (3,3,Cin,Cout) HWIO.  b: (Cout,).  -> NHWC."""
    N, H, W, Cin = x.shape
    Cout = w.shape[-1]
    HW = H * W
    if relu:
        # fused order is bias -> ReLU -> *res_scale -> +skip; only the
        # combinations actually used in EDSR are allowed.
        assert res_scale == 1.0 and not residuals

    x2 = x.reshape(N, HW, Cin)
    res2 = tuple(r.reshape(N, HW, Cout) for r in residuals)
    wf = _flatten_w(w, compute_dtype)
    b2 = b.reshape(1, Cout).astype(jnp.float32)
    masks = _border_masks(H, W)

    act_ds, cd_ds = _dsize(x.dtype), _dsize(compute_dtype)
    blk = (HW * Cin * act_ds + HW * Cout * act_ds * (1 + len(res2))
           + 9 * Cin * Cout * cd_ds + 9 * HW * 4 + Cout * 4)
    tmp = (2 * 9 * HW * Cin * cd_ds      # shifted pieces + im2col matrix
           + HW * Cin * 4                # f32 activation copy
           + HW * Cout * 4)              # f32 accumulator
    _check_vmem(2 * blk + tmp, "conv3x3")

    kernel = functools.partial(
        _conv3x3_kernel, H=H, W=W, relu=relu, res_scale=float(res_scale),
        n_res=len(res2), compute_dtype=compute_dtype)

    in_specs = [
        pl.BlockSpec((1, HW, Cin), lambda n: (n, 0, 0)),
        pl.BlockSpec((9, HW, 1), lambda n: (0, 0, 0)),
        pl.BlockSpec((9 * Cin, Cout), lambda n: (0, 0)),
        pl.BlockSpec((1, Cout), lambda n: (0, 0)),
    ]
    in_specs += [pl.BlockSpec((1, HW, Cout), lambda n: (n, 0, 0))
                 for _ in res2]

    out = pl.pallas_call(
        kernel,
        out_shape=jax.ShapeDtypeStruct((N, HW, Cout), x.dtype),
        grid=(N,),
        in_specs=in_specs,
        out_specs=pl.BlockSpec((1, HW, Cout), lambda n: (n, 0, 0)),
        compiler_params=pltpu.CompilerParams(
            dimension_semantics=("parallel",),
            vmem_limit_bytes=_vmem_limit_bytes()),
    )(x2, masks, wf, b2, *res2)
    return out.reshape(N, H, W, Cout)


def resblock_chain(x, block_params, *, res_scale=1.0, extra_residuals=(),
                   compute_dtype=jnp.bfloat16):
    """Run len(block_params) fused EDSR ResBlocks in ONE pallas_call."""
    N, H, W, C = x.shape
    HW = H * W
    K = len(block_params)

    x2 = x.reshape(N, HW, C)
    extra2 = tuple(r.reshape(N, HW, C) for r in extra_residuals)
    w1s = jnp.stack([_flatten_w(bp["w1"], compute_dtype) for bp in block_params])
    w2s = jnp.stack([_flatten_w(bp["w2"], compute_dtype) for bp in block_params])
    b1s = jnp.stack([bp["b1"].reshape(1, C).astype(jnp.float32)
                     for bp in block_params])
    b2s = jnp.stack([bp["b2"].reshape(1, C).astype(jnp.float32)
                     for bp in block_params])
    masks = _border_masks(H, W)

    act_ds, cd_ds = _dsize(x.dtype), _dsize(compute_dtype)
    blk = (HW * C * act_ds * (2 + len(extra2))          # x, out, extras
           + 2 * K * 9 * C * C * cd_ds                  # stacked weights
           + 2 * K * C * 4 + 9 * HW * 4)                # biases + masks
    tmp = (2 * 9 * HW * C * cd_ds                       # pieces + im2col matrix
           + 3 * HW * C * 4)                            # y, t, z in f32
    _check_vmem(2 * blk + tmp, "resblock_chain")

    kernel = functools.partial(
        _resblock_chain_kernel, H=H, W=W, n_blocks=K,
        res_scale=float(res_scale), n_extra=len(extra2),
        compute_dtype=compute_dtype)

    in_specs = [
        pl.BlockSpec((1, HW, C), lambda n: (n, 0, 0)),
        pl.BlockSpec((9, HW, 1), lambda n: (0, 0, 0)),
        pl.BlockSpec((K, 9 * C, C), lambda n: (0, 0, 0)),
        pl.BlockSpec((K, 1, C), lambda n: (0, 0, 0)),
        pl.BlockSpec((K, 9 * C, C), lambda n: (0, 0, 0)),
        pl.BlockSpec((K, 1, C), lambda n: (0, 0, 0)),
    ]
    in_specs += [pl.BlockSpec((1, HW, C), lambda n: (n, 0, 0))
                 for _ in extra2]

    out = pl.pallas_call(
        kernel,
        out_shape=jax.ShapeDtypeStruct((N, HW, C), x.dtype),
        grid=(N,),
        in_specs=in_specs,
        out_specs=pl.BlockSpec((1, HW, C), lambda n: (n, 0, 0)),
        compiler_params=pltpu.CompilerParams(
            dimension_semantics=("parallel",),
            vmem_limit_bytes=_vmem_limit_bytes()),
    )(x2, masks, w1s, b1s, w2s, b2s, *extra2)
    return out.reshape(N, H, W, C)


# ----------------------------------------------------------------------------
# Glue ops (pure permutations / parameter setup)
# ----------------------------------------------------------------------------
def pixel_shuffle_nhwc(x, r):
    # matches torch.nn.PixelShuffle semantics, expressed in NHWC
    N, H, W, Cr2 = x.shape
    C = Cr2 // (r * r)
    x = x.reshape(N, H, W, C, r, r)
    x = jnp.transpose(x, (0, 1, 4, 2, 5, 3))
    return x.reshape(N, H * r, W * r, C)


def init_params(key, *, num_channels, num_feats, num_blocks, scale):
    def conv_p(k, cin, cout, std=0.05):
        kw, kb = jax.random.split(k)
        return (std * jax.random.normal(kw, (3, 3, cin, cout), jnp.float32),
                std * jax.random.normal(kb, (cout,), jnp.float32))

    keys = jax.random.split(key, 3 + 2 * num_blocks)
    params = {}
    params["head"] = conv_p(keys[0], num_channels, num_feats)
    blocks = []
    for i in range(num_blocks):
        w1, b1 = conv_p(keys[1 + 2 * i], num_feats, num_feats)
        w2, b2 = conv_p(keys[2 + 2 * i], num_feats, num_feats)
        blocks.append({"w1": w1, "b1": b1, "w2": w2, "b2": b2})
    params["blocks"] = blocks
    params["tail1"] = conv_p(keys[1 + 2 * num_blocks],
                             num_feats, num_feats * scale * scale)
    params["tail2"] = conv_p(keys[2 + 2 * num_blocks],
                             num_feats, num_channels)
    return params


# ----------------------------------------------------------------------------
# EDSR forward (Pallas)
# ----------------------------------------------------------------------------
def edsr_forward(x_nchw, params, *, scale=2, res_scale=1.0,
                 compute_dtype=jnp.bfloat16, blocks_per_call=4):
    x = jnp.transpose(x_nchw, (0, 2, 3, 1))                    # NCHW -> NHWC
    head_w, head_b = params["head"]
    head = conv3x3(x, head_w, head_b, compute_dtype=compute_dtype)

    y = head
    blocks = params["blocks"]
    if not blocks:
        y = y + head
    else:
        i = 0
        while i < len(blocks):
            chunk = blocks[i:i + blocks_per_call]
            i += len(chunk)
            # last chain also fuses the global EDSR skip connection (+ head)
            extra = (head,) if i == len(blocks) else ()
            y = resblock_chain(y, chunk, res_scale=res_scale,
                               extra_residuals=extra,
                               compute_dtype=compute_dtype)

    t1w, t1b = params["tail1"]
    t = conv3x3(y, t1w, t1b, relu=True, compute_dtype=compute_dtype)
    t = pixel_shuffle_nhwc(t, scale)             # ReLU fused above (commutes)
    t2w, t2b = params["tail2"]
    out = conv3x3(t, t2w, t2b, compute_dtype=compute_dtype)
    return jnp.transpose(out, (0, 3, 1, 2))                    # NHWC -> NCHW


# ----------------------------------------------------------------------------
# Pure-JAX f32 reference (mirrors the PyTorch module exactly) for verification
# ----------------------------------------------------------------------------
def _conv_ref(x, w, b):
    y = jax.lax.conv_general_dilated(
        x, w, window_strides=(1, 1), padding="SAME",
        dimension_numbers=("NHWC", "HWIO", "NHWC"))
    return y + b


def edsr_ref(x_nchw, params, *, scale=2, res_scale=1.0):
    x = jnp.transpose(x_nchw, (0, 2, 3, 1))
    hw, hb = params["head"]
    head = _conv_ref(x, hw, hb)
    y = head
    for blk in params["blocks"]:
        t = jax.nn.relu(_conv_ref(y, blk["w1"], blk["b1"]))
        y = _conv_ref(t, blk["w2"], blk["b2"]) * res_scale + y
    y = y + head
    t1w, t1b = params["tail1"]
    t = _conv_ref(y, t1w, t1b)
    t = pixel_shuffle_nhwc(t, scale)
    t = jax.nn.relu(t)
    t2w, t2b = params["tail2"]
    out = _conv_ref(t, t2w, t2b)
    return jnp.transpose(out, (0, 3, 1, 2))


# ----------------------------------------------------------------------------
if __name__ == "__main__":
    # small EDSR: scale=2, 3 channels, 32 feats, 2 ResBlocks
    SCALE, NUM_CHANNELS, NUM_FEATS, NUM_BLOCKS, RES_SCALE = 2, 3, 32, 2, 1.0
    N, H, W = 2, 16, 16

    key = jax.random.PRNGKey(0)
    kx, kp = jax.random.split(key)
    x = jax.random.normal(kx, (N, NUM_CHANNELS, H, W), jnp.float32)   # NCHW
    params = init_params(kp, num_channels=NUM_CHANNELS, num_feats=NUM_FEATS,
                         num_blocks=NUM_BLOCKS, scale=SCALE)

    out = edsr_forward(x, params, scale=SCALE, res_scale=RES_SCALE,
                       compute_dtype=jnp.bfloat16, blocks_per_call=4)
    out = jax.block_until_ready(out)
    assert out.shape == (N, NUM_CHANNELS, H * SCALE, W * SCALE), out.shape

    ref = jax.block_until_ready(
        edsr_ref(x, params, scale=SCALE, res_scale=RES_SCALE))
    max_err = float(jnp.max(jnp.abs(out - ref)))
    # bf16 MXU operands vs f32 reference -> loose tolerance
    assert jnp.allclose(out, ref, atol=5e-2, rtol=5e-2), max_err

    print("KERNEL_OK")
</pallas_src>

<mosaic_0001>
module attributes {stable_mosaic.version = 11 : i64} {
  func.func @_conv3x3_kernel(%arg0: i32, %arg1: memref<1x256x3xf32, #tpu.memory_space<vmem>>, %arg2: memref<9x256x1xf32, #tpu.memory_space<vmem>>, %arg3: memref<27x32xbf16, #tpu.memory_space<vmem>>, %arg4: memref<1x32xf32, #tpu.memory_space<vmem>>, %arg5: memref<1x256x32xf32, #tpu.memory_space<vmem>>) attributes {dimension_semantics = [#tpu.dimension_semantics<parallel>], iteration_bounds = array<i64: 2>, scalar_prefetch = 0 : i64, scratch_operands = 0 : i64, tpu.core_type = #tpu.core_type<tc>, window_params = [{transform_indices = @transform_0, window_bounds = array<i64: 1, 256, 3>}, {pipeline_mode = #tpu.pipeline_mode<synchronous>, transform_indices = @transform_1, window_bounds = array<i64: 9, 256, 1>}, {pipeline_mode = #tpu.pipeline_mode<synchronous>, transform_indices = @transform_2, window_bounds = array<i64: 27, 32>}, {pipeline_mode = #tpu.pipeline_mode<synchronous>, transform_indices = @transform_3, window_bounds = array<i64: 1, 32>}, {transform_indices = @transform_4, window_bounds = array<i64: 1, 256, 32>}]} {
    %c0 = arith.constant 0 : index
    %c0_0 = arith.constant 0 : index
    %c0_1 = arith.constant 0 : index
    %0 = vector.load %arg2[%c0, %c0_0, %c0_1] : memref<9x256x1xf32, #tpu.memory_space<vmem>>, vector<1x256x1xf32>
    %1 = vector.shape_cast %0 : vector<1x256x1xf32> to vector<256x1xf32>
    %c1 = arith.constant 1 : index
    %c0_2 = arith.constant 0 : index
    %c0_3 = arith.constant 0 : index
    %2 = vector.load %arg2[%c1, %c0_2, %c0_3] : memref<9x256x1xf32, #tpu.memory_space<vmem>>, vector<1x256x1xf32>
    %3 = vector.shape_cast %2 : vector<1x256x1xf32> to vector<256x1xf32>
    %c2 = arith.constant 2 : index
    %c0_4 = arith.constant 0 : index
    %c0_5 = arith.constant 0 : index
    %4 = vector.load %arg2[%c2, %c0_4, %c0_5] : memref<9x256x1xf32, #tpu.memory_space<vmem>>, vector<1x256x1xf32>
    %5 = vector.shape_cast %4 : vector<1x256x1xf32> to vector<256x1xf32>
    %c3 = arith.constant 3 : index
    %c0_6 = arith.constant 0 : index
    %c0_7 = arith.constant 0 : index
    %6 = vector.load %arg2[%c3, %c0_6, %c0_7] : memref<9x256x1xf32, #tpu.memory_space<vmem>>, vector<1x256x1xf32>
    %7 = vector.shape_cast %6 : vector<1x256x1xf32> to vector<256x1xf32>
    %c4 = arith.constant 4 : index
    %c0_8 = arith.constant 0 : index
    %c0_9 = arith.constant 0 : index
    %8 = vector.load %arg2[%c4, %c0_8, %c0_9] : memref<9x256x1xf32, #tpu.memory_space<vmem>>, vector<1x256x1xf32>
    %9 = vector.shape_cast %8 : vector<1x256x1xf32> to vector<256x1xf32>
    %c5 = arith.constant 5 : index
    %c0_10 = arith.constant 0 : index
    %c0_11 = arith.constant 0 : index
    %10 = vector.load %arg2[%c5, %c0_10, %c0_11] : memref<9x256x1xf32, #tpu.memory_space<vmem>>, vector<1x256x1xf32>
    %11 = vector.shape_cast %10 : vector<1x256x1xf32> to vector<256x1xf32>
    %c6 = arith.constant 6 : index
    %c0_12 = arith.constant 0 : index
    %c0_13 = arith.constant 0 : index
    %12 = vector.load %arg2[%c6, %c0_12, %c0_13] : memref<9x256x1xf32, #tpu.memory_space<vmem>>, vector<1x256x1xf32>
    %13 = vector.shape_cast %12 : vector<1x256x1xf32> to vector<256x1xf32>
    %c7 = arith.constant 7 : index
    %c0_14 = arith.constant 0 : index
    %c0_15 = arith.constant 0 : index
    %14 = vector.load %arg2[%c7, %c0_14, %c0_15] : memref<9x256x1xf32, #tpu.memory_space<vmem>>, vector<1x256x1xf32>
    %15 = vector.shape_cast %14 : vector<1x256x1xf32> to vector<256x1xf32>
    %c8 = arith.constant 8 : index
    %c0_16 = arith.constant 0 : index
    %c0_17 = arith.constant 0 : index
    %16 = vector.load %arg2[%c8, %c0_16, %c0_17] : memref<9x256x1xf32, #tpu.memory_space<vmem>>, vector<1x256x1xf32>
    %17 = vector.shape_cast %16 : vector<1x256x1xf32> to vector<256x1xf32>
    %c0_18 = arith.constant 0 : index
    %c0_19 = arith.constant 0 : index
    %c0_20 = arith.constant 0 : index
    %18 = vector.load %arg1[%c0_18, %c0_19, %c0_20] : memref<1x256x3xf32, #tpu.memory_space<vmem>>, vector<1x256x3xf32>
    %19 = vector.shape_cast %18 : vector<1x256x3xf32> to vector<256x3xf32>
    %c0_21 = arith.constant 0 : index
    %c0_22 = arith.constant 0 : index
    %20 = vector.load %arg3[%c0_21, %c0_22] : memref<27x32xbf16, #tpu.memory_space<vmem>>, vector<27x32xbf16>
    %c0_23 = arith.constant 0 : index
    %c0_24 = arith.constant 0 : index
    %21 = vector.load %arg4[%c0_23, %c0_24] : memref<1x32xf32, #tpu.memory_space<vmem>>, vector<1x32xf32>
    %22 = vector.extract_strided_slice %19 {offsets = [239, 0], sizes = [17, 3], strides = [1, 1]} : vector<256x3xf32> to vector<17x3xf32>
    %23 = vector.extract_strided_slice %19 {offsets = [0, 0], sizes = [239, 3], strides = [1, 1]} : vector<256x3xf32> to vector<239x3xf32>
    %24 = tpu.concatenate %22, %23 in 0 : vector<17x3xf32>, vector<239x3xf32> -> vector<256x3xf32>
    %25 = vector.broadcast %1 : vector<256x1xf32> to vector<256x3xf32>
    %26 = arith.mulf %24, %25 : vector<256x3xf32>
    %27 = vector.extract_strided_slice %19 {offsets = [240, 0], sizes = [16, 3], strides = [1, 1]} : vector<256x3xf32> to vector<16x3xf32>
    %28 = vector.extract_strided_slice %19 {offsets = [0, 0], sizes = [240, 3], strides = [1, 1]} : vector<256x3xf32> to vector<240x3xf32>
    %29 = tpu.concatenate %27, %28 in 0 : vector<16x3xf32>, vector<240x3xf32> -> vector<256x3xf32>
    %30 = vector.broadcast %3 : vector<256x1xf32> to vector<256x3xf32>
    %31 = arith.mulf %29, %30 : vector<256x3xf32>
    %32 = vector.extract_strided_slice %19 {offsets = [241, 0], sizes = [15, 3], strides = [1, 1]} : vector<256x3xf32> to vector<15x3xf32>
    %33 = vector.extract_strided_slice %19 {offsets = [0, 0], sizes = [241, 3], strides = [1, 1]} : vector<256x3xf32> to vector<241x3xf32>
    %34 = tpu.concatenate %32, %33 in 0 : vector<15x3xf32>, vector<241x3xf32> -> vector<256x3xf32>
    %35 = vector.broadcast %5 : vector<256x1xf32> to vector<256x3xf32>
    %36 = arith.mulf %34, %35 : vector<256x3xf32>
    %37 = vector.extract_strided_slice %19 {offsets = [255, 0], sizes = [1, 3], strides = [1, 1]} : vector<256x3xf32> to vector<1x3xf32>
    %38 = vector.extract_strided_slice %19 {offsets = [0, 0], sizes = [255, 3], strides = [1, 1]} : vector<256x3xf32> to vector<255x3xf32>
    %39 = tpu.concatenate %37, %38 in 0 : vector<1x3xf32>, vector<255x3xf32> -> vector<256x3xf32>
    %40 = vector.broadcast %7 : vector<256x1xf32> to vector<256x3xf32>
    %41 = arith.mulf %39, %40 : vector<256x3xf32>
    %42 = vector.broadcast %9 : vector<256x1xf32> to vector<256x3xf32>
    %43 = arith.mulf %19, %42 : vector<256x3xf32>
    %44 = vector.extract_strided_slice %19 {offsets = [1, 0], sizes = [255, 3], strides = [1, 1]} : vector<256x3xf32> to vector<255x3xf32>
    %45 = vector.extract_strided_slice %19 {offsets = [0, 0], sizes = [1, 3], strides = [1, 1]} : vector<256x3xf32> to vector<1x3xf32>
    %46 = tpu.concatenate %44, %45 in 0 : vector<255x3xf32>, vector<1x3xf32> -> vector<256x3xf32>
    %47 = vector.broadcast %11 : vector<256x1xf32> to vector<256x3xf32>
    %48 = arith.mulf %46, %47 : vector<256x3xf32>
    %49 = vector.extract_strided_slice %19 {offsets = [15, 0], sizes = [241, 3], strides = [1, 1]} : vector<256x3xf32> to vector<241x3xf32>
    %50 = vector.extract_strided_slice %19 {offsets = [0, 0], sizes = [15, 3], strides = [1, 1]} : vector<256x3xf32> to vector<15x3xf32>
    %51 = tpu.concatenate %49, %50 in 0 : vector<241x3xf32>, vector<15x3xf32> -> vector<256x3xf32>
    %52 = vector.broadcast %13 : vector<256x1xf32> to vector<256x3xf32>
    %53 = arith.mulf %51, %52 : vector<256x3xf32>
    %54 = vector.extract_strided_slice %19 {offsets = [16, 0], sizes = [240, 3], strides = [1, 1]} : vector<256x3xf32> to vector<240x3xf32>
    %55 = vector.extract_strided_slice %19 {offsets = [0, 0], sizes = [16, 3], strides = [1, 1]} : vector<256x3xf32> to vector<16x3xf32>
    %56 = tpu.concatenate %54, %55 in 0 : vector<240x3xf32>, vector<16x3xf32> -> vector<256x3xf32>
    %57 = vector.broadcast %15 : vector<256x1xf32> to vector<256x3xf32>
    %58 = arith.mulf %56, %57 : vector<256x3xf32>
    %59 = vector.extract_strided_slice %19 {offsets = [17, 0], sizes = [239, 3], strides = [1, 1]} : vector<256x3xf32> to vector<239x3xf32>
    %60 = vector.extract_strided_slice %19 {offsets = [0, 0], sizes = [17, 3], strides = [1, 1]} : vector<256x3xf32> to vector<17x3xf32>
    %61 = tpu.concatenate %59, %60 in 0 : vector<239x3xf32>, vector<17x3xf32> -> vector<256x3xf32>
    %62 = vector.broadcast %17 : vector<256x1xf32> to vector<256x3xf32>
    %63 = arith.mulf %61, %62 : vector<256x3xf32>
    %64 = tpu.concatenate %26, %31, %36, %41, %43, %48, %53, %58, %63 in 1 : vector<256x3xf32>, vector<256x3xf32>, vector<256x3xf32>, vector<256x3xf32>, vector<256x3xf32>, vector<256x3xf32>, vector<256x3xf32>, vector<256x3xf32>, vector<256x3xf32> -> vector<256x27xf32>
    %65 = arith.truncf %64 : vector<256x27xf32> to vector<256x27xbf16>
    %cst = arith.constant dense<0.000000e+00> : vector<256x32xf32>
    %66 = tpu.matmul %65, %20, %cst {dimension_numbers = #tpu.dot_dimension_numbers<[1], [0], [0], [1], [0, 0, 1, 1], [], []>} : vector<256x27xbf16>, vector<27x32xbf16>, vector<256x32xf32> -> vector<256x32xf32>
    %67 = vector.broadcast %21 : vector<1x32xf32> to vector<256x32xf32>
    %68 = arith.addf %66, %67 : vector<256x32xf32>
    %c0_25 = arith.constant 0 : index
    %c0_26 = arith.constant 0 : index
    %c0_27 = arith.constant 0 : index
    %69 = vector.load %arg5[%c0_25, %c0_26, %c0_27] : memref<1x256x32xf32, #tpu.memory_space<vmem>>, vector<1x256x32xf32>
    %70 = vector.shape_cast %69 : vector<1x256x32xf32> to vector<256x32xf32>
    %71 = vector.shape_cast %68 : vector<256x32xf32> to vector<1x256x32xf32>
    tpu.vector_store %arg5[%c0_25, %c0_26, %c0_27], %71 {strides = array<i32>} : memref<1x256x32xf32, #tpu.memory_space<vmem>>, vector<1x256x32xf32>,
    return
  }
  func.func @transform_0(%arg0: i32) -> (i32, i32, i32) {
    %c0_i32 = arith.constant 0 : i32
    %c0_i32_0 = arith.constant 0 : i32
    %c0_i32_1 = arith.constant 0 : i32
    return %arg0, %c0_i32, %c0_i32_0 : i32, i32, i32
  }
  func.func @transform_1(%arg0: i32) -> (i32, i32, i32) {
    %c0_i32 = arith.constant 0 : i32
    %c0_i32_0 = arith.constant 0 : i32
    %c0_i32_1 = arith.constant 0 : i32
    %c0_i32_2 = arith.constant 0 : i32
    return %c0_i32, %c0_i32_0, %c0_i32_1 : i32, i32, i32
  }
  func.func @transform_2(%arg0: i32) -> (i32, i32) {
    %c0_i32 = arith.constant 0 : i32
    %c0_i32_0 = arith.constant 0 : i32
    %c0_i32_1 = arith.constant 0 : i32
    return %c0_i32, %c0_i32_0 : i32, i32
  }
  func.func @transform_3(%arg0: i32) -> (i32, i32) {
    %c0_i32 = arith.constant 0 : i32
    %c0_i32_0 = arith.constant 0 : i32
    %c0_i32_1 = arith.constant 0 : i32
    return %c0_i32, %c0_i32_0 : i32, i32
  }
  func.func @transform_4(%arg0: i32) -> (i32, i32, i32) {
    %c0_i32 = arith.constant 0 : i32
    %c0_i32_0 = arith.constant 0 : i32
    %c0_i32_1 = arith.constant 0 : i32
    return %arg0, %c0_i32, %c0_i32_0 : i32, i32, i32
  }
}

</mosaic_0001>

<bundles_post_ra>
// kernel: tpu_custom_call.1
= control target key start
LH: loop header
LB: loop body
LE: loop exit
PB: predicated region body
PF: predicated region fallthrough
CT: control target
= control target key end

     0   :  { %s5187_s15 = smov 0   ;;  %s8625_s0 = inlined_call_operand.vmem [shape: f32[2,256,3], index: 0, kind: input, shape index: {}]   ;;  %s8626_s1 = inlined_call_operand.vmem [shape: f32[9,256,1], index: 1, kind: input, shape index: {}]   ;;  %s8627_s2 = inlined_call_operand.vmem [shape: bf16[27,32], index: 2, kind: input, shape index: {}]   ;;  %s8628_s3 = inlined_call_operand.vmem [shape: f32[1,32], index: 3, kind: input, shape index: {}]   ;;  %s8629_s4 = inlined_call_operand.vmem [shape: f32[2,256,32], index: 4, kind: output, shape index: {}]  }
   0x1 LB: > { %s4114_s16 = sadd.s32 4294967295, %s5150_s15   ;;  %p4118_p0 = scmp.ge.s32.totalorder %s5150_s15, 1  ;;  %s5150_s15 = sphi %s5187_s15, %s14_s15  }
   0x2   : > { %p162_p1 = scmp.lt.s32.totalorder %s5150_s15, 3 }
   0x4   : > { %p163_p2 = pnand %p4118_p0, %p162_p1 }
   0x6   : > { %166 = sbr.rel (%p163_p2) target bundleno = 1197 (0x4ad), region = 36 }
   0xd   : > { %v201_v0 = vld [vmem:[%s8626_s1 + $0x10] sm:$0xff]  ;;  %v199_v1 = vld [vmem:[%s8626_s1] sm:$0xff]  ;;  %v5152_v2 = vmov 0   ;;  %v202_v3 = vld [vmem:[%s8626_s1 + $0x18] sm:$0xff]  ;;  %p188_p3 = scmp.lt.s32.totalorder %s4114_s16, 1  ;;  %s5153_s21 = smov 3  }
   0xe   : > { %4479 = vset.pattern.permute.xlu1 %v5152_v2  ;;  %4478 = vset.pattern.permute.xlu0 %v5152_v2  ;;  %v200_v4 = vld [vmem:[%s8626_s1 + $0x8] sm:$0xff]  ;;  %v203_v6 = vld [vmem:[%s8626_s1 + $0x20] sm:$0xff]  ;;  %v206_v7 = vld [vmem:[%s8626_s1 + $0x38] sm:$0xff]  ;;  %vm1046_vm0 = vcmask 1046528   ;;  %s5154_s22 = smov 6   ;;  %vm535_vm1 = vcmask 1040384  }
   0xf   : > { %674 = vperm.xlu1 %4479, %v201_v0   ;;  %664 = vperm.xlu0 %4478, %v199_v1   ;;  %v204_v5 = vld [vmem:[%s8626_s1 + $0x28] sm:$0xff]  ;;  %v205_v8 = vld [vmem:[%s8626_s1 + $0x30] sm:$0xff]  ;;  %v207_v10 = vld [vmem:[%s8626_s1 + $0x40] sm:$0xff]  ;;  %s9418_s16 = smov (!%p188_p3, %s4114_s16), 1  ;;  %s5155_s23 = smov 9   ;;  %vm3858_vm2 = vcmask 1044480  }
  0x10   : > { %v208_v9 = vld [vmem:[%s8626_s1 + $0x48] sm:$0xff]  ;;  %v210_v11 = vld [vmem:[%s8626_s1 + $0x58] sm:$0xff]  ;;  %v209_v12 = vld [vmem:[%s8626_s1 + $0x50] sm:$0xff]  ;;  %s4400_s29 = sshll.u32 %s9418_s16, 8  ;;  %s5156_s24 = smov 12   ;;  %vm3859_vm3 = vcmask 1045504  }
  0x11   : > { %v212_v13 = vld [vmem:[%s8626_s1 + $0x68] sm:$0xff]  ;;  %v211_v14 = vld [vmem:[%s8626_s1 + $0x60] sm:$0xff]  ;;  %v214_v15 = vld [vmem:[%s8626_s1 + $0x78] sm:$0xff]  ;;  %s6499_s10 = scalar_lea.vmem %s8625_s0, %s4400_s29  ;;  %s5157_s25 = smov 15   ;;  %vm3512_vm4 = vcmask 23552   ;;  %vm3545_vm5 = vcmask 48128  }
  0x12   : > { %v213_v16 = vld [vmem:[%s8626_s1 + $0x70] sm:$0xff]  ;;  %v216_v17 = vld [vmem:[%s8626_s1 + $0x88] sm:$0xff]  ;;  %v215_v18 = vld [vmem:[%s8626_s1 + $0x80] sm:$0xff]  ;;  %s5158_s26 = smov 18   ;;  %s5159_s27 = smov 21   ;;  %vm3578_vm6 = vcmask 72704  }
  0x13   : > { %679 = vperm.xlu1 %4479, %v202_v3   ;;  %669 = vperm.xlu0 %4478, %v200_v4   ;;  %v218_v19 = vld [vmem:[%s8626_s1 + $0x98] sm:$0xff]  ;;  %v217_v20 = vld [vmem:[%s8626_s1 + $0x90] sm:$0xff]  ;;  %v220_v21 = vld [vmem:[%s8626_s1 + $0xa8] sm:$0xff]  ;;  %s5160_s5 = smov 24   ;;  %vm3611_vm7 = vcmask 97280   ;;  %vm3644_vm8 = vcmask 121856   ;;  %s8524_s12 = scalar_lea.vmem %s8629_s4, %s4400_s29 }
  0x14   : > { %v219_v22 = vld [vmem:[%s8626_s1 + $0xa0] sm:$0xff]  ;;  %v222_v23 = vld [vmem:[%s8626_s1 + $0xb8] sm:$0xff]  ;;  %v221_v24 = vld [vmem:[%s8626_s1 + $0xb0] sm:$0xff]  ;;  %vm3677_vm9 = vcmask 146432   ;;  %vm3710_vm10 = vcmask 171008   ;;  %vm3743_vm11 = vcmask 195584  }
  0x15   : > { %v224_v25 = vld [vmem:[%s8626_s1 + $0xc8] sm:$0xff]  ;;  %v223_v26 = vld [vmem:[%s8626_s1 + $0xc0] sm:$0xff]  ;;  %v226_v27 = vld [vmem:[%s8626_s1 + $0xd8] sm:$0xff]  ;;  %vm3809_vm12 = vcmask 220160   ;;  %vm4026_vm13 = vcmask 261120  }
  0x16   : > { %v225_v28 = vld [vmem:[%s8626_s1 + $0xd0] sm:$0xff]  ;;  %v228_v29 = vld [vmem:[%s8626_s1 + $0xe8] sm:$0xff]  ;;  %v227_v30 = vld [vmem:[%s8626_s1 + $0xe0] sm:$0xff] }
  0x17   : > { %689 = vperm.xlu1 %4479, %v204_v5   ;;  %684 = vperm.xlu0 %4478, %v203_v6   ;;  %v230_v31 = vld [vmem:[%s8626_s1 + $0xf8] sm:$0xff]  ;;  %v229_v32 = vld [vmem:[%s8626_s1 + $0xf0] sm:$0xff]  ;;  %v4124_v33 = vld [vmem:[%s8626_s1 + $0x108] sm:$0xff] }
  0x18   : > { %v4123_v34 = vld [vmem:[%s8626_s1 + $0x100] sm:$0xff]  ;;  %v4126_v35 = vld [vmem:[%s8626_s1 + $0x118] sm:$0xff]  ;;  %v4125_v36 = vld [vmem:[%s8626_s1 + $0x110] sm:$0xff] }
  0x19   : > { %v4128_v37 = vld [vmem:[%s8626_s1 + $0x128] sm:$0xff]  ;;  %v4127_v38 = vld [vmem:[%s8626_s1 + $0x120] sm:$0xff]  ;;  %v4130_v39 = vld [vmem:[%s8626_s1 + $0x138] sm:$0xff] }
  0x1a   : > { %v4129_v40 = vld [vmem:[%s8626_s1 + $0x130] sm:$0xff]  ;;  %v4132_v41 = vld [vmem:[%s8626_s1 + $0x148] sm:$0xff]  ;;  %v4131_v42 = vld [vmem:[%s8626_s1 + $0x140] sm:$0xff] }
  0x1b   : > { %699 = vperm.xlu1 %4479, %v206_v7   ;;  %694 = vperm.xlu0 %4478, %v205_v8   ;;  %v4134_v43 = vld [vmem:[%s8626_s1 + $0x158] sm:$0xff]  ;;  %v4133_v44 = vld [vmem:[%s8626_s1 + $0x150] sm:$0xff]  ;;  %v4136_v45 = vld [vmem:[%s8626_s1 + $0x168] sm:$0xff] }
  0x1c   : > { %v4135_v46 = vld [vmem:[%s8626_s1 + $0x160] sm:$0xff]  ;;  %v4138_v47 = vld [vmem:[%s8626_s1 + $0x178] sm:$0xff]  ;;  %v4137_v48 = vld [vmem:[%s8626_s1 + $0x170] sm:$0xff] }
  0x1d   : > { %v4140_v49 = vld [vmem:[%s8626_s1 + $0x188] sm:$0xff]  ;;  %v4139_v50 = vld [vmem:[%s8626_s1 + $0x180] sm:$0xff]  ;;  %v4142_v51 = vld [vmem:[%s8626_s1 + $0x198] sm:$0xff] }
  0x1e   : > { %v4141_v52 = vld [vmem:[%s8626_s1 + $0x190] sm:$0xff]  ;;  %v4144_v53 = vld [vmem:[%s8626_s1 + $0x1a8] sm:$0xff]  ;;  %v4143_v54 = vld [vmem:[%s8626_s1 + $0x1a0] sm:$0xff] }
  0x1f   : > { %709 = vperm.xlu1 %4479, %v208_v9   ;;  %704 = vperm.xlu0 %4478, %v207_v10   ;;  %v4146_v55 = vld [vmem:[%s8626_s1 + $0x1b8] sm:$0xff]  ;;  %v4145_v56 = vld [vmem:[%s8626_s1 + $0x1b0] sm:$0xff]  ;;  %v4148_v57 = vld [vmem:[%s8626_s1 + $0x1c8] sm:$0xff] }
  0x20   : > { %v4147_v58 = vld [vmem:[%s8626_s1 + $0x1c0] sm:$0xff]  ;;  %v4150_v59 = vld [vmem:[%s8626_s1 + $0x1d8] sm:$0xff]  ;;  %v4149_v60 = vld [vmem:[%s8626_s1 + $0x1d0] sm:$0xff] }
  0x21   : > { %v4152_v61 = vld [vmem:[%s8626_s1 + $0x1e8] sm:$0xff]  ;;  %v4151_v62 = vld [vmem:[%s8626_s1 + $0x1e0] sm:$0xff]  ;;  %v4154_v63 = vld [vmem:[%s8626_s1 + $0x1f8] sm:$0xff] }
  0x22   : > { %v4153_v0 = vld [vmem:[%s8626_s1 + $0x1f0] sm:$0xff]  ;;  %v4156_v1 = vld [vmem:[%s8626_s1 + $0x208] sm:$0xff]  ;;  %v4155_v2 = vld [vmem:[%s8626_s1 + $0x200] sm:$0xff] }
  0x23   : > { %719 = vperm.xlu1 %4479, %v210_v11   ;;  %714 = vperm.xlu0 %4478, %v209_v12   ;;  %v4158_v5 = vld [vmem:[%s8626_s1 + $0x218] sm:$0xff]  ;;  %v4157_v6 = vld [vmem:[%s8626_s1 + $0x210] sm:$0xff]  ;;  %v4160_v9 = vld [vmem:[%s8626_s1 + $0x228] sm:$0xff] }
  0x24   : > { %v4159_v10 = vld [vmem:[%s8626_s1 + $0x220] sm:$0xff] }
  0x27   : > { %729 = vperm.xlu1 %4479, %v212_v13   ;;  %724 = vperm.xlu0 %4478, %v211_v14   ;;  %v4162_v13 = vld [vmem:[%s8626_s1 + $0x238] sm:$0xff]  ;;  %v4161_v14 = vld [vmem:[%s8626_s1 + $0x230] sm:$0xff] }
  0x2b   : > { %739 = vperm.xlu1 %4479, %v214_v15   ;;  %734 = vperm.xlu0 %4478, %v213_v16  }
  0x2f   : > { %749 = vperm.xlu1 %4479, %v216_v17   ;;  %744 = vperm.xlu0 %4478, %v215_v18   ;;  %v4164_v17 = vld [vmem:[%s8626_s1 + $0x248] sm:$0xff]  ;;  %v4163_v18 = vld [vmem:[%s8626_s1 + $0x240] sm:$0xff] }
  0x33   : > { %759 = vperm.xlu1 %4479, %v218_v19   ;;  %754 = vperm.xlu0 %4478, %v217_v20  }
  0x37   : > { %769 = vperm.xlu1 %4479, %v220_v21   ;;  %764 = vperm.xlu0 %4478, %v219_v22   ;;  %v4166_v21 = vld [vmem:[%s8626_s1 + $0x258] sm:$0xff]  ;;  %v4165_v22 = vld [vmem:[%s8626_s1 + $0x250] sm:$0xff] }
  0x3b   : > { %779 = vperm.xlu1 %4479, %v222_v23   ;;  %774 = vperm.xlu0 %4478, %v221_v24  }
  0x3f   : > { %789 = vperm.xlu1 %4479, %v224_v25   ;;  %784 = vperm.xlu0 %4478, %v223_v26   ;;  %v4168_v25 = vld [vmem:[%s8626_s1 + $0x268] sm:$0xff]  ;;  %v4167_v26 = vld [vmem:[%s8626_s1 + $0x260] sm:$0xff] }
  0x43   : > { %799 = vperm.xlu1 %4479, %v226_v27   ;;  %794 = vperm.xlu0 %4478, %v225_v28  }
  0x47   : > { %809 = vperm.xlu1 %4479, %v228_v29   ;;  %804 = vperm.xlu0 %4478, %v227_v30   ;;  %v4170_v29 = vld [vmem:[%s8626_s1 + $0x278] sm:$0xff]  ;;  %v4169_v30 = vld [vmem:[%s8626_s1 + $0x270] sm:$0xff] }
  0x4b   : > { %819 = vperm.xlu1 %4479, %v230_v31   ;;  %814 = vperm.xlu0 %4478, %v229_v32  }
  0x4f   : > { %861 = vperm.xlu1 %4479, %v4124_v33   ;;  %856 = vperm.xlu0 %4478, %v4123_v34   ;;  %v4172_v33 = vld [vmem:[%s8626_s1 + $0x288] sm:$0xff]  ;;  %v4171_v34 = vld [vmem:[%s8626_s1 + $0x280] sm:$0xff] }
  0x53   : > { %871 = vperm.xlu1 %4479, %v4126_v35   ;;  %866 = vperm.xlu0 %4478, %v4125_v36  }
  0x57   : > { %881 = vperm.xlu1 %4479, %v4128_v37   ;;  %876 = vperm.xlu0 %4478, %v4127_v38   ;;  %v4174_v37 = vld [vmem:[%s8626_s1 + $0x298] sm:$0xff]  ;;  %v4173_v38 = vld [vmem:[%s8626_s1 + $0x290] sm:$0xff] }
  0x5b   : > { %891 = vperm.xlu1 %4479, %v4130_v39   ;;  %886 = vperm.xlu0 %4478, %v4129_v40  }
  0x5f   : > { %901 = vperm.xlu1 %4479, %v4132_v41   ;;  %896 = vperm.xlu0 %4478, %v4131_v42   ;;  %v4176_v41 = vld [vmem:[%s8626_s1 + $0x2a8] sm:$0xff]  ;;  %v4175_v42 = vld [vmem:[%s8626_s1 + $0x2a0] sm:$0xff] }
  0x63   : > { %911 = vperm.xlu1 %4479, %v4134_v43   ;;  %906 = vperm.xlu0 %4478, %v4133_v44  }
  0x67   : > { %921 = vperm.xlu1 %4479, %v4136_v45   ;;  %916 = vperm.xlu0 %4478, %v4135_v46   ;;  %v4178_v45 = vld [vmem:[%s8626_s1 + $0x2b8] sm:$0xff]  ;;  %v4177_v46 = vld [vmem:[%s8626_s1 + $0x2b0] sm:$0xff] }
  0x6b   : > { %931 = vperm.xlu1 %4479, %v4138_v47   ;;  %926 = vperm.xlu0 %4478, %v4137_v48  }
  0x6f   : > { %941 = vperm.xlu1 %4479, %v4140_v49   ;;  %936 = vperm.xlu0 %4478, %v4139_v50   ;;  %v4180_v49 = vld [vmem:[%s8626_s1 + $0x2c8] sm:$0xff]  ;;  %v4179_v50 = vld [vmem:[%s8626_s1 + $0x2c0] sm:$0xff] }
  0x73   : > { %951 = vperm.xlu1 %4479, %v4142_v51   ;;  %946 = vperm.xlu0 %4478, %v4141_v52  }
  0x77   : > { %961 = vperm.xlu1 %4479, %v4144_v53   ;;  %956 = vperm.xlu0 %4478, %v4143_v54   ;;  %v4182_v53 = vld [vmem:[%s8626_s1 + $0x2d8] sm:$0xff]  ;;  %v4181_v54 = vld [vmem:[%s8626_s1 + $0x2d0] sm:$0xff] }
  0x7b   : > { %971 = vperm.xlu1 %4479, %v4146_v55   ;;  %966 = vperm.xlu0 %4478, %v4145_v56  }
  0x7f   : > { %981 = vperm.xlu1 %4479, %v4148_v57   ;;  %976 = vperm.xlu0 %4478, %v4147_v58   ;;  %v4184_v57 = vld [vmem:[%s8626_s1 + $0x2e8] sm:$0xff]  ;;  %v4183_v58 = vld [vmem:[%s8626_s1 + $0x2e0] sm:$0xff] }
  0x83   : > { %991 = vperm.xlu1 %4479, %v4150_v59   ;;  %986 = vperm.xlu0 %4478, %v4149_v60  }
  0x87   : > { %1001 = vperm.xlu1 %4479, %v4152_v61   ;;  %996 = vperm.xlu0 %4478, %v4151_v62   ;;  %v4186_v61 = vld [vmem:[%s8626_s1 + $0x2f8] sm:$0xff]  ;;  %v4185_v62 = vld [vmem:[%s8626_s1 + $0x2f0] sm:$0xff] }
  0x8b   : > { %1011 = vperm.xlu1 %4479, %v4154_v63   ;;  %1006 = vperm.xlu0 %4478, %v4153_v0  }
  0x8e   : > { %v5393_v3 = vpop.permute.xlu1 %674  ;;  %v5395_v4 = vpop.permute.xlu0 %664 }
  0x8f   : > { %8757 = vst [vmem:[#allocation2_spill] sm:$0xff] %v5393_v3  ;;  %8758 = vst [vmem:[#allocation3_spill] sm:$0xff] %v5395_v4  ;;  %1151 = vperm.xlu1 %4479, %v4156_v1   ;;  %1146 = vperm.xlu0 %4478, %v4155_v2   ;;  %v4188_v1 = vld [vmem:[%s8626_s1 + $0x308] sm:$0xff]  ;;  %v4187_v2 = vld [vmem:[%s8626_s1 + $0x300] sm:$0xff] }
  0x90   : > { %v4230_v4 = vld [vmem:[%s8626_s1 + $0x458] sm:$0xff] }
  0x92   : > { %v5403_v7 = vpop.permute.xlu1 %679  ;;  %v5405_v8 = vpop.permute.xlu0 %669 }
  0x93   : > { %8759 = vst [vmem:[#allocation4_spill] sm:$0xff] %v5403_v7  ;;  %8760 = vst [vmem:[#allocation5_spill] sm:$0xff] %v5405_v8  ;;  %1161 = vperm.xlu1 %4479, %v4158_v5   ;;  %1156 = vperm.xlu0 %4478, %v4157_v6   ;;  %v4228_v8 = vld [vmem:[%s8626_s1 + $0x448] sm:$0xff] }
  0x96   : > { %v5413_v11 = vpop.permute.xlu1 %689  ;;  %v5415_v12 = vpop.permute.xlu0 %684 }
  0x97   : > { %8761 = vst [vmem:[#allocation6_spill] sm:$0xff] %v5413_v11  ;;  %8762 = vst [vmem:[#allocation7_spill] sm:$0xff] %v5415_v12  ;;  %1171 = vperm.xlu1 %4479, %v4160_v9   ;;  %1166 = vperm.xlu0 %4478, %v4159_v10   ;;  %v4190_v9 = vld [vmem:[%s8626_s1 + $0x318] sm:$0xff]  ;;  %v4189_v10 = vld [vmem:[%s8626_s1 + $0x310] sm:$0xff] }
  0x98   : > { %v4226_v12 = vld [vmem:[%s8626_s1 + $0x438] sm:$0xff] }
  0x9a   : > { %v5423_v15 = vpop.permute.xlu1 %699  ;;  %v5425_v16 = vpop.permute.xlu0 %694 }
  0x9b   : > { %8763 = vst [vmem:[#allocation8_spill] sm:$0xff] %v5423_v15  ;;  %8764 = vst [vmem:[#allocation9_spill] sm:$0xff] %v5425_v16  ;;  %1181 = vperm.xlu1 %4479, %v4162_v13   ;;  %1176 = vperm.xlu0 %4478, %v4161_v14   ;;  %v4220_v15 = vld [vmem:[%s8626_s1 + $0x408] sm:$0xff] }
  0x9e   : > { %v5433_v19 = vpop.permute.xlu1 %709  ;;  %v5435_v20 = vpop.permute.xlu0 %704 }
  0x9f   : > { %8765 = vst [vmem:[#allocation10_spill] sm:$0xff] %v5433_v19  ;;  %8766 = vst [vmem:[#allocation11_spill] sm:$0xff] %v5435_v20  ;;  %1191 = vperm.xlu1 %4479, %v4164_v17   ;;  %1186 = vperm.xlu0 %4478, %v4163_v18   ;;  %v4192_v17 = vld [vmem:[%s8626_s1 + $0x328] sm:$0xff]  ;;  %v4191_v18 = vld [vmem:[%s8626_s1 + $0x320] sm:$0xff] }
  0xa0   : > { %v4246_v20 = vld [vmem:[%s8626_s1 + $0x4d8] sm:$0xff] }
  0xa2   : > { %v5443_v23 = vpop.permute.xlu1 %719  ;;  %v5445_v24 = vpop.permute.xlu0 %714 }
  0xa3   : > { %8767 = vst [vmem:[#allocation12_spill] sm:$0xff] %v5443_v23  ;;  %8768 = vst [vmem:[#allocation13_spill] sm:$0xff] %v5445_v24  ;;  %1201 = vperm.xlu1 %4479, %v4166_v21   ;;  %1196 = vperm.xlu0 %4478, %v4165_v22   ;;  %v4244_v24 = vld [vmem:[%s8626_s1 + $0x4c8] sm:$0xff] }
  0xa6   : > { %v5453_v27 = vpop.permute.xlu1 %729  ;;  %v5455_v28 = vpop.permute.xlu0 %724 }
  0xa7   : > { %8769 = vst [vmem:[#allocation14_spill] sm:$0xff] %v5453_v27  ;;  %8770 = vst [vmem:[#allocation15_spill] sm:$0xff] %v5455_v28  ;;  %1211 = vperm.xlu1 %4479, %v4168_v25   ;;  %1206 = vperm.xlu0 %4478, %v4167_v26   ;;  %v4194_v25 = vld [vmem:[%s8626_s1 + $0x338] sm:$0xff]  ;;  %v4193_v26 = vld [vmem:[%s8626_s1 + $0x330] sm:$0xff] }
  0xa8   : > { %v4242_v28 = vld [vmem:[%s8626_s1 + $0x4b8] sm:$0xff] }
  0xaa   : > { %v5463_v31 = vpop.permute.xlu1 %739  ;;  %v5465_v32 = vpop.permute.xlu0 %734 }
  0xab   : > { %8771 = vst [vmem:[#allocation16_spill] sm:$0xff] %v5463_v31  ;;  %8772 = vst [vmem:[#allocation17_spill] sm:$0xff] %v5465_v32  ;;  %1221 = vperm.xlu1 %4479, %v4170_v29   ;;  %1216 = vperm.xlu0 %4478, %v4169_v30   ;;  %v4240_v32 = vld [vmem:[%s8626_s1 + $0x4a8] sm:$0xff] }
  0xae   : > { %v5473_v35 = vpop.permute.xlu1 %749  ;;  %v5475_v36 = vpop.permute.xlu0 %744 }
  0xaf   : > { %8773 = vst [vmem:[#allocation18_spill] sm:$0xff] %v5473_v35  ;;  %8774 = vst [vmem:[#allocation19_spill] sm:$0xff] %v5475_v36  ;;  %1231 = vperm.xlu1 %4479, %v4172_v33   ;;  %1226 = vperm.xlu0 %4478, %v4171_v34   ;;  %v4196_v33 = vld [vmem:[%s8626_s1 + $0x348] sm:$0xff]  ;;  %v4195_v34 = vld [vmem:[%s8626_s1 + $0x340] sm:$0xff] }
  0xb0   : > { %v4224_v35 = vld [vmem:[%s8626_s1 + $0x428] sm:$0xff] }
  0xb2   : > { %v5483_v39 = vpop.permute.xlu1 %759  ;;  %v5485_v40 = vpop.permute.xlu0 %754 }
  0xb3   : > { %8775 = vst [vmem:[#allocation20_spill] sm:$0xff] %v5483_v39  ;;  %8776 = vst [vmem:[#allocation21_spill] sm:$0xff] %v5485_v40  ;;  %1241 = vperm.xlu1 %4479, %v4174_v37   ;;  %1236 = vperm.xlu0 %4478, %v4173_v38   ;;  %v4222_v39 = vld [vmem:[%s8626_s1 + $0x418] sm:$0xff] }
  0xb6   : > { %v5493_v43 = vpop.permute.xlu1 %769  ;;  %v5495_v44 = vpop.permute.xlu0 %764 }
  0xb7   : > { %8777 = vst [vmem:[#allocation22_spill] sm:$0xff] %v5493_v43  ;;  %8778 = vst [vmem:[#allocation23_spill] sm:$0xff] %v5495_v44  ;;  %1251 = vperm.xlu1 %4479, %v4176_v41   ;;  %1246 = vperm.xlu0 %4478, %v4175_v42   ;;  %v4198_v41 = vld [vmem:[%s8626_s1 + $0x358] sm:$0xff]  ;;  %v4197_v42 = vld [vmem:[%s8626_s1 + $0x350] sm:$0xff] }
  0xb8   : > { %v4218_v44 = vld [vmem:[%s8626_s1 + $0x3f8] sm:$0xff] }
  0xba   : > { %v5503_v47 = vpop.permute.xlu1 %779  ;;  %v5505_v48 = vpop.permute.xlu0 %774 }
  0xbb   : > { %8779 = vst [vmem:[#allocation24_spill] sm:$0xff] %v5503_v47  ;;  %8780 = vst [vmem:[#allocation25_spill] sm:$0xff] %v5505_v48  ;;  %1261 = vperm.xlu1 %4479, %v4178_v45   ;;  %1256 = vperm.xlu0 %4478, %v4177_v46   ;;  %v4216_v48 = vld [vmem:[%s8626_s1 + $0x3e8] sm:$0xff] }
  0xbe   : > { %v5513_v51 = vpop.permute.xlu1 %789  ;;  %v5515_v52 = vpop.permute.xlu0 %784 }
  0xbf   : > { %8781 = vst [vmem:[#allocation26_spill] sm:$0xff] %v5513_v51  ;;  %8782 = vst [vmem:[#allocation27_spill] sm:$0xff] %v5515_v52  ;;  %1271 = vperm.xlu1 %4479, %v4180_v49   ;;  %1266 = vperm.xlu0 %4478, %v4179_v50   ;;  %v4200_v49 = vld [vmem:[%s8626_s1 + $0x368] sm:$0xff]  ;;  %v4199_v50 = vld [vmem:[%s8626_s1 + $0x360] sm:$0xff] }
  0xc0   : > { %v4238_v52 = vld [vmem:[%s8626_s1 + $0x498] sm:$0xff] }
  0xc2   : > { %v5523_v55 = vpop.permute.xlu1 %799  ;;  %v5525_v56 = vpop.permute.xlu0 %794 }
  0xc3   : > { %8783 = vst [vmem:[#allocation28_spill] sm:$0xff] %v5523_v55  ;;  %8784 = vst [vmem:[#allocation29_spill] sm:$0xff] %v5525_v56  ;;  %1281 = vperm.xlu1 %4479, %v4182_v53   ;;  %1276 = vperm.xlu0 %4478, %v4181_v54   ;;  %v4236_v56 = vld [vmem:[%s8626_s1 + $0x488] sm:$0xff] }
  0xc6   : > { %v5533_v59 = vpop.permute.xlu1 %809  ;;  %v5535_v60 = vpop.permute.xlu0 %804 }
  0xc7   : > { %8785 = vst [vmem:[#allocation30_spill] sm:$0xff] %v5533_v59  ;;  %8786 = vst [vmem:[#allocation31_spill] sm:$0xff] %v5535_v60  ;;  %1291 = vperm.xlu1 %4479, %v4184_v57   ;;  %1286 = vperm.xlu0 %4478, %v4183_v58   ;;  %v4202_v57 = vld [vmem:[%s8626_s1 + $0x378] sm:$0xff]  ;;  %v4201_v58 = vld [vmem:[%s8626_s1 + $0x370] sm:$0xff] }
  0xc8   : > { %v4234_v60 = vld [vmem:[%s8626_s1 + $0x478] sm:$0xff] }
  0xca   : > { %v5543_v63 = vpop.permute.xlu1 %819  ;;  %v5545_v0 = vpop.permute.xlu0 %814 }
  0xcb   : > { %8787 = vst [vmem:[#allocation32_spill] sm:$0xff] %v5543_v63  ;;  %8788 = vst [vmem:[#allocation33_spill] sm:$0xff] %v5545_v0  ;;  %1301 = vperm.xlu1 %4479, %v4186_v61   ;;  %1296 = vperm.xlu0 %4478, %v4185_v62   ;;  %v4232_v0 = vld [vmem:[%s8626_s1 + $0x468] sm:$0xff] }
  0xce   : > { %v5553_v5 = vpop.permute.xlu1 %861  ;;  %v5555_v6 = vpop.permute.xlu0 %856 }
  0xcf   : > { %1343 = vperm.xlu1 %4479, %v4188_v1   ;;  %1338 = vperm.xlu0 %4478, %v4187_v2   ;;  %v4204_v1 = vld [vmem:[%s8626_s1 + $0x388] sm:$0xff]  ;;  %v4203_v2 = vld [vmem:[%s8626_s1 + $0x380] sm:$0xff] }
  0xd2   : > { %v5563_v13 = vpop.permute.xlu1 %871  ;;  %v5565_v14 = vpop.permute.xlu0 %866 }
  0xd3   : > { %1353 = vperm.xlu1 %4479, %v4190_v9   ;;  %1348 = vperm.xlu0 %4478, %v4189_v10  }
  0xd6   : > { %v5573_v21 = vpop.permute.xlu1 %881  ;;  %v5575_v22 = vpop.permute.xlu0 %876 }
  0xd7   : > { %1363 = vperm.xlu1 %4479, %v4192_v17   ;;  %1358 = vperm.xlu0 %4478, %v4191_v18   ;;  %v4206_v17 = vld [vmem:[%s8626_s1 + $0x398] sm:$0xff]  ;;  %v4205_v18 = vld [vmem:[%s8626_s1 + $0x390] sm:$0xff] }
  0xda   : > { %v5583_v29 = vpop.permute.xlu1 %891  ;;  %v5585_v30 = vpop.permute.xlu0 %886 }
  0xdb   : > { %1373 = vperm.xlu1 %4479, %v4194_v25   ;;  %1368 = vperm.xlu0 %4478, %v4193_v26  }
  0xde   : > { %v5593_v37 = vpop.permute.xlu1 %901  ;;  %v5595_v38 = vpop.permute.xlu0 %896 }
  0xdf   : > { %1383 = vperm.xlu1 %4479, %v4196_v33   ;;  %1378 = vperm.xlu0 %4478, %v4195_v34   ;;  %v4208_v33 = vld [vmem:[%s8626_s1 + $0x3a8] sm:$0xff]  ;;  %v4207_v34 = vld [vmem:[%s8626_s1 + $0x3a0] sm:$0xff] }
  0xe2   : > { %v5603_v45 = vpop.permute.xlu1 %911  ;;  %v5605_v46 = vpop.permute.xlu0 %906 }
  0xe3   : > { %1393 = vperm.xlu1 %4479, %v4198_v41   ;;  %1388 = vperm.xlu0 %4478, %v4197_v42  }
  0xe6   : > { %v5613_v53 = vpop.permute.xlu1 %921  ;;  %v5615_v54 = vpop.permute.xlu0 %916 }
  0xe7   : > { %1403 = vperm.xlu1 %4479, %v4200_v49   ;;  %1398 = vperm.xlu0 %4478, %v4199_v50   ;;  %v4210_v49 = vld [vmem:[%s8626_s1 + $0x3b8] sm:$0xff]  ;;  %v4209_v50 = vld [vmem:[%s8626_s1 + $0x3b0] sm:$0xff] }
  0xea   : > { %v5623_v61 = vpop.permute.xlu1 %931  ;;  %v5625_v62 = vpop.permute.xlu0 %926 }
  0xeb   : > { %1413 = vperm.xlu1 %4479, %v4202_v57   ;;  %1408 = vperm.xlu0 %4478, %v4201_v58  }
  0xee   : > { %v5633_v9 = vpop.permute.xlu1 %941  ;;  %v5635_v10 = vpop.permute.xlu0 %936 }
  0xef   : > { %1423 = vperm.xlu1 %4479, %v4204_v1   ;;  %1418 = vperm.xlu0 %4478, %v4203_v2   ;;  %v4212_v1 = vld [vmem:[%s8626_s1 + $0x3c8] sm:$0xff]  ;;  %v4211_v2 = vld [vmem:[%s8626_s1 + $0x3c0] sm:$0xff] }
  0xf2   : > { %v5643_v25 = vpop.permute.xlu1 %951  ;;  %v5645_v26 = vpop.permute.xlu0 %946 }
  0xf3   : > { %1433 = vperm.xlu1 %4479, %v4206_v17   ;;  %1428 = vperm.xlu0 %4478, %v4205_v18  }
  0xf6   : > { %v5653_v41 = vpop.permute.xlu1 %961  ;;  %v5655_v42 = vpop.permute.xlu0 %956 }
  0xf7   : > { %1443 = vperm.xlu1 %4479, %v4208_v33   ;;  %1438 = vperm.xlu0 %4478, %v4207_v34   ;;  %v4214_v33 = vld [vmem:[%s8626_s1 + $0x3d8] sm:$0xff]  ;;  %v4213_v34 = vld [vmem:[%s8626_s1 + $0x3d0] sm:$0xff] }
  0xfa   : > { %v5663_v57 = vpop.permute.xlu1 %971  ;;  %v5665_v58 = vpop.permute.xlu0 %966 }
  0xfb   : > { %1453 = vperm.xlu1 %4479, %v4210_v49   ;;  %1448 = vperm.xlu0 %4478, %v4209_v50  }
  0xfe   : > { %v5673_v17 = vpop.permute.xlu1 %981  ;;  %v5675_v18 = vpop.permute.xlu0 %976 }
  0xff   : > { %1463 = vperm.xlu1 %4479, %v4212_v1   ;;  %1458 = vperm.xlu0 %4478, %v4211_v2   ;;  %v4215_v1 = vld [vmem:[%s8626_s1 + $0x3e0] sm:$0xff] }
 0x102   : > { %v5683_v49 = vpop.permute.xlu1 %991  ;;  %v5685_v50 = vpop.permute.xlu0 %986 }
 0x103   : > { %1473 = vperm.xlu1 %4479, %v4214_v33   ;;  %1468 = vperm.xlu0 %4478, %v4213_v34   ;;  %v4217_v33 = vld [vmem:[%s8626_s1 + $0x3f0] sm:$0xff] }
 0x106   : > { %v5693_v2 = vpop.permute.xlu1 %1001  ;;  %v5695_v47 = vpop.permute.xlu0 %996 }
 0x107   : > { %1483 = vperm.xlu1 %4479, %v4216_v48   ;;  %1478 = vperm.xlu0 %4478, %v4215_v1   ;;  %v4219_v48 = vld [vmem:[%s8626_s1 + $0x400] sm:$0xff] }
 0x10a   : > { %v5703_v34 = vpop.permute.xlu1 %1011  ;;  %v5705_v43 = vpop.permute.xlu0 %1006 }
 0x10b   : > { %1493 = vperm.xlu1 %4479, %v4218_v44   ;;  %1488 = vperm.xlu0 %4478, %v4217_v33   ;;  %v4221_v44 = vld [vmem:[%s8626_s1 + $0x410] sm:$0xff] }
 0x10e   : > { %v5713_v1 = vpop.permute.xlu1 %1151  ;;  %v5715_v40 = vpop.permute.xlu0 %1146 }
 0x10f   : > { %1535 = vperm.xlu1 %4479, %v4220_v15   ;;  %1530 = vperm.xlu0 %4478, %v4219_v48   ;;  %v4223_v15 = vld [vmem:[%s8626_s1 + $0x420] sm:$0xff] }
 0x112   : > { %v5723_v33 = vpop.permute.xlu1 %1161  ;;  %v5725_v36 = vpop.permute.xlu0 %1156 }
 0x113   : > { %1545 = vperm.xlu1 %4479, %v4222_v39   ;;  %1540 = vperm.xlu0 %4478, %v4221_v44   ;;  %v4225_v39 = vld [vmem:[%s8626_s1 + $0x430] sm:$0xff] }
 0x116   : > { %v5733_v48 = vpop.permute.xlu1 %1171  ;;  %v5735_v16 = vpop.permute.xlu0 %1166 }
 0x117   : > { %1555 = vperm.xlu1 %4479, %v4224_v35   ;;  %1550 = vperm.xlu0 %4478, %v4223_v15   ;;  %v4227_v35 = vld [vmem:[%s8626_s1 + $0x440] sm:$0xff] }
 0x11a   : > { %v5743_v44 = vpop.permute.xlu1 %1181  ;;  %v5745_v11 = vpop.permute.xlu0 %1176 }
 0x11b   : > { %1565 = vperm.xlu1 %4479, %v4226_v12   ;;  %1560 = vperm.xlu0 %4478, %v4225_v39   ;;  %v4229_v12 = vld [vmem:[%s8626_s1 + $0x450] sm:$0xff] }
 0x11e   : > { %v5753_v15 = vpop.permute.xlu1 %1191  ;;  %v5755_v7 = vpop.permute.xlu0 %1186 }
 0x11f   : > { %1575 = vperm.xlu1 %4479, %v4228_v8   ;;  %1570 = vperm.xlu0 %4478, %v4227_v35   ;;  %v4231_v8 = vld [vmem:[%s8626_s1 + $0x460] sm:$0xff] }
 0x122   : > { %v5763_v39 = vpop.permute.xlu1 %1201  ;;  %v5765_v3 = vpop.permute.xlu0 %1196 }
 0x123   : > { %1585 = vperm.xlu1 %4479, %v4230_v4   ;;  %1580 = vperm.xlu0 %4478, %v4229_v12   ;;  %v4233_v4 = vld [vmem:[%s8626_s1 + $0x470] sm:$0xff] }
 0x126   : > { %v5773_v35 = vpop.permute.xlu1 %1211  ;;  %v5775_v63 = vpop.permute.xlu0 %1206 }
 0x127   : > { %1595 = vperm.xlu1 %4479, %v4232_v0   ;;  %1590 = vperm.xlu0 %4478, %v4231_v8   ;;  %v4235_v0 = vld [vmem:[%s8626_s1 + $0x480] sm:$0xff] }
 0x12a   : > { %v5783_v12 = vpop.permute.xlu1 %1221  ;;  %v5785_v59 = vpop.permute.xlu0 %1216 }
 0x12b   : > { %8789 = vst [vmem:[#allocation34_spill] sm:$0xff] %v5785_v59  ;;  %1605 = vperm.xlu1 %4479, %v4234_v60   ;;  %1600 = vperm.xlu0 %4478, %v4233_v4   ;;  %v4237_v60 = vld [vmem:[%s8626_s1 + $0x490] sm:$0xff] }
 0x12e   : > { %v5793_v8 = vpop.permute.xlu1 %1231  ;;  %v5795_v55 = vpop.permute.xlu0 %1226 }
 0x12f   : > { %8790 = vst [vmem:[#allocation35_spill] sm:$0xff] %v5793_v8  ;;  %8791 = vst [vmem:[#allocation36_spill] sm:$0xff] %v5795_v55  ;;  %1615 = vperm.xlu1 %4479, %v4236_v56   ;;  %1610 = vperm.xlu0 %4478, %v4235_v0   ;;  %v4239_v56 = vld [vmem:[%s8626_s1 + $0x4a0] sm:$0xff]  ;;  %v6565_v8 = vld [vmem:[%s6499_s10 + $0x38] sm:$0xff] }
 0x130   : > { %8938 = vst [vmem:[#allocation183_spill] sm:$0xff] %v6565_v8 }
 0x132   : > { %v5803_v4 = vpop.permute.xlu1 %1241  ;;  %v5805_v51 = vpop.permute.xlu0 %1236 }
 0x133   : > { %8792 = vst [vmem:[#allocation37_spill] sm:$0xff] %v5803_v4  ;;  %8793 = vst [vmem:[#allocation38_spill] sm:$0xff] %v5805_v51  ;;  %1625 = vperm.xlu1 %4479, %v4238_v52   ;;  %1620 = vperm.xlu0 %4478, %v4237_v60   ;;  %v4241_v52 = vld [vmem:[%s8626_s1 + $0x4b0] sm:$0xff] }
 0x136   : > { %v5813_v0 = vpop.permute.xlu1 %1251  ;;  %v5815_v31 = vpop.permute.xlu0 %1246 }
 0x137   : > { %8794 = vst [vmem:[#allocation39_spill] sm:$0xff] %v5813_v0  ;;  %8795 = vst [vmem:[#allocation40_spill] sm:$0xff] %v5815_v31  ;;  %1635 = vperm.xlu1 %4479, %v4240_v32   ;;  %1630 = vperm.xlu0 %4478, %v4239_v56   ;;  %v4243_v32 = vld [vmem:[%s8626_s1 + $0x4c0] sm:$0xff]  ;;  %v4378_v31 = vld [vmem:[%s8626_s1 + $0x8f8] sm:$0xff] }
 0x138   : > { %v6551_v0 = vld [vmem:[%s6499_s10 + $0x28] sm:$0xff] }
 0x13a   : > { %v5823_v60 = vpop.permute.xlu1 %1261  ;;  %v5825_v27 = vpop.permute.xlu0 %1256 }
 0x13b   : > { %8796 = vst [vmem:[#allocation41_spill] sm:$0xff] %v5823_v60  ;;  %8797 = vst [vmem:[#allocation42_spill] sm:$0xff] %v5825_v27  ;;  %1645 = vperm.xlu1 %4479, %v4242_v28   ;;  %1640 = vperm.xlu0 %4478, %v4241_v52   ;;  %v4245_v28 = vld [vmem:[%s8626_s1 + $0x4d0] sm:$0xff] }
 0x13e   : > { %v5833_v56 = vpop.permute.xlu1 %1271  ;;  %v5835_v23 = vpop.permute.xlu0 %1266 }
 0x13f   : > { %8798 = vst [vmem:[#allocation43_spill] sm:$0xff] %v5833_v56  ;;  %8799 = vst [vmem:[#allocation44_spill] sm:$0xff] %v5835_v23  ;;  %1655 = vperm.xlu1 %4479, %v4244_v24   ;;  %1650 = vperm.xlu0 %4478, %v4243_v32   ;;  %v4248_v23 = vld [vmem:[%s8626_s1 + $0x4e8] sm:$0xff]  ;;  %v4247_v24 = vld [vmem:[%s8626_s1 + $0x4e0] sm:$0xff] }
 0x142   : > { %v5843_v52 = vpop.permute.xlu1 %1281  ;;  %v5845_v19 = vpop.permute.xlu0 %1276 }
 0x143   : > { %8800 = vst [vmem:[#allocation45_spill] sm:$0xff] %v5843_v52  ;;  %8801 = vst [vmem:[#allocation46_spill] sm:$0xff] %v5845_v19  ;;  %1665 = vperm.xlu1 %4479, %v4246_v20   ;;  %1660 = vperm.xlu0 %4478, %v4245_v28   ;;  %v4250_v19 = vld [vmem:[%s8626_s1 + $0x4f8] sm:$0xff]  ;;  %v4249_v20 = vld [vmem:[%s8626_s1 + $0x4f0] sm:$0xff] }
 0x146   : > { %v5853_v32 = vpop.permute.xlu1 %1291  ;;  %v5855_v56 = vpop.permute.xlu0 %1286 }
 0x147   : > { %8802 = vst [vmem:[#allocation47_spill] sm:$0xff] %v5853_v32  ;;  %8803 = vst [vmem:[#allocation48_spill] sm:$0xff] %v5855_v56  ;;  %1675 = vperm.xlu1 %4479, %v4248_v23   ;;  %1670 = vperm.xlu0 %4478, %v4247_v24   ;;  %v4252_v56 = vld [vmem:[%s8626_s1 + $0x508] sm:$0xff]  ;;  %v4251_v23 = vld [vmem:[%s8626_s1 + $0x500] sm:$0xff] }
 0x14a   : > { %v5863_v28 = vpop.permute.xlu1 %1301  ;;  %v5865_v52 = vpop.permute.xlu0 %1296 }
 0x14b   : > { %8804 = vst [vmem:[#allocation49_spill] sm:$0xff] %v5863_v28  ;;  %8805 = vst [vmem:[#allocation50_spill] sm:$0xff] %v5865_v52  ;;  %1685 = vperm.xlu1 %4479, %v4250_v19   ;;  %1680 = vperm.xlu0 %4478, %v4249_v20   ;;  %v4254_v52 = vld [vmem:[%s8626_s1 + $0x518] sm:$0xff]  ;;  %v4253_v19 = vld [vmem:[%s8626_s1 + $0x510] sm:$0xff] }
 0x14e   : > { %v5873_v24 = vpop.permute.xlu1 %1343  ;;  %v5875_v32 = vpop.permute.xlu0 %1338 }
 0x14f   : > { %8806 = vst [vmem:[#allocation51_spill] sm:$0xff] %v5873_v24  ;;  %8807 = vst [vmem:[#allocation52_spill] sm:$0xff] %v5875_v32  ;;  %1727 = vperm.xlu1 %4479, %v4252_v56   ;;  %1722 = vperm.xlu0 %4478, %v4251_v23   ;;  %v4256_v32 = vld [vmem:[%s8626_s1 + $0x528] sm:$0xff]  ;;  %v4255_v56 = vld [vmem:[%s8626_s1 + $0x520] sm:$0xff] }
 0x152   : > { %v5883_v20 = vpop.permute.xlu1 %1353  ;;  %v5885_v28 = vpop.permute.xlu0 %1348 }
 0x153   : > { %8808 = vst [vmem:[#allocation53_spill] sm:$0xff] %v5883_v20  ;;  %8809 = vst [vmem:[#allocation54_spill] sm:$0xff] %v5885_v28  ;;  %1737 = vperm.xlu1 %4479, %v4254_v52   ;;  %1732 = vperm.xlu0 %4478, %v4253_v19   ;;  %v4258_v28 = vld [vmem:[%s8626_s1 + $0x538] sm:$0xff]  ;;  %v4257_v52 = vld [vmem:[%s8626_s1 + $0x530] sm:$0xff] }
 0x156   : > { %v5893_v23 = vpop.permute.xlu1 %1363  ;;  %v5895_v24 = vpop.permute.xlu0 %1358 }
 0x157   : > { %8810 = vst [vmem:[#allocation55_spill] sm:$0xff] %v5893_v23  ;;  %8811 = vst [vmem:[#allocation56_spill] sm:$0xff] %v5895_v24  ;;  %1747 = vperm.xlu1 %4479, %v4256_v32   ;;  %1742 = vperm.xlu0 %4478, %v4255_v56   ;;  %v4260_v24 = vld [vmem:[%s8626_s1 + $0x548] sm:$0xff]  ;;  %v4259_v32 = vld [vmem:[%s8626_s1 + $0x540] sm:$0xff] }
 0x15a   : > { %v5903_v19 = vpop.permute.xlu1 %1373  ;;  %v5905_v20 = vpop.permute.xlu0 %1368 }
 0x15b   : > { %8812 = vst [vmem:[#allocation57_spill] sm:$0xff] %v5903_v19  ;;  %8813 = vst [vmem:[#allocation58_spill] sm:$0xff] %v5905_v20  ;;  %1757 = vperm.xlu1 %4479, %v4258_v28   ;;  %1752 = vperm.xlu0 %4478, %v4257_v52   ;;  %v4262_v20 = vld [vmem:[%s8626_s1 + $0x558] sm:$0xff]  ;;  %v4261_v28 = vld [vmem:[%s8626_s1 + $0x550] sm:$0xff] }
 0x15e   : > { %v5913_v56 = vpop.permute.xlu1 %1383  ;;  %v5915_v23 = vpop.permute.xlu0 %1378 }
 0x15f   : > { %8814 = vst [vmem:[#allocation59_spill] sm:$0xff] %v5913_v56  ;;  %8815 = vst [vmem:[#allocation60_spill] sm:$0xff] %v5915_v23  ;;  %1767 = vperm.xlu1 %4479, %v4260_v24   ;;  %1762 = vperm.xlu0 %4478, %v4259_v32   ;;  %v4264_v23 = vld [vmem:[%s8626_s1 + $0x568] sm:$0xff]  ;;  %v4263_v24 = vld [vmem:[%s8626_s1 + $0x560] sm:$0xff] }
 0x162   : > { %v5923_v52 = vpop.permute.xlu1 %1393  ;;  %v5925_v19 = vpop.permute.xlu0 %1388 }
 0x163   : > { %8816 = vst [vmem:[#allocation61_spill] sm:$0xff] %v5923_v52  ;;  %8817 = vst [vmem:[#allocation62_spill] sm:$0xff] %v5925_v19  ;;  %1777 = vperm.xlu1 %4479, %v4262_v20   ;;  %1772 = vperm.xlu0 %4478, %v4261_v28   ;;  %v4266_v19 = vld [vmem:[%s8626_s1 + $0x578] sm:$0xff]  ;;  %v4265_v20 = vld [vmem:[%s8626_s1 + $0x570] sm:$0xff] }
 0x166   : > { %v5933_v32 = vpop.permute.xlu1 %1403  ;;  %v5935_v56 = vpop.permute.xlu0 %1398 }
 0x167   : > { %8818 = vst [vmem:[#allocation63_spill] sm:$0xff] %v5933_v32  ;;  %8819 = vst [vmem:[#allocation64_spill] sm:$0xff] %v5935_v56  ;;  %1787 = vperm.xlu1 %4479, %v4264_v23   ;;  %1782 = vperm.xlu0 %4478, %v4263_v24   ;;  %v4268_v56 = vld [vmem:[%s8626_s1 + $0x588] sm:$0xff]  ;;  %v4267_v23 = vld [vmem:[%s8626_s1 + $0x580] sm:$0xff] }
 0x16a   : > { %v5943_v28 = vpop.permute.xlu1 %1413  ;;  %v5945_v52 = vpop.permute.xlu0 %1408 }
 0x16b   : > { %8820 = vst [vmem:[#allocation65_spill] sm:$0xff] %v5943_v28  ;;  %8821 = vst [vmem:[#allocation66_spill] sm:$0xff] %v5945_v52  ;;  %1797 = vperm.xlu1 %4479, %v4266_v19   ;;  %1792 = vperm.xlu0 %4478, %v4265_v20   ;;  %v4270_v52 = vld [vmem:[%s8626_s1 + $0x598] sm:$0xff]  ;;  %v4269_v19 = vld [vmem:[%s8626_s1 + $0x590] sm:$0xff] }
 0x16e   : > { %v5953_v24 = vpop.permute.xlu1 %1423  ;;  %v5955_v32 = vpop.permute.xlu0 %1418 }
 0x16f   : > { %8822 = vst [vmem:[#allocation67_spill] sm:$0xff] %v5953_v24  ;;  %8823 = vst [vmem:[#allocation68_spill] sm:$0xff] %v5955_v32  ;;  %1807 = vperm.xlu1 %4479, %v4268_v56   ;;  %1802 = vperm.xlu0 %4478, %v4267_v23   ;;  %v4272_v32 = vld [vmem:[%s8626_s1 + $0x5a8] sm:$0xff]  ;;  %v4271_v56 = vld [vmem:[%s8626_s1 + $0x5a0] sm:$0xff] }
 0x172   : > { %v5963_v20 = vpop.permute.xlu1 %1433  ;;  %v5965_v28 = vpop.permute.xlu0 %1428 }
 0x173   : > { %8824 = vst [vmem:[#allocation69_spill] sm:$0xff] %v5963_v20  ;;  %8825 = vst [vmem:[#allocation70_spill] sm:$0xff] %v5965_v28  ;;  %1817 = vperm.xlu1 %4479, %v4270_v52   ;;  %1812 = vperm.xlu0 %4478, %v4269_v19   ;;  %v4274_v28 = vld [vmem:[%s8626_s1 + $0x5b8] sm:$0xff]  ;;  %v4273_v52 = vld [vmem:[%s8626_s1 + $0x5b0] sm:$0xff] }
 0x176   : > { %v5973_v23 = vpop.permute.xlu1 %1443  ;;  %v5975_v24 = vpop.permute.xlu0 %1438 }
 0x177   : > { %8826 = vst [vmem:[#allocation71_spill] sm:$0xff] %v5973_v23  ;;  %8827 = vst [vmem:[#allocation72_spill] sm:$0xff] %v5975_v24  ;;  %1827 = vperm.xlu1 %4479, %v4272_v32   ;;  %1822 = vperm.xlu0 %4478, %v4271_v56   ;;  %v4276_v24 = vld [vmem:[%s8626_s1 + $0x5c8] sm:$0xff]  ;;  %v4275_v32 = vld [vmem:[%s8626_s1 + $0x5c0] sm:$0xff] }
 0x17a   : > { %v5983_v19 = vpop.permute.xlu1 %1453  ;;  %v5985_v20 = vpop.permute.xlu0 %1448 }
 0x17b   : > { %8828 = vst [vmem:[#allocation73_spill] sm:$0xff] %v5983_v19  ;;  %8829 = vst [vmem:[#allocation74_spill] sm:$0xff] %v5985_v20  ;;  %1837 = vperm.xlu1 %4479, %v4274_v28   ;;  %1832 = vperm.xlu0 %4478, %v4273_v52   ;;  %v4278_v20 = vld [vmem:[%s8626_s1 + $0x5d8] sm:$0xff]  ;;  %v4277_v28 = vld [vmem:[%s8626_s1 + $0x5d0] sm:$0xff] }
 0x17e   : > { %v5993_v56 = vpop.permute.xlu1 %1463  ;;  %v5995_v23 = vpop.permute.xlu0 %1458 }
 0x17f   : > { %8830 = vst [vmem:[#allocation75_spill] sm:$0xff] %v5993_v56  ;;  %8831 = vst [vmem:[#allocation76_spill] sm:$0xff] %v5995_v23  ;;  %1847 = vperm.xlu1 %4479, %v4276_v24   ;;  %1842 = vperm.xlu0 %4478, %v4275_v32   ;;  %v4280_v23 = vld [vmem:[%s8626_s1 + $0x5e8] sm:$0xff]  ;;  %v4279_v24 = vld [vmem:[%s8626_s1 + $0x5e0] sm:$0xff] }
 0x182   : > { %v6003_v52 = vpop.permute.xlu1 %1473  ;;  %v6005_v19 = vpop.permute.xlu0 %1468 }
 0x183   : > { %8832 = vst [vmem:[#allocation77_spill] sm:$0xff] %v6003_v52  ;;  %8833 = vst [vmem:[#allocation78_spill] sm:$0xff] %v6005_v19  ;;  %1857 = vperm.xlu1 %4479, %v4278_v20   ;;  %1852 = vperm.xlu0 %4478, %v4277_v28   ;;  %v4282_v19 = vld [vmem:[%s8626_s1 + $0x5f8] sm:$0xff]  ;;  %v4281_v20 = vld [vmem:[%s8626_s1 + $0x5f0] sm:$0xff] }
 0x186   : > { %v6013_v32 = vpop.permute.xlu1 %1483  ;;  %v6015_v56 = vpop.permute.xlu0 %1478 }
 0x187   : > { %8834 = vst [vmem:[#allocation79_spill] sm:$0xff] %v6013_v32  ;;  %8835 = vst [vmem:[#allocation80_spill] sm:$0xff] %v6015_v56  ;;  %1867 = vperm.xlu1 %4479, %v4280_v23   ;;  %1862 = vperm.xlu0 %4478, %v4279_v24   ;;  %v4284_v56 = vld [vmem:[%s8626_s1 + $0x608] sm:$0xff]  ;;  %v4283_v23 = vld [vmem:[%s8626_s1 + $0x600] sm:$0xff] }
 0x18a   : > { %v6023_v28 = vpop.permute.xlu1 %1493  ;;  %v6025_v52 = vpop.permute.xlu0 %1488 }
 0x18b   : > { %8836 = vst [vmem:[#allocation81_spill] sm:$0xff] %v6023_v28  ;;  %8837 = vst [vmem:[#allocation82_spill] sm:$0xff] %v6025_v52  ;;  %1877 = vperm.xlu1 %4479, %v4282_v19   ;;  %1872 = vperm.xlu0 %4478, %v4281_v20   ;;  %v4286_v52 = vld [vmem:[%s8626_s1 + $0x618] sm:$0xff]  ;;  %v4285_v19 = vld [vmem:[%s8626_s1 + $0x610] sm:$0xff] }
 0x18e   : > { %v6033_v24 = vpop.permute.xlu1 %1535  ;;  %v6035_v32 = vpop.permute.xlu0 %1530 }
 0x18f   : > { %8838 = vst [vmem:[#allocation83_spill] sm:$0xff] %v6033_v24  ;;  %8839 = vst [vmem:[#allocation84_spill] sm:$0xff] %v6035_v32  ;;  %1919 = vperm.xlu1 %4479, %v4284_v56   ;;  %1914 = vperm.xlu0 %4478, %v4283_v23   ;;  %v4288_v32 = vld [vmem:[%s8626_s1 + $0x628] sm:$0xff]  ;;  %v4287_v56 = vld [vmem:[%s8626_s1 + $0x620] sm:$0xff] }
 0x192   : > { %v6043_v20 = vpop.permute.xlu1 %1545  ;;  %v6045_v28 = vpop.permute.xlu0 %1540 }
 0x193   : > { %8840 = vst [vmem:[#allocation85_spill] sm:$0xff] %v6043_v20  ;;  %8841 = vst [vmem:[#allocation86_spill] sm:$0xff] %v6045_v28  ;;  %1929 = vperm.xlu1 %4479, %v4286_v52   ;;  %1924 = vperm.xlu0 %4478, %v4285_v19   ;;  %v4290_v28 = vld [vmem:[%s8626_s1 + $0x638] sm:$0xff]  ;;  %v4289_v52 = vld [vmem:[%s8626_s1 + $0x630] sm:$0xff] }
 0x196   : > { %v6053_v23 = vpop.permute.xlu1 %1555  ;;  %v6055_v24 = vpop.permute.xlu0 %1550 }
 0x197   : > { %8842 = vst [vmem:[#allocation87_spill] sm:$0xff] %v6053_v23  ;;  %8843 = vst [vmem:[#allocation88_spill] sm:$0xff] %v6055_v24  ;;  %1939 = vperm.xlu1 %4479, %v4288_v32   ;;  %1934 = vperm.xlu0 %4478, %v4287_v56   ;;  %v4292_v24 = vld [vmem:[%s8626_s1 + $0x648] sm:$0xff]  ;;  %v4291_v32 = vld [vmem:[%s8626_s1 + $0x640] sm:$0xff] }
 0x19a   : > { %v6063_v19 = vpop.permute.xlu1 %1565  ;;  %v6065_v20 = vpop.permute.xlu0 %1560 }
 0x19b   : > { %8844 = vst [vmem:[#allocation89_spill] sm:$0xff] %v6063_v19  ;;  %8845 = vst [vmem:[#allocation90_spill] sm:$0xff] %v6065_v20  ;;  %1949 = vperm.xlu1 %4479, %v4290_v28   ;;  %1944 = vperm.xlu0 %4478, %v4289_v52   ;;  %v4294_v19 = vld [vmem:[%s8626_s1 + $0x658] sm:$0xff]  ;;  %v4293_v28 = vld [vmem:[%s8626_s1 + $0x650] sm:$0xff] }
 0x19e   : > { %v6073_v56 = vpop.permute.xlu1 %1575  ;;  %v6075_v23 = vpop.permute.xlu0 %1570 }
 0x19f   : > { %8846 = vst [vmem:[#allocation91_spill] sm:$0xff] %v6073_v56  ;;  %8847 = vst [vmem:[#allocation92_spill] sm:$0xff] %v6075_v23  ;;  %1959 = vperm.xlu1 %4479, %v4292_v24   ;;  %1954 = vperm.xlu0 %4478, %v4291_v32   ;;  %v4296_v23 = vld [vmem:[%s8626_s1 + $0x668] sm:$0xff]  ;;  %v4295_v24 = vld [vmem:[%s8626_s1 + $0x660] sm:$0xff] }
 0x1a2   : > { %v6083_v52 = vpop.permute.xlu1 %1585  ;;  %v6085_v20 = vpop.permute.xlu0 %1580 }
 0x1a3   : > { %8848 = vst [vmem:[#allocation93_spill] sm:$0xff] %v6083_v52  ;;  %8849 = vst [vmem:[#allocation94_spill] sm:$0xff] %v6085_v20  ;;  %1969 = vperm.xlu1 %4479, %v4294_v19   ;;  %1964 = vperm.xlu0 %4478, %v4293_v28   ;;  %v4298_v20 = vld [vmem:[%s8626_s1 + $0x678] sm:$0xff]  ;;  %v4297_v19 = vld [vmem:[%s8626_s1 + $0x670] sm:$0xff] }
 0x1a6   : > { %v6093_v32 = vpop.permute.xlu1 %1595  ;;  %v6095_v56 = vpop.permute.xlu0 %1590 }
 0x1a7   : > { %8850 = vst [vmem:[#allocation95_spill] sm:$0xff] %v6093_v32  ;;  %8851 = vst [vmem:[#allocation96_spill] sm:$0xff] %v6095_v56  ;;  %1979 = vperm.xlu1 %4479, %v4296_v23   ;;  %1974 = vperm.xlu0 %4478, %v4295_v24   ;;  %v4300_v56 = vld [vmem:[%s8626_s1 + $0x688] sm:$0xff]  ;;  %v4299_v23 = vld [vmem:[%s8626_s1 + $0x680] sm:$0xff] }
 0x1aa   : > { %v6103_v28 = vpop.permute.xlu1 %1605  ;;  %v6105_v52 = vpop.permute.xlu0 %1600 }
 0x1ab   : > { %8852 = vst [vmem:[#allocation97_spill] sm:$0xff] %v6103_v28  ;;  %8853 = vst [vmem:[#allocation98_spill] sm:$0xff] %v6105_v52  ;;  %1989 = vperm.xlu1 %4479, %v4298_v20   ;;  %1984 = vperm.xlu0 %4478, %v4297_v19   ;;  %v4302_v52 = vld [vmem:[%s8626_s1 + $0x698] sm:$0xff]  ;;  %v4301_v20 = vld [vmem:[%s8626_s1 + $0x690] sm:$0xff] }
 0x1ae   : > { %v6113_v24 = vpop.permute.xlu1 %1615  ;;  %v6115_v32 = vpop.permute.xlu0 %1610 }
 0x1af   : > { %8854 = vst [vmem:[#allocation99_spill] sm:$0xff] %v6113_v24  ;;  %8855 = vst [vmem:[#allocation100_spill] sm:$0xff] %v6115_v32  ;;  %1999 = vperm.xlu1 %4479, %v4300_v56   ;;  %1994 = vperm.xlu0 %4478, %v4299_v23   ;;  %v4304_v24 = vld [vmem:[%s8626_s1 + $0x6a8] sm:$0xff]  ;;  %v4303_v56 = vld [vmem:[%s8626_s1 + $0x6a0] sm:$0xff] }
 0x1b2   : > { %v6123_v19 = vpop.permute.xlu1 %1625  ;;  %v6125_v28 = vpop.permute.xlu0 %1620 }
 0x1b3   : > { %8856 = vst [vmem:[#allocation101_spill] sm:$0xff] %v6123_v19  ;;  %8857 = vst [vmem:[#allocation102_spill] sm:$0xff] %v6125_v28  ;;  %2009 = vperm.xlu1 %4479, %v4302_v52   ;;  %2004 = vperm.xlu0 %4478, %v4301_v20   ;;  %v4306_v19 = vld [vmem:[%s8626_s1 + $0x6b8] sm:$0xff]  ;;  %v4305_v52 = vld [vmem:[%s8626_s1 + $0x6b0] sm:$0xff] }
 0x1b6   : > { %v6133_v23 = vpop.permute.xlu1 %1635  ;;  %v6135_v32 = vpop.permute.xlu0 %1630 }
 0x1b7   : > { %8858 = vst [vmem:[#allocation103_spill] sm:$0xff] %v6133_v23  ;;  %8859 = vst [vmem:[#allocation104_spill] sm:$0xff] %v6135_v32  ;;  %2019 = vperm.xlu1 %4479, %v4304_v24   ;;  %2014 = vperm.xlu0 %4478, %v4303_v56   ;;  %v4308_v23 = vld [vmem:[%s8626_s1 + $0x6c8] sm:$0xff]  ;;  %v4307_v24 = vld [vmem:[%s8626_s1 + $0x6c0] sm:$0xff] }
 0x1ba   : > { %v6143_v20 = vpop.permute.xlu1 %1645  ;;  %v6145_v28 = vpop.permute.xlu0 %1640 }
 0x1bb   : > { %8860 = vst [vmem:[#allocation105_spill] sm:$0xff] %v6143_v20  ;;  %8861 = vst [vmem:[#allocation106_spill] sm:$0xff] %v6145_v28  ;;  %2029 = vperm.xlu1 %4479, %v4306_v19   ;;  %2024 = vperm.xlu0 %4478, %v4305_v52   ;;  %v4310_v28 = vld [vmem:[%s8626_s1 + $0x6d8] sm:$0xff]  ;;  %v4309_v19 = vld [vmem:[%s8626_s1 + $0x6d0] sm:$0xff] }
 0x1be   : > { %v6153_v56 = vpop.permute.xlu1 %1655  ;;  %v6155_v32 = vpop.permute.xlu0 %1650 }
 0x1bf   : > { %8862 = vst [vmem:[#allocation107_spill] sm:$0xff] %v6153_v56  ;;  %8863 = vst [vmem:[#allocation108_spill] sm:$0xff] %v6155_v32  ;;  %2039 = vperm.xlu1 %4479, %v4308_v23   ;;  %2034 = vperm.xlu0 %4478, %v4307_v24   ;;  %v4312_v32 = vld [vmem:[%s8626_s1 + $0x6e8] sm:$0xff]  ;;  %v4311_v23 = vld [vmem:[%s8626_s1 + $0x6e0] sm:$0xff] }
 0x1c2   : > { %v6163_v52 = vpop.permute.xlu1 %1665  ;;  %v6165_v20 = vpop.permute.xlu0 %1660 }
 0x1c3   : > { %8864 = vst [vmem:[#allocation109_spill] sm:$0xff] %v6163_v52  ;;  %8865 = vst [vmem:[#allocation110_spill] sm:$0xff] %v6165_v20  ;;  %2049 = vperm.xlu1 %4479, %v4310_v28   ;;  %2044 = vperm.xlu0 %4478, %v4309_v19   ;;  %v4314_v20 = vld [vmem:[%s8626_s1 + $0x6f8] sm:$0xff]  ;;  %v4313_v28 = vld [vmem:[%s8626_s1 + $0x6f0] sm:$0xff] }
 0x1c6   : > { %v6173_v24 = vpop.permute.xlu1 %1675  ;;  %v6175_v56 = vpop.permute.xlu0 %1670 }
 0x1c7   : > { %8866 = vst [vmem:[#allocation111_spill] sm:$0xff] %v6173_v24  ;;  %8867 = vst [vmem:[#allocation112_spill] sm:$0xff] %v6175_v56  ;;  %2059 = vperm.xlu1 %4479, %v4312_v32   ;;  %2054 = vperm.xlu0 %4478, %v4311_v23   ;;  %v4316_v56 = vld [vmem:[%s8626_s1 + $0x708] sm:$0xff]  ;;  %v4315_v32 = vld [vmem:[%s8626_s1 + $0x700] sm:$0xff] }
 0x1ca   : > { %v6183_v19 = vpop.permute.xlu1 %1685  ;;  %v6185_v52 = vpop.permute.xlu0 %1680 }
 0x1cb   : > { %8868 = vst [vmem:[#allocation113_spill] sm:$0xff] %v6183_v19  ;;  %8869 = vst [vmem:[#allocation114_spill] sm:$0xff] %v6185_v52  ;;  %2069 = vperm.xlu1 %4479, %v4314_v20   ;;  %2064 = vperm.xlu0 %4478, %v4313_v28   ;;  %v4318_v52 = vld [vmem:[%s8626_s1 + $0x718] sm:$0xff]  ;;  %v4317_v20 = vld [vmem:[%s8626_s1 + $0x710] sm:$0xff] }
 0x1ce   : > { %v6193_v23 = vpop.permute.xlu1 %1727  ;;  %v6195_v24 = vpop.permute.xlu0 %1722 }
 0x1cf   : > { %8870 = vst [vmem:[#allocation115_spill] sm:$0xff] %v6193_v23  ;;  %8871 = vst [vmem:[#allocation116_spill] sm:$0xff] %v6195_v24  ;;  %2111 = vperm.xlu1 %4479, %v4316_v56   ;;  %2106 = vperm.xlu0 %4478, %v4315_v32   ;;  %v4320_v24 = vld [vmem:[%s8626_s1 + $0x728] sm:$0xff]  ;;  %v4319_v56 = vld [vmem:[%s8626_s1 + $0x720] sm:$0xff] }
 0x1d2   : > { %v6203_v28 = vpop.permute.xlu1 %1737  ;;  %v6205_v19 = vpop.permute.xlu0 %1732 }
 0x1d3   : > { %8872 = vst [vmem:[#allocation117_spill] sm:$0xff] %v6203_v28  ;;  %8873 = vst [vmem:[#allocation118_spill] sm:$0xff] %v6205_v19  ;;  %2121 = vperm.xlu1 %4479, %v4318_v52   ;;  %2116 = vperm.xlu0 %4478, %v4317_v20   ;;  %v4322_v19 = vld [vmem:[%s8626_s1 + $0x738] sm:$0xff]  ;;  %v4321_v52 = vld [vmem:[%s8626_s1 + $0x730] sm:$0xff] }
 0x1d6   : > { %v6213_v32 = vpop.permute.xlu1 %1747  ;;  %v6215_v23 = vpop.permute.xlu0 %1742 }
 0x1d7   : > { %8874 = vst [vmem:[#allocation119_spill] sm:$0xff] %v6213_v32  ;;  %8875 = vst [vmem:[#allocation120_spill] sm:$0xff] %v6215_v23  ;;  %2131 = vperm.xlu1 %4479, %v4320_v24   ;;  %2126 = vperm.xlu0 %4478, %v4319_v56   ;;  %v4324_v23 = vld [vmem:[%s8626_s1 + $0x748] sm:$0xff]  ;;  %v4323_v24 = vld [vmem:[%s8626_s1 + $0x740] sm:$0xff] }
 0x1da   : > { %v6223_v20 = vpop.permute.xlu1 %1757  ;;  %v6225_v28 = vpop.permute.xlu0 %1752 }
 0x1db   : > { %8876 = vst [vmem:[#allocation121_spill] sm:$0xff] %v6223_v20  ;;  %8877 = vst [vmem:[#allocation122_spill] sm:$0xff] %v6225_v28  ;;  %2141 = vperm.xlu1 %4479, %v4322_v19   ;;  %2136 = vperm.xlu0 %4478, %v4321_v52   ;;  %v4326_v28 = vld [vmem:[%s8626_s1 + $0x758] sm:$0xff]  ;;  %v4325_v19 = vld [vmem:[%s8626_s1 + $0x750] sm:$0xff] }
 0x1de   : > { %v6233_v56 = vpop.permute.xlu1 %1767  ;;  %v6235_v32 = vpop.permute.xlu0 %1762 }
 0x1df   : > { %8878 = vst [vmem:[#allocation123_spill] sm:$0xff] %v6233_v56  ;;  %8879 = vst [vmem:[#allocation124_spill] sm:$0xff] %v6235_v32  ;;  %2151 = vperm.xlu1 %4479, %v4324_v23   ;;  %2146 = vperm.xlu0 %4478, %v4323_v24   ;;  %v4328_v32 = vld [vmem:[%s8626_s1 + $0x768] sm:$0xff]  ;;  %v4327_v23 = vld [vmem:[%s8626_s1 + $0x760] sm:$0xff] }
 0x1e2   : > { %v6243_v52 = vpop.permute.xlu1 %1777  ;;  %v6245_v20 = vpop.permute.xlu0 %1772 }
 0x1e3   : > { %8880 = vst [vmem:[#allocation125_spill] sm:$0xff] %v6243_v52  ;;  %8881 = vst [vmem:[#allocation126_spill] sm:$0xff] %v6245_v20  ;;  %2161 = vperm.xlu1 %4479, %v4326_v28   ;;  %2156 = vperm.xlu0 %4478, %v4325_v19   ;;  %v4330_v20 = vld [vmem:[%s8626_s1 + $0x778] sm:$0xff]  ;;  %v4329_v28 = vld [vmem:[%s8626_s1 + $0x770] sm:$0xff] }
 0x1e6   : > { %v6253_v24 = vpop.permute.xlu1 %1787  ;;  %v6255_v56 = vpop.permute.xlu0 %1782 }
 0x1e7   : > { %8882 = vst [vmem:[#allocation127_spill] sm:$0xff] %v6253_v24  ;;  %8883 = vst [vmem:[#allocation128_spill] sm:$0xff] %v6255_v56  ;;  %2171 = vperm.xlu1 %4479, %v4328_v32   ;;  %2166 = vperm.xlu0 %4478, %v4327_v23   ;;  %v4332_v56 = vld [vmem:[%s8626_s1 + $0x788] sm:$0xff]  ;;  %v4331_v32 = vld [vmem:[%s8626_s1 + $0x780] sm:$0xff] }
 0x1ea   : > { %v6263_v19 = vpop.permute.xlu1 %1797  ;;  %v6265_v52 = vpop.permute.xlu0 %1792 }
 0x1eb   : > { %8884 = vst [vmem:[#allocation129_spill] sm:$0xff] %v6263_v19  ;;  %8885 = vst [vmem:[#allocation130_spill] sm:$0xff] %v6265_v52  ;;  %2181 = vperm.xlu1 %4479, %v4330_v20   ;;  %2176 = vperm.xlu0 %4478, %v4329_v28   ;;  %v4334_v52 = vld [vmem:[%s8626_s1 + $0x798] sm:$0xff]  ;;  %v4333_v20 = vld [vmem:[%s8626_s1 + $0x790] sm:$0xff] }
 0x1ee   : > { %v6273_v23 = vpop.permute.xlu1 %1807  ;;  %v6275_v24 = vpop.permute.xlu0 %1802 }
 0x1ef   : > { %8886 = vst [vmem:[#allocation131_spill] sm:$0xff] %v6273_v23  ;;  %8887 = vst [vmem:[#allocation132_spill] sm:$0xff] %v6275_v24  ;;  %2191 = vperm.xlu1 %4479, %v4332_v56   ;;  %2186 = vperm.xlu0 %4478, %v4331_v32   ;;  %v4336_v24 = vld [vmem:[%s8626_s1 + $0x7a8] sm:$0xff]  ;;  %v4335_v56 = vld [vmem:[%s8626_s1 + $0x7a0] sm:$0xff] }
 0x1f2   : > { %v6283_v28 = vpop.permute.xlu1 %1817  ;;  %v6285_v19 = vpop.permute.xlu0 %1812 }
 0x1f3   : > { %8888 = vst [vmem:[#allocation133_spill] sm:$0xff] %v6283_v28  ;;  %8889 = vst [vmem:[#allocation134_spill] sm:$0xff] %v6285_v19  ;;  %2201 = vperm.xlu1 %4479, %v4334_v52   ;;  %2196 = vperm.xlu0 %4478, %v4333_v20   ;;  %v4338_v19 = vld [vmem:[%s8626_s1 + $0x7b8] sm:$0xff]  ;;  %v4337_v52 = vld [vmem:[%s8626_s1 + $0x7b0] sm:$0xff] }
 0x1f6   : > { %v6293_v32 = vpop.permute.xlu1 %1827  ;;  %v6295_v23 = vpop.permute.xlu0 %1822 }
 0x1f7   : > { %8890 = vst [vmem:[#allocation135_spill] sm:$0xff] %v6293_v32  ;;  %8891 = vst [vmem:[#allocation136_spill] sm:$0xff] %v6295_v23  ;;  %2211 = vperm.xlu1 %4479, %v4336_v24   ;;  %2206 = vperm.xlu0 %4478, %v4335_v56   ;;  %v4340_v23 = vld [vmem:[%s8626_s1 + $0x7c8] sm:$0xff]  ;;  %v4339_v24 = vld [vmem:[%s8626_s1 + $0x7c0] sm:$0xff] }
 0x1fa   : > { %v6303_v20 = vpop.permute.xlu1 %1837  ;;  %v6305_v28 = vpop.permute.xlu0 %1832 }
 0x1fb   : > { %8892 = vst [vmem:[#allocation137_spill] sm:$0xff] %v6303_v20  ;;  %8893 = vst [vmem:[#allocation138_spill] sm:$0xff] %v6305_v28  ;;  %2221 = vperm.xlu1 %4479, %v4338_v19   ;;  %2216 = vperm.xlu0 %4478, %v4337_v52   ;;  %v4342_v28 = vld [vmem:[%s8626_s1 + $0x7d8] sm:$0xff]  ;;  %v4341_v19 = vld [vmem:[%s8626_s1 + $0x7d0] sm:$0xff] }
 0x1fe   : > { %v6313_v56 = vpop.permute.xlu1 %1847  ;;  %v6315_v32 = vpop.permute.xlu0 %1842 }
 0x1ff   : > { %8894 = vst [vmem:[#allocation139_spill] sm:$0xff] %v6313_v56  ;;  %8895 = vst [vmem:[#allocation140_spill] sm:$0xff] %v6315_v32  ;;  %2231 = vperm.xlu1 %4479, %v4340_v23   ;;  %2226 = vperm.xlu0 %4478, %v4339_v24   ;;  %v4344_v32 = vld [vmem:[%s8626_s1 + $0x7e8] sm:$0xff]  ;;  %v4343_v23 = vld [vmem:[%s8626_s1 + $0x7e0] sm:$0xff] }
 0x202   : > { %v6323_v52 = vpop.permute.xlu1 %1857  ;;  %v6325_v20 = vpop.permute.xlu0 %1852 }
 0x203   : > { %8896 = vst [vmem:[#allocation141_spill] sm:$0xff] %v6323_v52  ;;  %8897 = vst [vmem:[#allocation142_spill] sm:$0xff] %v6325_v20  ;;  %2241 = vperm.xlu1 %4479, %v4342_v28   ;;  %2236 = vperm.xlu0 %4478, %v4341_v19   ;;  %v4346_v20 = vld [vmem:[%s8626_s1 + $0x7f8] sm:$0xff]  ;;  %v4345_v28 = vld [vmem:[%s8626_s1 + $0x7f0] sm:$0xff] }
 0x206   : > { %v6333_v24 = vpop.permute.xlu1 %1867  ;;  %v6335_v56 = vpop.permute.xlu0 %1862 }
 0x207   : > { %8898 = vst [vmem:[#allocation143_spill] sm:$0xff] %v6333_v24  ;;  %8899 = vst [vmem:[#allocation144_spill] sm:$0xff] %v6335_v56  ;;  %2251 = vperm.xlu1 %4479, %v4344_v32   ;;  %2246 = vperm.xlu0 %4478, %v4343_v23   ;;  %v4348_v56 = vld [vmem:[%s8626_s1 + $0x808] sm:$0xff]  ;;  %v4347_v32 = vld [vmem:[%s8626_s1 + $0x800] sm:$0xff] }
 0x20a   : > { %v6343_v19 = vpop.permute.xlu1 %1877  ;;  %v6345_v52 = vpop.permute.xlu0 %1872 }
 0x20b   : > { %8900 = vst [vmem:[#allocation145_spill] sm:$0xff] %v6343_v19  ;;  %8901 = vst [vmem:[#allocation146_spill] sm:$0xff] %v6345_v52  ;;  %2261 = vperm.xlu1 %4479, %v4346_v20   ;;  %2256 = vperm.xlu0 %4478, %v4345_v28   ;;  %v4350_v52 = vld [vmem:[%s8626_s1 + $0x818] sm:$0xff]  ;;  %v4349_v20 = vld [vmem:[%s8626_s1 + $0x810] sm:$0xff] }
 0x20e   : > { %v6353_v23 = vpop.permute.xlu1 %1919  ;;  %v6355_v24 = vpop.permute.xlu0 %1914 }
 0x20f   : > { %8902 = vst [vmem:[#allocation147_spill] sm:$0xff] %v6353_v23  ;;  %8903 = vst [vmem:[#allocation148_spill] sm:$0xff] %v6355_v24  ;;  %2303 = vperm.xlu1 %4479, %v4348_v56   ;;  %2298 = vperm.xlu0 %4478, %v4347_v32   ;;  %v4352_v24 = vld [vmem:[%s8626_s1 + $0x828] sm:$0xff]  ;;  %v4351_v56 = vld [vmem:[%s8626_s1 + $0x820] sm:$0xff] }
 0x212   : > { %v6363_v28 = vpop.permute.xlu1 %1929  ;;  %v6365_v19 = vpop.permute.xlu0 %1924 }
 0x213   : > { %8904 = vst [vmem:[#allocation149_spill] sm:$0xff] %v6363_v28  ;;  %8905 = vst [vmem:[#allocation150_spill] sm:$0xff] %v6365_v19  ;;  %2313 = vperm.xlu1 %4479, %v4350_v52   ;;  %2308 = vperm.xlu0 %4478, %v4349_v20   ;;  %v4354_v19 = vld [vmem:[%s8626_s1 + $0x838] sm:$0xff]  ;;  %v4353_v52 = vld [vmem:[%s8626_s1 + $0x830] sm:$0xff] }
 0x216   : > { %v6373_v32 = vpop.permute.xlu1 %1939  ;;  %v6375_v23 = vpop.permute.xlu0 %1934 }
 0x217   : > { %8906 = vst [vmem:[#allocation151_spill] sm:$0xff] %v6373_v32  ;;  %8907 = vst [vmem:[#allocation152_spill] sm:$0xff] %v6375_v23  ;;  %2323 = vperm.xlu1 %4479, %v4352_v24   ;;  %2318 = vperm.xlu0 %4478, %v4351_v56   ;;  %v4356_v23 = vld [vmem:[%s8626_s1 + $0x848] sm:$0xff]  ;;  %v4355_v24 = vld [vmem:[%s8626_s1 + $0x840] sm:$0xff] }
 0x21a   : > { %v6383_v20 = vpop.permute.xlu1 %1949  ;;  %v6385_v28 = vpop.permute.xlu0 %1944 }
 0x21b   : > { %8908 = vst [vmem:[#allocation153_spill] sm:$0xff] %v6383_v20  ;;  %8909 = vst [vmem:[#allocation154_spill] sm:$0xff] %v6385_v28  ;;  %2333 = vperm.xlu1 %4479, %v4354_v19   ;;  %2328 = vperm.xlu0 %4478, %v4353_v52   ;;  %v4358_v28 = vld [vmem:[%s8626_s1 + $0x858] sm:$0xff]  ;;  %v4357_v19 = vld [vmem:[%s8626_s1 + $0x850] sm:$0xff] }
 0x21e   : > { %v6393_v56 = vpop.permute.xlu1 %1959  ;;  %v6395_v32 = vpop.permute.xlu0 %1954 }
 0x21f   : > { %8910 = vst [vmem:[#allocation155_spill] sm:$0xff] %v6393_v56  ;;  %8911 = vst [vmem:[#allocation156_spill] sm:$0xff] %v6395_v32  ;;  %2343 = vperm.xlu1 %4479, %v4356_v23   ;;  %2338 = vperm.xlu0 %4478, %v4355_v24   ;;  %v4360_v32 = vld [vmem:[%s8626_s1 + $0x868] sm:$0xff]  ;;  %v4359_v23 = vld [vmem:[%s8626_s1 + $0x860] sm:$0xff] }
 0x222   : > { %v6403_v52 = vpop.permute.xlu1 %1969  ;;  %v6405_v20 = vpop.permute.xlu0 %1964 }
 0x223   : > { %8912 = vst [vmem:[#allocation157_spill] sm:$0xff] %v6403_v52  ;;  %8913 = vst [vmem:[#allocation158_spill] sm:$0xff] %v6405_v20  ;;  %2353 = vperm.xlu1 %4479, %v4358_v28   ;;  %2348 = vperm.xlu0 %4478, %v4357_v19   ;;  %v4362_v20 = vld [vmem:[%s8626_s1 + $0x878] sm:$0xff]  ;;  %v4361_v28 = vld [vmem:[%s8626_s1 + $0x870] sm:$0xff] }
 0x226   : > { %v6413_v24 = vpop.permute.xlu1 %1979  ;;  %v6415_v56 = vpop.permute.xlu0 %1974 }
 0x227   : > { %8914 = vst [vmem:[#allocation159_spill] sm:$0xff] %v6413_v24  ;;  %8915 = vst [vmem:[#allocation160_spill] sm:$0xff] %v6415_v56  ;;  %2363 = vperm.xlu1 %4479, %v4360_v32   ;;  %2358 = vperm.xlu0 %4478, %v4359_v23   ;;  %v4364_v56 = vld [vmem:[%s8626_s1 + $0x888] sm:$0xff]  ;;  %v4363_v32 = vld [vmem:[%s8626_s1 + $0x880] sm:$0xff] }
 0x22a   : > { %v6423_v19 = vpop.permute.xlu1 %1989  ;;  %v6425_v52 = vpop.permute.xlu0 %1984 }
 0x22b   : > { %8916 = vst [vmem:[#allocation161_spill] sm:$0xff] %v6423_v19  ;;  %8917 = vst [vmem:[#allocation162_spill] sm:$0xff] %v6425_v52  ;;  %2373 = vperm.xlu1 %4479, %v4362_v20   ;;  %2368 = vperm.xlu0 %4478, %v4361_v28   ;;  %v4366_v20 = vld [vmem:[%s8626_s1 + $0x898] sm:$0xff]  ;;  %v4365_v28 = vld [vmem:[%s8626_s1 + $0x890] sm:$0xff] }
 0x22e   : > { %v6433_v23 = vpop.permute.xlu1 %1999  ;;  %v6435_v24 = vpop.permute.xlu0 %1994 }
 0x22f   : > { %8918 = vst [vmem:[#allocation163_spill] sm:$0xff] %v6433_v23  ;;  %8919 = vst [vmem:[#allocation164_spill] sm:$0xff] %v6435_v24  ;;  %2383 = vperm.xlu1 %4479, %v4364_v56   ;;  %2378 = vperm.xlu0 %4478, %v4363_v32   ;;  %v4368_v56 = vld [vmem:[%s8626_s1 + $0x8a8] sm:$0xff]  ;;  %v4367_v32 = vld [vmem:[%s8626_s1 + $0x8a0] sm:$0xff] }
 0x232   : > { %v6443_v52 = vpop.permute.xlu1 %2009  ;;  %v6445_v19 = vpop.permute.xlu0 %2004 }
 0x233   : > { %8920 = vst [vmem:[#allocation165_spill] sm:$0xff] %v6443_v52  ;;  %8921 = vst [vmem:[#allocation166_spill] sm:$0xff] %v6445_v19  ;;  %2393 = vperm.xlu1 %4479, %v4366_v20   ;;  %2388 = vperm.xlu0 %4478, %v4365_v28   ;;  %v4370_v20 = vld [vmem:[%s8626_s1 + $0x8b8] sm:$0xff]  ;;  %v4369_v28 = vld [vmem:[%s8626_s1 + $0x8b0] sm:$0xff] }
 0x236   : > { %v6453_v24 = vpop.permute.xlu1 %2019  ;;  %v6455_v23 = vpop.permute.xlu0 %2014 }
 0x237   : > { %8922 = vst [vmem:[#allocation167_spill] sm:$0xff] %v6453_v24  ;;  %8923 = vst [vmem:[#allocation168_spill] sm:$0xff] %v6455_v23  ;;  %2403 = vperm.xlu1 %4479, %v4368_v56   ;;  %2398 = vperm.xlu0 %4478, %v4367_v32   ;;  %v4372_v56 = vld [vmem:[%s8626_s1 + $0x8c8] sm:$0xff]  ;;  %v4371_v32 = vld [vmem:[%s8626_s1 + $0x8c0] sm:$0xff] }
 0x23a   : > { %v6465_v19 = vpop.permute.xlu1 %2029  ;;  %v6467_v52 = vpop.permute.xlu0 %2024 }
 0x23b   : > { %8924 = vst [vmem:[#allocation169_spill] sm:$0xff] %v6465_v19  ;;  %8925 = vst [vmem:[#allocation170_spill] sm:$0xff] %v6467_v52  ;;  %2413 = vperm.xlu1 %4479, %v4370_v20   ;;  %2408 = vperm.xlu0 %4478, %v4369_v28   ;;  %v4374_v20 = vld [vmem:[%s8626_s1 + $0x8d8] sm:$0xff]  ;;  %v4373_v28 = vld [vmem:[%s8626_s1 + $0x8d0] sm:$0xff] }
 0x23e   : > { %v6479_v23 = vpop.permute.xlu1 %2039  ;;  %v6481_v19 = vpop.permute.xlu0 %2034 }
 0x23f   : > { %8926 = vst [vmem:[#allocation171_spill] sm:$0xff] %v6479_v23  ;;  %8927 = vst [vmem:[#allocation172_spill] sm:$0xff] %v6481_v19  ;;  %2423 = vperm.xlu1 %4479, %v4372_v56   ;;  %2418 = vperm.xlu0 %4478, %v4371_v32   ;;  %v4376_v56 = vld [vmem:[%s8626_s1 + $0x8e8] sm:$0xff]  ;;  %v4375_v32 = vld [vmem:[%s8626_s1 + $0x8e0] sm:$0xff] }
 0x240   : > { %v6515_v23 = vld [vmem:[%s6499_s10 + $0xf8] sm:$0xff] }
 0x241   : > { %8933 = vst [vmem:[#allocation178_spill] sm:$0xff] %v6515_v23  ;;  %v1015_v27 = vmul.f32 %v5553_v5, %v6515_v23 }
 0x242   : > { %v6490_v52 = vpop.permute.xlu1 %2049  ;;  %v6492_v24 = vpop.permute.xlu0 %2044 }
 0x243   : > { %8928 = vst [vmem:[#allocation173_spill] sm:$0xff] %v6490_v52  ;;  %8929 = vst [vmem:[#allocation174_spill] sm:$0xff] %v6492_v24  ;;  %2433 = vperm.xlu1 %4479, %v4374_v20   ;;  %2428 = vperm.xlu0 %4478, %v4373_v28   ;;  %v6508_v24 = vld [vmem:[%s6499_s10] sm:$0xff]  ;;  %v6518_v20 = vld [vmem:[%s6499_s10 + $0xf0] sm:$0xff] }
 0x244   : > { %8930 = vst [vmem:[#allocation175_spill] sm:$0xff] %v6508_v24  ;;  %v6521_v28 = vld [vmem:[%s6499_s10 + $0x8] sm:$0xff]  ;;  %v1014_v60 = vmul.f32 %v5555_v6, %v6518_v20  ;;  %v6542_v6 = vld [vmem:[%s6499_s10 + $0x10] sm:$0xff] }
 0x245   : > { %8934 = vst [vmem:[#allocation179_spill] sm:$0xff] %v6521_v28  ;;  %8937 = vst [vmem:[#allocation182_spill] sm:$0xff] %v6542_v6 }
 0x246   : > { %v6510_v52 = vpop.permute.xlu1 %2059  ;;  %v6512_v19 = vpop.permute.xlu0 %2054  ;;  %v4480_v51 = vpack.i.bf16 %v1015_v27, %v1014_v60  ;;  %v6572_v60 = vld [vmem:[%s6499_s10 + $0x40] sm:$0xff] }
 0x247   : > { %8931 = vst [vmem:[#allocation176_spill] sm:$0xff] %v6510_v52  ;;  %8932 = vst [vmem:[#allocation177_spill] sm:$0xff] %v6512_v19  ;;  %2443 = vperm.xlu1 %4479, %v4376_v56   ;;  %2438 = vperm.xlu0 %4478, %v4375_v32   ;;  %v1017_v19 = vmul.f32 %v5563_v13, %v6521_v28  ;;  %v1016_v52 = vmul.f32 %v5565_v14, %v6508_v24  ;;  %v4377_v56 = vld [vmem:[%s8626_s1 + $0x8f0] sm:$0xff]  ;;  %v6545_v13 = vld [vmem:[%s6499_s10 + $0x18] sm:$0xff] }
 0x248   : > { %v6548_v14 = vld [vmem:[%s6499_s10 + $0x20] sm:$0xff]  ;;  %v1019_v55 = vmul.f32 %v5573_v21, %v6545_v13  ;;  %8941 = vst [vmem:[#allocation186_spill] sm:$0xff] %v6572_v60  ;;  %v6575_v21 = vld [vmem:[%s6499_s10 + $0x48] sm:$0xff] }
 0x249   : > { %v4485_v4 = vpack.i.bf16 %v1017_v19, %v1016_v52  ;;  %8942 = vst [vmem:[#allocation187_spill] sm:$0xff] %v6575_v21  ;;  %v1024_v52 = vmul.f32 %v5605_v46, %v6572_v60 }
 0x24a   : > { %v6537_v5 = vpop.permute.xlu1 %2069  ;;  %v6539_v32 = vpop.permute.xlu0 %2064 }
 0x24b   : > { %8935 = vst [vmem:[#allocation180_spill] sm:$0xff] %v6537_v5  ;;  %8936 = vst [vmem:[#allocation181_spill] sm:$0xff] %v6539_v32  ;;  %2453 = vperm.xlu1 %4479, %v4378_v31   ;;  %2448 = vperm.xlu0 %4478, %v4377_v56   ;;  %v1018_v32 = vmul.f32 %v5575_v22, %v6542_v6  ;;  %v1021_v5 = vmul.f32 %v5583_v29, %v6551_v0  ;;  %v6562_v56 = vld [vmem:[%s6499_s10 + $0x30] sm:$0xff] }
 0x24c   : > { %v1020_v31 = vmul.f32 %v5585_v30, %v6548_v14  ;;  %v1023_v22 = vmul.f32 %v5593_v37, %v6565_v8  ;;  %v1022_v29 = vmul.f32 %v5595_v38, %v6562_v56  ;;  %v1025_v30 = vmul.f32 %v5603_v45, %v6575_v21  ;;  %v6597_v37 = vld [vmem:[%s6499_s10 + $0x58] sm:$0xff]  ;;  %v6600_v38 = vld [vmem:[%s6499_s10 + $0x60] sm:$0xff] }
 0x24d   : > { %v4490_v19 = vpack.i.bf16 %v1019_v55, %v1018_v32  ;;  %v6603_v55 = vld [vmem:[%s6499_s10 + $0x68] sm:$0xff] }
 0x24e   : > { %v6567_v59 = vpop.permute.xlu1 %2111  ;;  %v6569_v27 = vpop.permute.xlu0 %2106  ;;  %v4500_v45 = vpack.i.bf16 %v1023_v22, %v1022_v29  ;;  %v4505_v46 = vpack.i.bf16 %v1025_v30, %v1024_v52 }
 0x24f   : > { %8939 = vst [vmem:[#allocation184_spill] sm:$0xff] %v6567_v59  ;;  %8940 = vst [vmem:[#allocation185_spill] sm:$0xff] %v6569_v27  ;;  %4481 = vrot.lane.b32.xlu0 %v4480_v51, %s5153_s21  ;;  %4486 = vrot.lane.b32.xlu1 %v4485_v4, %s5153_s21  ;;  %v4495_v27 = vpack.i.bf16 %v1021_v5, %v1020_v31  ;;  %v6592_v4 = vld [vmem:[%s6499_s10 + $0x50] sm:$0xff]  ;;  %v1027_v5 = vmul.f32 %v5613_v53, %v6597_v37  ;;  %v6624_v53 = vld [vmem:[%s6499_s10 + $0x80] sm:$0xff] }
 0x250   : > { %8945 = vst [vmem:[#allocation190_spill] sm:$0xff] %v6592_v4  ;;  %v1026_v32 = vmul.f32 %v5615_v54, %v6592_v4  ;;  %v1029_v31 = vmul.f32 %v5623_v61, %v6603_v55  ;;  %v6627_v54 = vld [vmem:[%s6499_s10 + $0x88] sm:$0xff]  ;;  %v1032_v30 = vmul.f32 %v5645_v26, %v6624_v53 }
 0x251   : > { %v1033_v29 = vmul.f32 %v5643_v25, %v6627_v54  ;;  %v6655_v25 = vld [vmem:[%s6499_s10 + $0xa8] sm:$0xff] }
 0x252   : > { %v6587_v59 = vpop.permute.xlu1 %2121  ;;  %v6589_v51 = vpop.permute.xlu0 %2116  ;;  %v4510_v52 = vpack.i.bf16 %v1027_v5, %v1026_v32  ;;  %8950 = vst [vmem:[#allocation195_spill] sm:$0xff] %v6655_v25 }
 0x253   : > { %8943 = vst [vmem:[#allocation188_spill] sm:$0xff] %v6587_v59  ;;  %8944 = vst [vmem:[#allocation189_spill] sm:$0xff] %v6589_v51  ;;  %4491 = vrot.lane.b32.xlu0 %v4490_v19, %s5153_s21  ;;  %4496 = vrot.lane.b32.xlu1 %v4495_v27, %s5153_s21  ;;  %v1028_v27 = vmul.f32 %v5625_v62, %v6600_v38  ;;  %v6614_v19 = vld [vmem:[%s6499_s10 + $0x70] sm:$0xff]  ;;  %v6617_v51 = vld [vmem:[%s6499_s10 + $0x78] sm:$0xff]  ;;  %v4525_v5 = vpack.i.bf16 %v1033_v29, %v1032_v30  ;;  %v1055_v30 = vrot.slane %v6542_v6, 1 }
 0x254   : > { %v1031_v61 = vmul.f32 %v5633_v9, %v6617_v51  ;;  %v1030_v62 = vmul.f32 %v5635_v10, %v6614_v19  ;;  %v6649_v9 = vld [vmem:[%s6499_s10 + $0x98] sm:$0xff]  ;;  %v6652_v10 = vld [vmem:[%s6499_s10 + $0xa0] sm:$0xff] }
 0x255   : > { %v1035_v32 = vmul.f32 %v5653_v41, %v6649_v9  ;;  %v6678_v29 = vld [vmem:[%s6499_s10 + $0xc0] sm:$0xff] }
 0x256   : > { %v6619_v59 = vpop.permute.xlu1 %2131  ;;  %v6621_v22 = vpop.permute.xlu0 %2126  ;;  %v4520_v26 = vpack.i.bf16 %v1031_v61, %v1030_v62  ;;  %v1052_v61 = vrot.slane %v6508_v24, 1 }
 0x257   : > { %8946 = vst [vmem:[#allocation191_spill] sm:$0xff] %v6619_v59  ;;  %8947 = vst [vmem:[#allocation192_spill] sm:$0xff] %v6621_v22  ;;  %4501 = vrot.lane.b32.xlu0 %v4500_v45, %s5153_s21  ;;  %4506 = vrot.lane.b32.xlu1 %v4505_v46, %s5153_s21  ;;  %v4515_v22 = vpack.i.bf16 %v1029_v31, %v1028_v27  ;;  %v6644_v46 = vld [vmem:[%s6499_s10 + $0x90] sm:$0xff]  ;;  %v1037_v27 = vmul.f32 %v5663_v57, %v6655_v25 }
 0x258   : > { %v1034_v31 = vmul.f32 %v5655_v42, %v6644_v46  ;;  %v6681_v42 = vld [vmem:[%s6499_s10 + $0xc8] sm:$0xff] }
 0x259   : > { %v1041_v57 = vmul.f32 %v5683_v49, %v6681_v42  ;;  %v6714_v49 = vld [vmem:[%s6499_s10 + $0xd0] sm:$0xff] }
 0x25a   : > { %v6639_v59 = vpop.permute.xlu1 %2141  ;;  %v6641_v45 = vpop.permute.xlu0 %2136  ;;  %v4530_v6 = vpack.i.bf16 %v1035_v32, %v1034_v31  ;;  %v6720_v32 = vld [vmem:[%s6499_s10 + $0xe0] sm:$0xff] }
 0x25b   : > { %8948 = vst [vmem:[#allocation193_spill] sm:$0xff] %v6639_v59  ;;  %8949 = vst [vmem:[#allocation194_spill] sm:$0xff] %v6641_v45  ;;  %4511 = vrot.lane.b32.xlu0 %v4510_v52, %s5153_s21  ;;  %4516 = vrot.lane.b32.xlu1 %v4515_v22, %s5153_s21  ;;  %v1036_v22 = vmul.f32 %v5665_v58, %v6652_v10  ;;  %v6666_v52 = vld [vmem:[%s6499_s10 + $0xb0] sm:$0xff]  ;;  %v6669_v45 = vld [vmem:[%s6499_s10 + $0xb8] sm:$0xff]  ;;  %v1048_v59 = vrot.slane %v6515_v23, 1  ;;  %v1053_v58 = vrot.slane %v6521_v28, 1 }
 0x25c   : > { %v1040_v28 = vmul.f32 %v5685_v50, %v6678_v29  ;;  %v6717_v50 = vld [vmem:[%s6499_s10 + $0xd8] sm:$0xff] }
 0x25d   : > { %v4535_v24 = vpack.i.bf16 %v1037_v27, %v1036_v22  ;;  %v6704_v25 = vsel %vm1046_vm0, %v1048_v59, %v1052_v61  ;;  %v6723_v22 = vsel %vm1046_vm0, %v1053_v58, %v1055_v30 }
 0x25e   : > { %v6673_v62 = vpop.permute.xlu1 %2151  ;;  %v6675_v41 = vpop.permute.xlu0 %2146  ;;  %8955 = vst [vmem:[#allocation200_spill] sm:$0xff] %v6704_v25  ;;  %v4545_v27 = vpack.i.bf16 %v1041_v57, %v1040_v28  ;;  %8958 = vst [vmem:[#allocation202_spill] sm:$0xff] %v6723_v22  ;;  %v1057_v28 = vrot.slane %v6545_v13, 1 }
 0x25f   : > { %8951 = vst [vmem:[#allocation196_spill] sm:$0xff] %v6673_v62  ;;  %8952 = vst [vmem:[#allocation197_spill] sm:$0xff] %v6675_v41  ;;  %4521 = vrot.lane.b32.xlu0 %v4520_v26, %s5153_s21  ;;  %4526 = vrot.lane.b32.xlu1 %v4525_v5, %s5153_s21  ;;  %v1039_v41 = vmul.f32 %v5673_v17, %v6669_v45  ;;  %v1038_v62 = vmul.f32 %v5675_v18, %v6666_v52  ;;  %v6701_v5 = vld [vmem:[%s6499_s10 + $0xe8] sm:$0xff]  ;;  %v8956_v17 = vrot.slane %v6518_v20, 1 }
 0x261   : > { %v6709_v18 = vsel %vm1046_vm0, %v8956_v17, %v1048_v59  ;;  %v4540_v31 = vpack.i.bf16 %v1039_v41, %v1038_v62  ;;  %v1043_v59 = vmul.f32 %v5693_v2, %v6717_v50  ;;  %v1044_v17 = vmul.f32 %v5705_v43, %v6720_v32 }
 0x262   : > { %v6696_v23 = vpop.permute.xlu1 %2161  ;;  %v6698_v26 = vpop.permute.xlu0 %2156  ;;  %8957 = vst [vmem:[#allocation201_spill] sm:$0xff] %v6709_v18  ;;  %v1059_v62 = vrot.slane %v6548_v14, 1  ;;  %v1061_v41 = vrot.slane %v6551_v0, 1  ;;  %v1071_v43 = vrot.slane %v6592_v4, 1 }
 0x263   : > { %8953 = vst [vmem:[#allocation198_spill] sm:$0xff] %v6696_v23  ;;  %8954 = vst [vmem:[#allocation199_spill] sm:$0xff] %v6698_v26  ;;  %4531 = vrot.lane.b32.xlu0 %v4530_v6, %s5153_s21  ;;  %4536 = vrot.lane.b32.xlu1 %v4535_v24, %s5153_s21  ;;  %v6726_v26 = vsel %vm1046_vm0, %v1052_v61, %v1053_v58  ;;  %v1042_v24 = vmul.f32 %v5695_v47, %v6714_v49  ;;  %v1063_v61 = vrot.slane %v6562_v56, 1 }
 0x264   : > { %8959 = vst [vmem:[#allocation203_spill] sm:$0xff] %v6726_v26  ;;  %v1045_v6 = vmul.f32 %v5703_v34, %v6701_v5  ;;  %v1065_v47 = vrot.slane %v6565_v8, 1  ;;  %v1067_v58 = vrot.slane %v6572_v60, 1  ;;  %v1069_v34 = vrot.slane %v6575_v21, 1 }
 0x265   : > { %v1305_v23 = vmul.f32 %v5713_v1, %v6704_v25  ;;  %v1306_v60 = vmul.f32 %v5725_v36, %v6726_v26  ;;  %v4550_v8 = vpack.i.bf16 %v1043_v59, %v1042_v24  ;;  %v6759_v4 = vsel %vm1046_vm0, %v1057_v28, %v1059_v62 }
 0x266   : > { %v6740_v57 = vpop.permute.xlu1 %2171  ;;  %v6742_v2 = vpop.permute.xlu0 %2166  ;;  %v4555_v21 = vpack.i.bf16 %v1045_v6, %v1044_v17  ;;  %v6768_v1 = vsel %vm1046_vm0, %v1059_v62, %v1061_v41  ;;  %v6775_v36 = vsel %vm1046_vm0, %v1065_v47, %v1067_v58  ;;  %v6778_v59 = vsel %vm1046_vm0, %v1063_v61, %v1065_v47 }
 0x267   : > { %8960 = vst [vmem:[#allocation204_spill] sm:$0xff] %v6740_v57  ;;  %8961 = vst [vmem:[#allocation205_spill] sm:$0xff] %v6742_v2  ;;  %4541 = vrot.lane.b32.xlu0 %v4540_v31, %s5153_s21  ;;  %4546 = vrot.lane.b32.xlu1 %v4545_v27, %s5153_s21  ;;  %v1304_v57 = vmul.f32 %v5715_v40, %v6709_v18  ;;  %v1307_v2 = vmul.f32 %v5723_v33, %v6723_v22 }
 0x268   : > { %v6762_v31 = vsel %vm1046_vm0, %v1055_v30, %v1057_v28  ;;  %v6765_v27 = vsel %vm1046_vm0, %v1061_v41, %v1063_v61  ;;  %8963 = vst [vmem:[#allocation207_spill] sm:$0xff] %v6768_v1  ;;  %8966 = vst [vmem:[#allocation210_spill] sm:$0xff] %v6775_v36  ;;  %v6783_v6 = vsel %vm1046_vm0, %v1069_v34, %v1071_v43  ;;  %v1079_v61 = vrot.slane %v6614_v19, 1 }
 0x269   : > { %8962 = vst [vmem:[#allocation206_spill] sm:$0xff] %v6765_v27  ;;  %8967 = vst [vmem:[#allocation211_spill] sm:$0xff] %v6778_v59  ;;  %v4560_v30 = vpack.i.bf16 %v1305_v23, %v1304_v57  ;;  %v4565_v24 = vpack.i.bf16 %v1307_v2, %v1306_v60  ;;  %v6786_v17 = vsel %vm1046_vm0, %v1067_v58, %v1069_v34  ;;  %v1073_v23 = vrot.slane %v6597_v37, 1 }
 0x26a   : > { %v6770_v40 = vpop.permute.xlu1 %2181  ;;  %v6772_v33 = vpop.permute.xlu0 %2176  ;;  %8968 = vst [vmem:[#allocation212_spill] sm:$0xff] %v6783_v6  ;;  %8969 = vst [vmem:[#allocation213_spill] sm:$0xff] %v6786_v17  ;;  %v1309_v28 = vmul.f32 %v5733_v48, %v6759_v4  ;;  %v1308_v62 = vmul.f32 %v5735_v16, %v6762_v31  ;;  %v1311_v41 = vmul.f32 %v5743_v44, %v6765_v27  ;;  %v1075_v60 = vrot.slane %v6600_v38, 1  ;;  %v9013_v27 = vld [vmem:[#allocation182_spill] sm:$0xff] }
 0x26b   : > { %8964 = vst [vmem:[#allocation208_spill] sm:$0xff] %v6770_v40  ;;  %8965 = vst [vmem:[#allocation209_spill] sm:$0xff] %v6772_v33  ;;  %4551 = vrot.lane.b32.xlu0 %v4550_v8, %s5153_s21  ;;  %4556 = vrot.lane.b32.xlu1 %v4555_v21, %s5153_s21  ;;  %v1310_v8 = vmul.f32 %v5745_v11, %v6768_v1  ;;  %v1077_v21 = vrot.slane %v6603_v55, 1  ;;  %v1081_v16 = vrot.slane %v6617_v51, 1  ;;  %v1083_v2 = vrot.slane %v6624_v53, 1 }
 0x26c   : > { %v1085_v44 = vrot.slane %v6627_v54, 1  ;;  %v1087_v11 = vrot.slane %v6644_v46, 1  ;;  %v1313_v47 = vmul.f32 %v5753_v15, %v6775_v36  ;;  %v1312_v58 = vmul.f32 %v5755_v7, %v6778_v59 }
 0x26d   : > { %v1315_v34 = vmul.f32 %v5763_v39, %v6783_v6  ;;  %v1314_v33 = vmul.f32 %v5765_v3, %v6786_v17  ;;  %v4570_v40 = vpack.i.bf16 %v1309_v28, %v1308_v62  ;;  %v4575_v18 = vpack.i.bf16 %v1311_v41, %v1310_v8  ;;  %v8989_v6 = vld [vmem:[#allocation38_spill] sm:$0xff] }
 0x26e   : > { %v6800_v57 = vpop.permute.xlu1 %2191  ;;  %v6802_v48 = vpop.permute.xlu0 %2186  ;;  %v6819_v25 = vsel %vm1046_vm0, %v1073_v23, %v1075_v60  ;;  %v6828_v15 = vsel %vm1046_vm0, %v1075_v60, %v1077_v21  ;;  %v6835_v3 = vsel %vm1046_vm0, %v1081_v16, %v1083_v2  ;;  %v6838_v28 = vsel %vm1046_vm0, %v1079_v61, %v1081_v16  ;;  %v8983_v16 = vld [vmem:[#allocation195_spill] sm:$0xff] }
 0x26f   : > { %8970 = vst [vmem:[#allocation214_spill] sm:$0xff] %v6800_v57  ;;  %8971 = vst [vmem:[#allocation215_spill] sm:$0xff] %v6802_v48  ;;  %4561 = vrot.lane.b32.xlu0 %v4560_v30, %s5154_s22  ;;  %4566 = vrot.lane.b32.xlu1 %v4565_v24, %s5154_s22  ;;  %v6822_v30 = vsel %vm1046_vm0, %v1071_v43, %v1073_v23  ;;  %v6825_v24 = vsel %vm1046_vm0, %v1077_v21, %v1079_v61  ;;  %v1091_v61 = vrot.slane %v6652_v10, 1  ;;  %v9038_v57 = vld [vmem:[#allocation187_spill] sm:$0xff] }
 0x270   : > { %8972 = vst [vmem:[#allocation216_spill] sm:$0xff] %v6819_v25  ;;  %8973 = vst [vmem:[#allocation217_spill] sm:$0xff] %v6822_v30  ;;  %v4580_v43 = vpack.i.bf16 %v1313_v47, %v1312_v58  ;;  %v4585_v62 = vpack.i.bf16 %v1315_v34, %v1314_v33  ;;  %v6843_v41 = vsel %vm1046_vm0, %v1085_v44, %v1087_v11  ;;  %v1089_v33 = vrot.slane %v6649_v9, 1 }
 0x271   : > { %8974 = vst [vmem:[#allocation218_spill] sm:$0xff] %v6825_v24  ;;  %8975 = vst [vmem:[#allocation219_spill] sm:$0xff] %v6828_v15  ;;  %v6846_v8 = vsel %vm1046_vm0, %v1083_v2, %v1085_v44  ;;  %v1317_v23 = vmul.f32 %v5773_v35, %v6819_v25  ;;  %v1316_v60 = vmul.f32 %v5775_v63, %v6822_v30  ;;  %v1093_v47 = vrot.slane %v8983_v16, 1  ;;  %v8988_v25 = vld [vmem:[#allocation37_spill] sm:$0xff] }
 0x272   : > { %v6830_v7 = vpop.permute.xlu1 %2201  ;;  %v6832_v39 = vpop.permute.xlu0 %2196  ;;  %8978 = vst [vmem:[#allocation222_spill] sm:$0xff] %v6835_v3  ;;  %8979 = vst [vmem:[#allocation223_spill] sm:$0xff] %v6838_v28  ;;  %v1319_v21 = vmul.f32 %v5783_v12, %v6825_v24  ;;  %v1095_v2 = vrot.slane %v6666_v52, 1  ;;  %v1097_v63 = vrot.slane %v6669_v45, 1  ;;  %v1099_v58 = vrot.slane %v6678_v29, 1  ;;  %v8987_v24 = vld [vmem:[#allocation36_spill] sm:$0xff] }
 0x273   : > { %8976 = vst [vmem:[#allocation220_spill] sm:$0xff] %v6830_v7  ;;  %8977 = vst [vmem:[#allocation221_spill] sm:$0xff] %v6832_v39  ;;  %4571 = vrot.lane.b32.xlu0 %v4570_v40, %s5154_s22  ;;  %4576 = vrot.lane.b32.xlu1 %v4575_v18, %s5154_s22  ;;  %v8982_v40 = vld [vmem:[#allocation34_spill] sm:$0xff]  ;;  %v1101_v12 = vrot.slane %v6681_v42, 1  ;;  %v1103_v34 = vrot.slane %v6714_v49, 1  ;;  %v1320_v30 = vmul.f32 %v8987_v24, %v6838_v28  ;;  %v576_v39 = vrot.slane %v9013_v27, 7 }
 0x274   : > { %8980 = vst [vmem:[#allocation224_spill] sm:$0xff] %v6843_v41  ;;  %8981 = vst [vmem:[#allocation225_spill] sm:$0xff] %v6846_v8  ;;  %v1318_v18 = vmul.f32 %v8982_v40, %v6828_v15  ;;  %v8986_v40 = vld [vmem:[#allocation35_spill] sm:$0xff]  ;;  %v1323_v17 = vmul.f32 %v8988_v25, %v6843_v41  ;;  %v6879_v36 = vsel %vm1046_vm0, %v1089_v33, %v1091_v61  ;;  %v578_v7 = vrot.slane %v6545_v13, 7 }
 0x275   : > { %v1321_v15 = vmul.f32 %v8986_v40, %v6835_v3  ;;  %8990 = vst [vmem:[#allocation35_spill] sm:$0xff] %v6879_v36  ;;  %v6888_v40 = vsel %vm1046_vm0, %v1091_v61, %v1093_v47  ;;  %v9007_v3 = vld [vmem:[#allocation175_spill] sm:$0xff] }
 0x276   : > { %v6860_v44 = vpop.permute.xlu1 %2211  ;;  %v6862_v35 = vpop.permute.xlu0 %2206  ;;  %v4595_v59 = vpack.i.bf16 %v1319_v21, %v1318_v18  ;;  %8993 = vst [vmem:[#allocation38_spill] sm:$0xff] %v6888_v40  ;;  %v6903_v21 = vsel %vm1046_vm0, %v1101_v12, %v1103_v34  ;;  %v6906_v18 = vsel %vm1046_vm0, %v1099_v58, %v1101_v12  ;;  %v9006_v12 = vld [vmem:[#allocation178_spill] sm:$0xff] }
 0x277   : > { %8984 = vst [vmem:[#allocation34_spill] sm:$0xff] %v6860_v44  ;;  %8985 = vst [vmem:[#allocation195_spill] sm:$0xff] %v6862_v35  ;;  %4581 = vrot.lane.b32.xlu0 %v4580_v43, %s5154_s22  ;;  %4586 = vrot.lane.b32.xlu1 %v4585_v62, %s5154_s22  ;;  %v1322_v35 = vmul.f32 %v8989_v6, %v6846_v8  ;;  %v4590_v44 = vpack.i.bf16 %v1317_v23, %v1316_v60 }
 0x278   : > { %v6882_v43 = vsel %vm1046_vm0, %v1087_v11, %v1089_v33  ;;  %v6885_v62 = vsel %vm1046_vm0, %v1093_v47, %v1095_v2  ;;  %v6895_v6 = vsel %vm1046_vm0, %v1097_v63, %v1099_v58  ;;  %v6898_v23 = vsel %vm1046_vm0, %v1095_v2, %v1097_v63  ;;  %8998 = vst [vmem:[#allocation230_spill] sm:$0xff] %v6903_v21  ;;  %v9000_v33 = vld [vmem:[#allocation39_spill] sm:$0xff]  ;;  %v9001_v47 = vld [vmem:[#allocation40_spill] sm:$0xff]  ;;  %v9002_v2 = vld [vmem:[#allocation41_spill] sm:$0xff] }
 0x279   : > { %8991 = vst [vmem:[#allocation36_spill] sm:$0xff] %v6882_v43  ;;  %8992 = vst [vmem:[#allocation37_spill] sm:$0xff] %v6885_v62  ;;  %v4600_v11 = vpack.i.bf16 %v1321_v15, %v1320_v30  ;;  %v4605_v60 = vpack.i.bf16 %v1323_v17, %v1322_v35  ;;  %v1325_v61 = vmul.f32 %v9000_v33, %v6879_v36  ;;  %v1105_v17 = vrot.slane %v6717_v50, 1 }
 0x27a   : > { %v6890_v24 = vpop.permute.xlu1 %2221  ;;  %v6892_v25 = vpop.permute.xlu0 %2216  ;;  %8996 = vst [vmem:[#allocation228_spill] sm:$0xff] %v6895_v6  ;;  %8997 = vst [vmem:[#allocation229_spill] sm:$0xff] %v6898_v23  ;;  %v1324_v28 = vmul.f32 %v9001_v47, %v6882_v43  ;;  %v1327_v63 = vmul.f32 %v9002_v2, %v6885_v62  ;;  %v1107_v30 = vrot.slane %v6720_v32, 1  ;;  %v1109_v15 = vrot.slane %v6701_v5, 1  ;;  %v9009_v2 = vld [vmem:[#allocation43_spill] sm:$0xff]  ;;  %v9039_v43 = vld [vmem:[#allocation190_spill] sm:$0xff] }
 0x27b   : > { %8994 = vst [vmem:[#allocation226_spill] sm:$0xff] %v6890_v24  ;;  %8995 = vst [vmem:[#allocation227_spill] sm:$0xff] %v6892_v25  ;;  %4591 = vrot.lane.b32.xlu0 %v4590_v44, %s5154_s22  ;;  %4596 = vrot.lane.b32.xlu1 %v4595_v59, %s5154_s22  ;;  %v9003_v44 = vld [vmem:[#allocation42_spill] sm:$0xff]  ;;  %v573_v47 = vrot.slane %v9007_v3, 7  ;;  %v9008_v25 = vld [vmem:[#allocation179_spill] sm:$0xff] }
 0x27c   : > { %8999 = vst [vmem:[#allocation231_spill] sm:$0xff] %v6906_v18  ;;  %v1326_v59 = vmul.f32 %v9003_v44, %v6888_v40  ;;  %v574_v24 = vrot.slane %v9008_v25, 7  ;;  %v1329_v44 = vmul.f32 %v9009_v2, %v6895_v6  ;;  %v9010_v40 = vld [vmem:[#allocation44_spill] sm:$0xff]  ;;  %v4610_v48 = vpack.i.bf16 %v1325_v61, %v1324_v28  ;;  %v9021_v61 = vld [vmem:[#allocation47_spill] sm:$0xff]  ;;  %v9037_v6 = vld [vmem:[#allocation186_spill] sm:$0xff] }
 0x27d   : > { %v1328_v62 = vmul.f32 %v9010_v40, %v6898_v23  ;;  %v6942_v2 = vsel %vm1046_vm0, %v1103_v34, %v1105_v17  ;;  %v9016_v40 = vrot.slane %v6518_v20, 1 }
 0x27e   : > { %v6919_v35 = vpop.permute.xlu1 %2231  ;;  %v6921_v58 = vpop.permute.xlu0 %2226  ;;  %9015 = vst [vmem:[#allocation42_spill] sm:$0xff] %v6942_v2 }
 0x27f   : > { %9004 = vst [vmem:[#allocation39_spill] sm:$0xff] %v6919_v35  ;;  %9005 = vst [vmem:[#allocation40_spill] sm:$0xff] %v6921_v58  ;;  %4601 = vrot.lane.b32.xlu0 %v4600_v11, %s5154_s22  ;;  %4606 = vrot.lane.b32.xlu1 %v4605_v60, %s5154_s22  ;;  %v9011_v35 = vld [vmem:[#allocation45_spill] sm:$0xff]  ;;  %v9012_v58 = vld [vmem:[#allocation46_spill] sm:$0xff]  ;;  %v4615_v11 = vpack.i.bf16 %v1327_v63, %v1326_v59  ;;  %v6939_v60 = vsel %vm1046_vm0, %v1105_v17, %v1107_v30 }
 0x280   : > { %v1331_v1 = vmul.f32 %v9011_v35, %v6903_v21  ;;  %v1330_v33 = vmul.f32 %v9012_v58, %v6906_v18  ;;  %9014 = vst [vmem:[#allocation41_spill] sm:$0xff] %v6939_v60  ;;  %v6947_v23 = vsel %vm1046_vm0, %v1109_v15, %v9016_v40  ;;  %v6950_v35 = vsel %vm1046_vm0, %v1107_v30, %v1109_v15  ;;  %v9022_v59 = vld [vmem:[#allocation48_spill] sm:$0xff]  ;;  %v9023_v30 = vld [vmem:[#allocation49_spill] sm:$0xff]  ;;  %v9024_v40 = vld [vmem:[#allocation50_spill] sm:$0xff] }
 0x281   : > { %9017 = vst [vmem:[#allocation178_spill] sm:$0xff] %v6947_v23  ;;  %9018 = vst [vmem:[#allocation175_spill] sm:$0xff] %v6950_v35  ;;  %v4620_v28 = vpack.i.bf16 %v1329_v44, %v1328_v62  ;;  %v1333_v63 = vmul.f32 %v9021_v61, %v6939_v60  ;;  %v1332_v17 = vmul.f32 %v9022_v59, %v6942_v2  ;;  %v582_v59 = vrot.slane %v6551_v0, 7 }
 0x282   : > { %v6952_v58 = vpop.permute.xlu1 %2241  ;;  %v6954_v18 = vpop.permute.xlu0 %2236  ;;  %v4625_v34 = vpack.i.bf16 %v1331_v1, %v1330_v33  ;;  %v1335_v15 = vmul.f32 %v9023_v30, %v6947_v23  ;;  %v6972_v62 = vsel %vm535_vm1, %v573_v47, %v574_v24  ;;  %v6975_v1 = vsel %vm535_vm1, %v576_v39, %v578_v7  ;;  %v9032_v30 = vld [vmem:[#allocation183_spill] sm:$0xff] }
 0x283   : > { %9019 = vst [vmem:[#allocation179_spill] sm:$0xff] %v6952_v58  ;;  %9020 = vst [vmem:[#allocation43_spill] sm:$0xff] %v6954_v18  ;;  %4611 = vrot.lane.b32.xlu0 %v4610_v48, %s5154_s22  ;;  %4616 = vrot.lane.b32.xlu1 %v4615_v11, %s5154_s22  ;;  %v1334_v58 = vmul.f32 %v9024_v40, %v6950_v35  ;;  %v9025_v18 = vrot.slane %v9006_v12, 7  ;;  %v580_v33 = vrot.slane %v6548_v14, 7  ;;  %v586_v40 = vrot.slane %v9032_v30, 7 }
 0x284   : > { %9027 = vst [vmem:[#allocation45_spill] sm:$0xff] %v6972_v62  ;;  %9028 = vst [vmem:[#allocation46_spill] sm:$0xff] %v6975_v1  ;;  %v6983_v61 = vsel %vm535_vm1, %v574_v24, %v576_v39  ;;  %v9036_v24 = vld [vmem:[#allocation54_spill] sm:$0xff]  ;;  %v4630_v60 = vpack.i.bf16 %v1333_v63, %v1332_v17  ;;  %v588_v30 = vrot.slane %v9037_v6, 7  ;;  %v9046_v63 = vld [vmem:[#allocation55_spill] sm:$0xff] }
 0x285   : > { %v6969_v48 = vsel %vm535_vm1, %v9025_v18, %v573_v47  ;;  %9031 = vst [vmem:[#allocation48_spill] sm:$0xff] %v6983_v61  ;;  %v584_v18 = vrot.slane %v6562_v56, 7  ;;  %v9033_v47 = vld [vmem:[#allocation51_spill] sm:$0xff]  ;;  %v1498_v2 = vmul.f32 %v9036_v24, %v6983_v61  ;;  %v4635_v21 = vpack.i.bf16 %v1335_v15, %v1334_v58 }
 0x286   : > { %9026 = vst [vmem:[#allocation44_spill] sm:$0xff] %v6969_v48  ;;  %v6978_v44 = vpop.permute.xlu1 %2251  ;;  %v6980_v11 = vpop.permute.xlu0 %2246  ;;  %v1497_v35 = vmul.f32 %v9033_v47, %v6972_v62  ;;  %v594_v24 = vrot.slane %v6597_v37, 7  ;;  %v9048_v37 = vld [vmem:[#allocation57_spill] sm:$0xff] }
 0x287   : > { %9029 = vst [vmem:[#allocation182_spill] sm:$0xff] %v6978_v44  ;;  %9030 = vst [vmem:[#allocation47_spill] sm:$0xff] %v6980_v11  ;;  %4621 = vrot.lane.b32.xlu0 %v4620_v28, %s5154_s22  ;;  %4626 = vrot.lane.b32.xlu1 %v4625_v34, %s5154_s22  ;;  %v9034_v44 = vld [vmem:[#allocation52_spill] sm:$0xff]  ;;  %v9035_v11 = vld [vmem:[#allocation53_spill] sm:$0xff]  ;;  %v590_v28 = vrot.slane %v9038_v57, 7  ;;  %v592_v34 = vrot.slane %v9039_v43, 7  ;;  %v7015_v57 = vsel %vm535_vm1, %v584_v18, %v586_v40 }
 0x288   : > { %v1496_v23 = vmul.f32 %v9034_v44, %v6969_v48  ;;  %v1499_v39 = vmul.f32 %v9035_v11, %v6975_v1  ;;  %v7006_v44 = vsel %vm535_vm1, %v580_v33, %v582_v59  ;;  %v7009_v11 = vsel %vm535_vm1, %v578_v7, %v580_v33  ;;  %9044 = vst [vmem:[#allocation53_spill] sm:$0xff] %v7015_v57  ;;  %v9047_v7 = vld [vmem:[#allocation56_spill] sm:$0xff] }
 0x289   : > { %9042 = vst [vmem:[#allocation51_spill] sm:$0xff] %v7006_v44  ;;  %9043 = vst [vmem:[#allocation52_spill] sm:$0xff] %v7009_v11  ;;  %v7018_v43 = vsel %vm535_vm1, %v582_v59, %v584_v18  ;;  %v1501_v17 = vmul.f32 %v9046_v63, %v7006_v44  ;;  %v1500_v15 = vmul.f32 %v9047_v7, %v7009_v11  ;;  %v598_v63 = vrot.slane %v6603_v55, 7  ;;  %v9057_v55 = vld [vmem:[#allocation62_spill] sm:$0xff] }
 0x28a   : > { %v7001_v36 = vpop.permute.xlu1 %2261  ;;  %v7003_v47 = vpop.permute.xlu0 %2256  ;;  %9045 = vst [vmem:[#allocation54_spill] sm:$0xff] %v7018_v43  ;;  %v4640_v6 = vpack.i.bf16 %v1497_v35, %v1496_v23  ;;  %v4645_v58 = vpack.i.bf16 %v1499_v39, %v1498_v2  ;;  %v1503_v33 = vmul.f32 %v9048_v37, %v7015_v57  ;;  %v7032_v59 = vsel %vm535_vm1, %v586_v40, %v588_v30  ;;  %v9055_v40 = vld [vmem:[#allocation60_spill] sm:$0xff] }
 0x28b   : > { %9040 = vst [vmem:[#allocation49_spill] sm:$0xff] %v7001_v36  ;;  %9041 = vst [vmem:[#allocation50_spill] sm:$0xff] %v7003_v47  ;;  %4631 = vrot.lane.b32.xlu0 %v4630_v60, %s5154_s22  ;;  %4636 = vrot.lane.b32.xlu1 %v4635_v21, %s5154_s22  ;;  %v9049_v60 = vld [vmem:[#allocation58_spill] sm:$0xff]  ;;  %v7029_v47 = vsel %vm535_vm1, %v588_v30, %v590_v28  ;;  %v7035_v23 = vsel %vm535_vm1, %v590_v28, %v592_v34  ;;  %v596_v2 = vrot.slane %v6600_v38, 7  ;;  %v9054_v38 = vld [vmem:[#allocation59_spill] sm:$0xff] }
 0x28c   : > { %v1502_v21 = vmul.f32 %v9049_v60, %v7018_v43  ;;  %9050 = vst [vmem:[#allocation186_spill] sm:$0xff] %v7029_v47  ;;  %9051 = vst [vmem:[#allocation187_spill] sm:$0xff] %v7032_v59  ;;  %v7043_v39 = vsel %vm535_vm1, %v592_v34, %v594_v24  ;;  %v600_v7 = vrot.slane %v6614_v19, 7  ;;  %v602_v37 = vrot.slane %v6617_v51, 7  ;;  %v9056_v34 = vld [vmem:[#allocation61_spill] sm:$0xff] }
 0x28d   : > { %9052 = vst [vmem:[#allocation190_spill] sm:$0xff] %v7035_v23  ;;  %9053 = vst [vmem:[#allocation55_spill] sm:$0xff] %v7043_v39  ;;  %v1505_v30 = vmul.f32 %v9054_v38, %v7029_v47  ;;  %v1504_v28 = vmul.f32 %v9055_v40, %v7032_v59  ;;  %v1507_v60 = vmul.f32 %v9056_v34, %v7043_v39  ;;  %v604_v51 = vrot.slane %v6624_v53, 7  ;;  %v9063_v39 = vld [vmem:[#allocation64_spill] sm:$0xff] }
 0x28e   : > { %v7038_v35 = vpop.permute.xlu1 %2303  ;;  %v7040_v18 = vpop.permute.xlu0 %2298  ;;  %v1506_v36 = vmul.f32 %v9057_v55, %v7035_v23  ;;  %v4650_v19 = vpack.i.bf16 %v1501_v17, %v1500_v15  ;;  %v4655_v62 = vpack.i.bf16 %v1503_v33, %v1502_v21  ;;  %v610_v48 = vrot.slane %v6649_v9, 7  ;;  %v9062_v55 = vld [vmem:[#allocation63_spill] sm:$0xff] }
 0x28f   : > { %4646 = vrot.lane.b32.xlu1 %v4645_v58, %s5155_s23  ;;  %4641 = vrot.lane.b32.xlu0 %v4640_v6, %s5155_s23  ;;  %v606_v58 = vrot.slane %v6627_v54, 7  ;;  %v608_v6 = vrot.slane %v6644_v46, 7  ;;  %v7067_v40 = vsel %vm535_vm1, %v596_v2, %v598_v63  ;;  %v7070_v34 = vsel %vm535_vm1, %v594_v24, %v596_v2  ;;  %v9064_v24 = vld [vmem:[#allocation65_spill] sm:$0xff] }
 0x290   : > { %9058 = vst [vmem:[#allocation56_spill] sm:$0xff] %v7067_v40  ;;  %9059 = vst [vmem:[#allocation57_spill] sm:$0xff] %v7070_v34  ;;  %v7075_v17 = vsel %vm535_vm1, %v600_v7, %v602_v37  ;;  %v7078_v15 = vsel %vm535_vm1, %v598_v63, %v600_v7  ;;  %v4660_v33 = vpack.i.bf16 %v1505_v30, %v1504_v28  ;;  %v612_v28 = vrot.slane %v6652_v10, 7 }
 0x291   : > { %9060 = vst [vmem:[#allocation58_spill] sm:$0xff] %v7075_v17  ;;  %9061 = vst [vmem:[#allocation59_spill] sm:$0xff] %v7078_v15  ;;  %v4665_v21 = vpack.i.bf16 %v1507_v60, %v1506_v36  ;;  %v1509_v23 = vmul.f32 %v9062_v55, %v7067_v40  ;;  %v1508_v59 = vmul.f32 %v9063_v39, %v7070_v34  ;;  %v614_v60 = vrot.slane %v8983_v16, 7 }
 0x292   : > { %v7062_v38 = vpop.permute.xlu1 %2313  ;;  %v7064_v47 = vpop.permute.xlu0 %2308  ;;  %v1511_v2 = vmul.f32 %v9064_v24, %v7075_v17  ;;  %v7089_v43 = vsel %vm535_vm1, %v604_v51, %v606_v58  ;;  %v7092_v63 = vsel %vm535_vm1, %v602_v37, %v604_v51  ;;  %v7095_v36 = vsel %vm535_vm1, %v608_v6, %v610_v48  ;;  %v9072_v37 = vld [vmem:[#allocation67_spill] sm:$0xff]  ;;  %v9075_v17 = vld [vmem:[#allocation70_spill] sm:$0xff] }
 0x293   : > { %4656 = vrot.lane.b32.xlu1 %v4655_v62, %s5155_s23  ;;  %4651 = vrot.lane.b32.xlu0 %v4650_v19, %s5155_s23  ;;  %v9065_v62 = vld [vmem:[#allocation66_spill] sm:$0xff]  ;;  %9066 = vst [vmem:[#allocation60_spill] sm:$0xff] %v7089_v43  ;;  %9067 = vst [vmem:[#allocation61_spill] sm:$0xff] %v7092_v63  ;;  %v7098_v7 = vsel %vm535_vm1, %v606_v58, %v608_v6  ;;  %v616_v55 = vrot.slane %v6666_v52, 7  ;;  %v618_v24 = vrot.slane %v6669_v45, 7  ;;  %v9073_v58 = vld [vmem:[#allocation68_spill] sm:$0xff] }
 0x294   : > { %v1510_v19 = vmul.f32 %v9065_v62, %v7078_v15  ;;  %9068 = vst [vmem:[#allocation62_spill] sm:$0xff] %v7095_v36  ;;  %9069 = vst [vmem:[#allocation63_spill] sm:$0xff] %v7098_v7  ;;  %v1513_v51 = vmul.f32 %v9072_v37, %v7089_v43  ;;  %v1512_v6 = vmul.f32 %v9073_v58, %v7092_v63  ;;  %v9074_v62 = vld [vmem:[#allocation69_spill] sm:$0xff]  ;;  %v620_v40 = vrot.slane %v6678_v29, 7  ;;  %v9080_v63 = vld [vmem:[#allocation71_spill] sm:$0xff] }
 0x295   : > { %v1515_v15 = vmul.f32 %v9074_v62, %v7095_v36  ;;  %v7125_v37 = vsel %vm535_vm1, %v612_v28, %v614_v60  ;;  %v7128_v58 = vsel %vm535_vm1, %v610_v48, %v612_v28  ;;  %v624_v62 = vrot.slane %v6714_v49, 7  ;;  %v9081_v28 = vld [vmem:[#allocation72_spill] sm:$0xff] }
 0x296   : > { %v7100_v30 = vpop.permute.xlu1 %2323  ;;  %v7102_v39 = vpop.permute.xlu0 %2318  ;;  %v4675_v34 = vpack.i.bf16 %v1511_v2, %v1510_v19  ;;  %9078 = vst [vmem:[#allocation68_spill] sm:$0xff] %v7125_v37  ;;  %9079 = vst [vmem:[#allocation69_spill] sm:$0xff] %v7128_v58  ;;  %v4680_v2 = vpack.i.bf16 %v1513_v51, %v1512_v6  ;;  %v1517_v48 = vmul.f32 %v9080_v63, %v7125_v37 }
 0x297   : > { %9070 = vst [vmem:[#allocation64_spill] sm:$0xff] %v7100_v30  ;;  %9071 = vst [vmem:[#allocation65_spill] sm:$0xff] %v7102_v39  ;;  %4666 = vrot.lane.b32.xlu1 %v4665_v21, %s5155_s23  ;;  %4661 = vrot.lane.b32.xlu0 %v4660_v33, %s5155_s23  ;;  %v1514_v39 = vmul.f32 %v9075_v17, %v7098_v7  ;;  %v4670_v30 = vpack.i.bf16 %v1509_v23, %v1508_v59  ;;  %v622_v21 = vrot.slane %v6681_v42, 7 }
 0x298   : > { %v626_v17 = vrot.slane %v6717_v50, 7  ;;  %v7135_v59 = vsel %vm535_vm1, %v616_v55, %v618_v24  ;;  %v7138_v23 = vsel %vm535_vm1, %v614_v60, %v616_v55  ;;  %v1516_v49 = vmul.f32 %v9081_v28, %v7128_v58  ;;  %v9082_v50 = vld [vmem:[#allocation73_spill] sm:$0xff]  ;;  %v9087_v28 = vld [vmem:[#allocation76_spill] sm:$0xff] }
 0x299   : > { %v4685_v19 = vpack.i.bf16 %v1515_v15, %v1514_v39  ;;  %v1519_v43 = vmul.f32 %v9082_v50, %v7135_v59  ;;  %v7151_v60 = vsel %vm535_vm1, %v620_v40, %v622_v21  ;;  %v7158_v63 = vsel %vm535_vm1, %v618_v24, %v620_v40  ;;  %v9088_v40 = vld [vmem:[#allocation77_spill] sm:$0xff] }
 0x29a   : > { %v7120_v57 = vpop.permute.xlu1 %2333  ;;  %v7122_v33 = vpop.permute.xlu0 %2328  ;;  %v7161_v55 = vsel %vm535_vm1, %v624_v62, %v626_v17  ;;  %v7164_v51 = vsel %vm535_vm1, %v622_v21, %v624_v62  ;;  %v1520_v50 = vmul.f32 %v9087_v28, %v7158_v63  ;;  %v4690_v21 = vpack.i.bf16 %v1517_v48, %v1516_v49 }
 0x29b   : > { %9076 = vst [vmem:[#allocation66_spill] sm:$0xff] %v7120_v57  ;;  %9077 = vst [vmem:[#allocation67_spill] sm:$0xff] %v7122_v33  ;;  %4676 = vrot.lane.b32.xlu1 %v4675_v34, %s5155_s23  ;;  %4671 = vrot.lane.b32.xlu0 %v4670_v30, %s5155_s23  ;;  %v9083_v34 = vld [vmem:[#allocation74_spill] sm:$0xff]  ;;  %v536_v33 = vrot.slane %v6701_v5, 7  ;;  %v537_v57 = vrot.slane %v6518_v20, 7  ;;  %v628_v5 = vrot.slane %v6720_v32, 7  ;;  %v1523_v24 = vmul.f32 %v9088_v40, %v7161_v55 }
 0x29c   : > { %v1518_v30 = vmul.f32 %v9083_v34, %v7138_v23  ;;  %v9086_v20 = vld [vmem:[#allocation75_spill] sm:$0xff]  ;;  %v9089_v34 = vld [vmem:[#allocation78_spill] sm:$0xff] }
 0x29d   : > { %v1521_v6 = vmul.f32 %v9086_v20, %v7151_v60  ;;  %v7192_v28 = vsel %vm535_vm1, %v628_v5, %v536_v33 }
 0x29e   : > { %v7153_v15 = vpop.permute.xlu1 %2343  ;;  %v7155_v39 = vpop.permute.xlu0 %2338  ;;  %v4695_v62 = vpack.i.bf16 %v1519_v43, %v1518_v30  ;;  %v7195_v43 = vsel %vm535_vm1, %v626_v17, %v628_v5  ;;  %v9093_v30 = vld [vmem:[#allocation79_spill] sm:$0xff]  ;;  %v9100_v5 = vld [vmem:[#allocation84_spill] sm:$0xff] }
 0x29f   : > { %9084 = vst [vmem:[#allocation70_spill] sm:$0xff] %v7153_v15  ;;  %9085 = vst [vmem:[#allocation71_spill] sm:$0xff] %v7155_v39  ;;  %4686 = vrot.lane.b32.xlu1 %v4685_v19, %s5155_s23  ;;  %4681 = vrot.lane.b32.xlu0 %v4680_v2, %s5155_s23  ;;  %v1522_v39 = vmul.f32 %v9089_v34, %v7164_v51  ;;  %v7182_v2 = vsel %vm535_vm1, %v536_v33, %v537_v57  ;;  %v9092_v19 = vrot.slane %v9006_v12, 7  ;;  %v9094_v12 = vld [vmem:[#allocation80_spill] sm:$0xff]  ;;  %v9099_v17 = vld [vmem:[#allocation83_spill] sm:$0xff] }
 0x2a0   : > { %v4700_v48 = vpack.i.bf16 %v1521_v6, %v1520_v50  ;;  %v1525_v40 = vmul.f32 %v9093_v30, %v7192_v28  ;;  %v1524_v34 = vmul.f32 %v9094_v12, %v7195_v43  ;;  %v1688_v6 = vmul.f32 %v9100_v5, %v9007_v3  ;;  %v9101_v30 = vld [vmem:[#allocation85_spill] sm:$0xff]  ;;  %v9105_v3 = vld [vmem:[#allocation87_spill] sm:$0xff] }
 0x2a1   : > { %v7187_v20 = vsel %vm535_vm1, %v537_v57, %v9092_v19  ;;  %v4705_v49 = vpack.i.bf16 %v1523_v24, %v1522_v39  ;;  %v9095_v57 = vld [vmem:[#allocation81_spill] sm:$0xff]  ;;  %v1689_v39 = vmul.f32 %v9099_v17, %v9008_v25  ;;  %v1691_v12 = vmul.f32 %v9101_v30, %v6545_v13  ;;  %v9108_v30 = vld [vmem:[#allocation90_spill] sm:$0xff] }
 0x2a2   : > { %v7177_v15 = vpop.permute.xlu1 %2353  ;;  %v7179_v32 = vpop.permute.xlu0 %2348  ;;  %v1527_v19 = vmul.f32 %v9095_v57, %v7187_v20  ;;  %v4710_v50 = vpack.i.bf16 %v1525_v40, %v1524_v34  ;;  %v9102_v57 = vld [vmem:[#allocation86_spill] sm:$0xff]  ;;  %v9106_v40 = vld [vmem:[#allocation88_spill] sm:$0xff] }
 0x2a3   : > { %9090 = vst [vmem:[#allocation72_spill] sm:$0xff] %v7177_v15  ;;  %9091 = vst [vmem:[#allocation73_spill] sm:$0xff] %v7179_v32  ;;  %4696 = vrot.lane.b32.xlu1 %v4695_v62, %s5155_s23  ;;  %4691 = vrot.lane.b32.xlu0 %v4690_v21, %s5155_s23  ;;  %v9096_v62 = vld [vmem:[#allocation82_spill] sm:$0xff]  ;;  %v4720_v25 = vpack.i.bf16 %v1689_v39, %v1688_v6  ;;  %v1692_v34 = vmul.f32 %v9106_v40, %v6548_v14  ;;  %v9111_v40 = vld [vmem:[#allocation99_spill] sm:$0xff] }
 0x2a4   : > { %v1526_v21 = vmul.f32 %v9096_v62, %v7182_v2  ;;  %v1690_v62 = vmul.f32 %v9102_v57, %v9013_v27  ;;  %v9110_v57 = vld [vmem:[#allocation104_spill] sm:$0xff] }
 0x2a6   : > { %v7205_v32 = vpop.permute.xlu1 %2363  ;;  %v7207_v33 = vpop.permute.xlu0 %2358  ;;  %v4715_v24 = vpack.i.bf16 %v1527_v19, %v1526_v21  ;;  %v9107_v19 = vld [vmem:[#allocation100_spill] sm:$0xff] }
 0x2a7   : > { %9097 = vst [vmem:[#allocation74_spill] sm:$0xff] %v7205_v32  ;;  %9098 = vst [vmem:[#allocation75_spill] sm:$0xff] %v7207_v33  ;;  %4706 = vrot.lane.b32.xlu1 %v4705_v49, %s5155_s23  ;;  %4701 = vrot.lane.b32.xlu0 %v4700_v48, %s5155_s23  ;;  %v4725_v48 = vpack.i.bf16 %v1691_v12, %v1690_v62  ;;  %v1693_v49 = vmul.f32 %v9105_v3, %v6551_v0 }
 0x2a8   : > { %v1704_v21 = vmul.f32 %v9107_v19, %v6624_v53  ;;  %v1708_v53 = vmul.f32 %v9110_v57, %v6652_v10  ;;  %v9112_v19 = vld [vmem:[#allocation101_spill] sm:$0xff] }
 0x2a9   : > { %v4730_v39 = vpack.i.bf16 %v1693_v49, %v1692_v34  ;;  %v9114_v34 = vld [vmem:[#allocation116_spill] sm:$0xff] }
 0x2aa   : > { %v7219_v32 = vpop.permute.xlu1 %2373  ;;  %v7221_v33 = vpop.permute.xlu0 %2368 }
 0x2ab   : > { %9103 = vst [vmem:[#allocation76_spill] sm:$0xff] %v7219_v32  ;;  %9104 = vst [vmem:[#allocation77_spill] sm:$0xff] %v7221_v33  ;;  %4716 = vrot.lane.b32.xlu1 %v4715_v24, %s5155_s23  ;;  %4711 = vrot.lane.b32.xlu0 %v4710_v50, %s5155_s23  ;;  %v1694_v24 = vmul.f32 %v9108_v30, %v6562_v56  ;;  %v9109_v50 = vld [vmem:[#allocation102_spill] sm:$0xff]  ;;  %v1705_v56 = vmul.f32 %v9111_v40, %v6627_v54  ;;  %v9116_v54 = vld [vmem:[#allocation132_spill] sm:$0xff] }
 0x2ac   : > { %v1706_v12 = vmul.f32 %v9109_v50, %v6644_v46  ;;  %v9115_v50 = vld [vmem:[#allocation131_spill] sm:$0xff]  ;;  %v1896_v40 = vmul.f32 %v9116_v54, %v6846_v8  ;;  %v9121_v54 = vld [vmem:[#allocation36_spill] sm:$0xff] }
 0x2ad   : > { %v4735_v6 = vpack.i.bf16 %v1704_v21, %v1694_v24  ;;  %v1880_v21 = vmul.f32 %v9114_v34, %v6726_v26  ;;  %v1897_v57 = vmul.f32 %v9115_v50, %v6843_v41  ;;  %v9120_v34 = vld [vmem:[#allocation133_spill] sm:$0xff]  ;;  %v9122_v26 = vld [vmem:[#allocation134_spill] sm:$0xff] }
 0x2ae   : > { %v7231_v17 = vpop.permute.xlu1 %2383  ;;  %v7233_v5 = vpop.permute.xlu0 %2378  ;;  %v4740_v30 = vpack.i.bf16 %v1706_v12, %v1705_v56  ;;  %v9118_v12 = vld [vmem:[#allocation118_spill] sm:$0xff] }
 0x2af   : > { %4726 = vrot.lane.b32.xlu1 %v4725_v48, %s5156_s24  ;;  %4721 = vrot.lane.b32.xlu0 %v4720_v25, %s5156_s24  ;;  %v1707_v48 = vmul.f32 %v9112_v19, %v6649_v9  ;;  %v9113_v25 = vld [vmem:[#allocation115_spill] sm:$0xff]  ;;  %v4755_v56 = vpack.i.bf16 %v1897_v57, %v1896_v40 }
 0x2b0   : > { %v1881_v49 = vmul.f32 %v9113_v25, %v6723_v22  ;;  %v1898_v22 = vmul.f32 %v9122_v26, %v9121_v54 }
 0x2b1   : > { %v4745_v24 = vpack.i.bf16 %v1708_v53, %v1707_v48  ;;  %v1882_v53 = vmul.f32 %v9118_v12, %v6762_v31  ;;  %v9119_v48 = vld [vmem:[#allocation35_spill] sm:$0xff]  ;;  %v9126_v12 = vld [vmem:[#allocation164_spill] sm:$0xff] }
 0x2b2   : > { %v7243_v62 = vpop.permute.xlu1 %2393  ;;  %v7245_v3 = vpop.permute.xlu0 %2388  ;;  %v1899_v50 = vmul.f32 %v9120_v34, %v9119_v48  ;;  %v2088_v34 = vmul.f32 %v9126_v12, %v7098_v7 }
 0x2b3   : > { %4736 = vrot.lane.b32.xlu1 %v4735_v6, %s5156_s24  ;;  %4731 = vrot.lane.b32.xlu0 %v4730_v39, %s5156_s24  ;;  %v4750_v39 = vpack.i.bf16 %v1881_v49, %v1880_v21  ;;  %v9117_v6 = vld [vmem:[#allocation117_spill] sm:$0xff]  ;;  %v9123_v49 = vld [vmem:[#allocation147_spill] sm:$0xff] }
 0x2b4   : > { %v1883_v25 = vmul.f32 %v9117_v6, %v6759_v4  ;;  %v2073_v21 = vmul.f32 %v9123_v49, %v6975_v1  ;;  %v4765_v40 = vpack.i.bf16 %v1899_v50, %v1898_v22  ;;  %v9125_v6 = vld [vmem:[#allocation163_spill] sm:$0xff]  ;;  %v9130_v22 = vld [vmem:[#allocation150_spill] sm:$0xff]  ;;  %v9131_v50 = vld [vmem:[#allocation165_spill] sm:$0xff] }
 0x2b5   : > { %v2089_v26 = vmul.f32 %v9125_v6, %v7095_v36  ;;  %v9132_v6 = vld [vmem:[#allocation166_spill] sm:$0xff] }
 0x2b6   : > { %v7261_v33 = vpop.permute.xlu1 %2403  ;;  %v7263_v19 = vpop.permute.xlu0 %2398  ;;  %v4760_v57 = vpack.i.bf16 %v1883_v25, %v1882_v53  ;;  %v2074_v25 = vmul.f32 %v9130_v22, %v7009_v11  ;;  %v2090_v12 = vmul.f32 %v9132_v6, %v7128_v58 }
 0x2b7   : > { %4746 = vrot.lane.b32.xlu1 %v4745_v24, %s5156_s24  ;;  %4741 = vrot.lane.b32.xlu0 %v4740_v30, %s5156_s24  ;;  %v9124_v30 = vld [vmem:[#allocation148_spill] sm:$0xff]  ;;  %v4775_v53 = vpack.i.bf16 %v2089_v26, %v2088_v34 }
 0x2b8   : > { %v2072_v24 = vmul.f32 %v9124_v30, %v6983_v61  ;;  %v2091_v30 = vmul.f32 %v9131_v50, %v7125_v37  ;;  %v9138_v50 = vld [vmem:[#allocation215_spill] sm:$0xff] }
 0x2b9   : > { %v2280_v6 = vmul.f32 %v9138_v50, %v6644_v46  ;;  %v9144_v46 = vld [vmem:[#allocation221_spill] sm:$0xff] }
 0x2ba   : > { %v7275_v8 = vpop.permute.xlu1 %2413  ;;  %v7277_v32 = vpop.permute.xlu0 %2408  ;;  %v4785_v34 = vpack.i.bf16 %v2091_v30, %v2090_v12  ;;  %v2282_v12 = vmul.f32 %v9144_v46, %v6652_v10  ;;  %v2473_v10 = vmul.f32 %v7231_v17, %v9119_v48  ;;  %v9151_v17 = vld [vmem:[#allocation37_spill] sm:$0xff] }
 0x2bb   : > { %4756 = vrot.lane.b32.xlu1 %v4755_v56, %s5157_s25  ;;  %4751 = vrot.lane.b32.xlu0 %v4750_v39, %s5157_s25  ;;  %v4770_v39 = vpack.i.bf16 %v2073_v21, %v2072_v24  ;;  %v9129_v56 = vld [vmem:[#allocation149_spill] sm:$0xff]  ;;  %v9135_v21 = vld [vmem:[#allocation184_spill] sm:$0xff]  ;;  %v2475_v48 = vmul.f32 %v7243_v62, %v9151_v17 }
 0x2bc   : > { %v2075_v49 = vmul.f32 %v9129_v56, %v7006_v44  ;;  %v2265_v24 = vmul.f32 %v9135_v21, %v6545_v13  ;;  %v9137_v56 = vld [vmem:[#allocation214_spill] sm:$0xff] }
 0x2bd   : > { %v2281_v22 = vmul.f32 %v9137_v56, %v6649_v9  ;;  %v9143_v9 = vld [vmem:[#allocation220_spill] sm:$0xff] }
 0x2be   : > { %v7289_v41 = vpop.permute.xlu1 %2423  ;;  %v7291_v15 = vpop.permute.xlu0 %2418  ;;  %v4780_v26 = vpack.i.bf16 %v2075_v49, %v2074_v25  ;;  %v9142_v49 = vld [vmem:[#allocation189_spill] sm:$0xff]  ;;  %v2283_v30 = vmul.f32 %v9143_v9, %v8983_v16  ;;  %v9158_v9 = vld [vmem:[#allocation183_spill] sm:$0xff] }
 0x2bf   : > { %9127 = vst [vmem:[#allocation78_spill] sm:$0xff] %v7289_v41  ;;  %9128 = vst [vmem:[#allocation79_spill] sm:$0xff] %v7291_v15  ;;  %4766 = vrot.lane.b32.xlu1 %v4765_v40, %s5157_s25  ;;  %4761 = vrot.lane.b32.xlu0 %v4760_v57, %s5157_s25  ;;  %v9136_v57 = vld [vmem:[#allocation185_spill] sm:$0xff]  ;;  %v2266_v25 = vmul.f32 %v9142_v49, %v6548_v14  ;;  %v2456_v14 = vmul.f32 %v7040_v18, %v6762_v31  ;;  %v9150_v18 = vld [vmem:[#allocation207_spill] sm:$0xff] }
 0x2c0   : > { %v2264_v40 = vmul.f32 %v9136_v57, %v9013_v27 }
 0x2c2   : > { %v7303_v7 = vpop.permute.xlu1 %2433  ;;  %v7305_v36 = vpop.permute.xlu0 %2428  ;;  %v4790_v13 = vpack.i.bf16 %v2265_v24, %v2264_v40  ;;  %v4805_v40 = vpack.i.bf16 %v2283_v30, %v2282_v12 }
 0x2c3   : > { %9133 = vst [vmem:[#allocation80_spill] sm:$0xff] %v7303_v7  ;;  %9134 = vst [vmem:[#allocation81_spill] sm:$0xff] %v7305_v36  ;;  %4776 = vrot.lane.b32.xlu1 %v4775_v53, %s5158_s26  ;;  %4771 = vrot.lane.b32.xlu0 %v4770_v39, %s5158_s26  ;;  %v9141_v39 = vld [vmem:[#allocation188_spill] sm:$0xff]  ;;  %v4795_v53 = vpack.i.bf16 %v2281_v22, %v2280_v6  ;;  %v2458_v22 = vmul.f32 %v7064_v47, %v9150_v18  ;;  %v9156_v47 = vld [vmem:[#allocation105_spill] sm:$0xff] }
 0x2c4   : > { %v2267_v27 = vmul.f32 %v9141_v39, %v6551_v0  ;;  %v2457_v0 = vmul.f32 %v7038_v35, %v6759_v4  ;;  %v9149_v35 = vld [vmem:[#allocation206_spill] sm:$0xff]  ;;  %v5120_v39 = vld [vmem:[%s8627_s2] sm:$0xff]   ;;  %v1711_v62 = vmul.f32 %v9156_v47, %v6669_v45  ;;  %v9218_v7 = vld [vmem:[#allocation67_spill] sm:$0xff] }
 0x2c5   : > { %v2459_v31 = vmul.f32 %v7062_v38, %v9149_v35  ;;  %v9155_v38 = vld [vmem:[#allocation103_spill] sm:$0xff]  ;;  %4420 = vmatprep.subr.bf16.mxu0 %v5120_v39  ;;  %4456 = vmatprep.subr.bf16.mxu1 %v5120_v39 }
 0x2c6   : > { %v7317_v58 = vpop.permute.xlu1 %2443  ;;  %v7319_v37 = vpop.permute.xlu0 %2438  ;;  %v4800_v24 = vpack.i.bf16 %v2267_v27, %v2266_v25  ;;  %v4810_v4 = vpack.i.bf16 %v2457_v0, %v2456_v14  ;;  %v1709_v27 = vmul.f32 %v9155_v38, %v8983_v16  ;;  %4421 = vmatpush3.bf16.msra.mxu0 %v5120_v39  ;;  %v9159_v16 = vld [vmem:[#allocation89_spill] sm:$0xff]  ;;  %4458 = vmatpush3.bf16.msra.mxu1 %v5120_v39  ;;  %v5161_v14 = vmov 65535   ;;  %v9163_v39 = vld [vmem:[#allocation136_spill] sm:$0xff] }
 0x2c7   : > { %9139 = vst [vmem:[#allocation82_spill] sm:$0xff] %v7317_v58  ;;  %9140 = vst [vmem:[#allocation83_spill] sm:$0xff] %v7319_v37  ;;  %4786 = vrot.lane.b32.xlu1 %v4785_v34, %s5158_s26  ;;  %4781 = vrot.lane.b32.xlu0 %v4780_v26, %s5158_s26  ;;  %v2472_v26 = vmul.f32 %v7233_v5, %v9121_v54  ;;  %v9152_v5 = vld [vmem:[#allocation38_spill] sm:$0xff]  ;;  %v4820_v25 = vpack.i.bf16 %v2459_v31, %v2458_v22  ;;  %v5121_v0 = vld [vmem:[%s8627_s2 + $0x8] sm:$0x3f]  }
 0x2c8   : > { %v2474_v54 = vmul.f32 %v7245_v3, %v9152_v5  ;;  %v9157_v3 = vld [vmem:[#allocation106_spill] sm:$0xff]  ;;  %v1695_v30 = vmul.f32 %v9159_v16, %v9158_v9  ;;  %v9161_v22 = vld [vmem:[#allocation120_spill] sm:$0xff]  ;;  %v1900_v38 = vmul.f32 %v9163_v39, %v9152_v5 }
 0x2c9   : > { %v4815_v50 = vpack.i.bf16 %v2473_v10, %v2472_v26  ;;  %v1710_v49 = vmul.f32 %v9157_v3, %v6666_v52  ;;  %v9168_v9 = vld [vmem:[#allocation228_spill] sm:$0xff]  ;;  %v9171_v5 = vld [vmem:[#allocation138_spill] sm:$0xff] }
 0x2ca   : > { %v7331_v21 = vpop.permute.xlu1 %2453  ;;  %v7333_v57 = vpop.permute.xlu0 %2448 }
 0x2cb   : > { %9145 = vst [vmem:[#allocation84_spill] sm:$0xff] %v7331_v21  ;;  %9146 = vst [vmem:[#allocation85_spill] sm:$0xff] %v7333_v57  ;;  %4796 = vrot.lane.b32.xlu1 %v4795_v53, %s5159_s27  ;;  %4791 = vrot.lane.b32.xlu0 %v4790_v13, %s5159_s27  ;;  %v4825_v53 = vpack.i.bf16 %v2475_v48, %v2474_v54  ;;  %v4835_v10 = vpack.i.bf16 %v1711_v62, %v1710_v49  ;;  %v9162_v48 = vld [vmem:[#allocation135_spill] sm:$0xff]  ;;  %v9165_v62 = vld [vmem:[#allocation121_spill] sm:$0xff] }
 0x2cc   : > { %v1901_v54 = vmul.f32 %v9162_v48, %v9151_v17  ;;  %v9169_v17 = vld [vmem:[#allocation137_spill] sm:$0xff]  ;;  %v9175_v48 = vld [vmem:[#allocation151_spill] sm:$0xff] }
 0x2cd   : > { %v1903_v16 = vmul.f32 %v9169_v17, %v9168_v9  ;;  %v9192_v57 = vld [vmem:[#allocation193_spill] sm:$0xff] }
 0x2ce   : > { %v7345_v34 = vpop.permute.xlu0 %4481  ;;  %v7347_v56 = vpop.permute.xlu1 %4486 }
 0x2cf   : > { %9147 = vst [vmem:[#allocation86_spill] sm:$0xff] %v7345_v34  ;;  %9148 = vst [vmem:[#allocation87_spill] sm:$0xff] %v7347_v56  ;;  %4806 = vrot.lane.b32.xlu1 %v4805_v40, %s5159_s27  ;;  %4801 = vrot.lane.b32.xlu0 %v4800_v24, %s5159_s27  ;;  %v3860_v24 = vsel %vm3858_vm2, 4294967295, %v5161_v14  ;;  %v4830_v40 = vpack.i.bf16 %v1695_v30, %v1709_v27  ;;  %v9164_v27 = vld [vmem:[#allocation210_spill] sm:$0xff]  ;;  %v9170_v30 = vld [vmem:[#allocation229_spill] sm:$0xff] }
 0x2d0   : > { %v3861_v26 = vsel %vm3859_vm3, %v3860_v24, 0  ;;  %v1887_v49 = vmul.f32 %v9165_v62, %v9164_v27  ;;  %v1902_v14 = vmul.f32 %v9171_v5, %v9170_v30  ;;  %v9176_v62 = vld [vmem:[#allocation54_spill] sm:$0xff]  ;;  %v9189_v56 = vld [vmem:[#allocation192_spill] sm:$0xff] }
 0x2d2   : > { %v7359_v6 = vpop.permute.xlu0 %4491  ;;  %v7361_v13 = vpop.permute.xlu1 %4496 }
 0x2d3   : > { %9153 = vst [vmem:[#allocation88_spill] sm:$0xff] %v7359_v6  ;;  %9154 = vst [vmem:[#allocation100_spill] sm:$0xff] %v7361_v13  ;;  %4816 = vrot.lane.b32.xlu1 %v4815_v50, %s5160_s5  ;;  %4811 = vrot.lane.b32.xlu0 %v4810_v4, %s5160_s5  ;;  %v9160_v4 = vld [vmem:[#allocation119_spill] sm:$0xff]  ;;  %v1884_v50 = vmul.f32 %v9161_v22, %v9150_v18  ;;  %v9167_v18 = vld [vmem:[#allocation122_spill] sm:$0xff] }
 0x2d4   : > { %v1885_v31 = vmul.f32 %v9160_v4, %v9149_v35  ;;  %v9166_v35 = vld [vmem:[#allocation211_spill] sm:$0xff]  ;;  %v9174_v22 = vld [vmem:[#allocation53_spill] sm:$0xff] }
 0x2d5   : > { %v2077_v39 = vmul.f32 %v9175_v48, %v9174_v22  ;;  %v9186_v48 = vld [vmem:[#allocation169_spill] sm:$0xff] }
 0x2d6   : > { %v7376_v46 = vpop.permute.xlu0 %4501  ;;  %v7378_v12 = vpop.permute.xlu1 %4506  ;;  %v4840_v24 = vpack.i.bf16 %v1885_v31, %v1884_v50  ;;  %v9178_v31 = vld [vmem:[#allocation167_spill] sm:$0xff] }
 0x2d7   : > { %4826 = vrot.lane.b32.xlu1 %v4825_v53, %s5160_s5  ;;  %4821 = vrot.lane.b32.xlu0 %v4820_v25, %s5160_s5  ;;  %v3863_v25 = vand.u32 %v5121_v0, %v3861_v26  ;;  %v1886_v53 = vmul.f32 %v9167_v18, %v9166_v35  ;;  %v4845_v0 = vpack.i.bf16 %v1901_v54, %v1900_v38  ;;  %v9177_v18 = vld [vmem:[#allocation152_spill] sm:$0xff] }
 0x2d8   : > { %v2076_v17 = vmul.f32 %v9177_v18, %v9176_v62  ;;  %v2093_v50 = vmul.f32 %v9178_v31, %v7135_v59  ;;  %v9179_v54 = vld [vmem:[#allocation168_spill] sm:$0xff]  ;;  %v2095_v18 = vmul.f32 %v9186_v48, %v7151_v60  ;;  %v9187_v31 = vld [vmem:[#allocation170_spill] sm:$0xff] }
 0x2d9   : > { %4422 = vmatprep.subr.bf16.mxu0 %v3863_v25  ;;  %4457 = vmatprep.subr.bf16.mxu1 %v3863_v25  ;;  %v2092_v38 = vmul.f32 %v9179_v54, %v7138_v23  ;;  %v2094_v54 = vmul.f32 %v9187_v31, %v7158_v63  ;;  %v5124_v31 = vld [vmem:[%s6499_s10 + $0x48] sm:$0xff] }
 0x2da   : > { %v7393_v47 = vpop.permute.xlu0 %4511  ;;  %v7395_v3 = vpop.permute.xlu1 %4516  ;;  %4423 = vmatpush3.bf16.msra.mxu0 %v3863_v25  ;;  %4459 = vmatpush3.bf16.msra.mxu1 %v3863_v25  ;;  %v4860_v44 = vpack.i.bf16 %v2077_v39, %v2076_v17  ;;  %v9190_v39 = vld [vmem:[#allocation34_spill] sm:$0xff]  ;;  %v2271_v21 = vmul.f32 %v5124_v31, %v9192_v57  ;;  %v9197_v57 = vld [vmem:[#allocation11_spill] sm:$0xff] }
 0x2db   : > { %4836 = vrot.lane.b32.xlu1 %v4835_v10, %s5156_s24  ;;  %4831 = vrot.lane.b32.xlu0 %v4830_v40, %s5156_s24  ;;  %v4850_v40 = vpack.i.bf16 %v1887_v49, %v1886_v53  ;;  %v4855_v10 = vpack.i.bf16 %v1903_v16, %v1902_v14  ;;  %v9182_v49 = vld [vmem:[#allocation186_spill] sm:$0xff]  ;;  %v9183_v53 = vld [vmem:[#allocation153_spill] sm:$0xff]  ;;  %v9184_v14 = vld [vmem:[#allocation187_spill] sm:$0xff]  ;;  %v2285_v17 = vmul.f32 %v9190_v39, %v6669_v45 }
 0x2dc   : > { %v2079_v16 = vmul.f32 %v9183_v53, %v9182_v49  ;;  %v4875_v53 = vpack.i.bf16 %v2095_v18, %v2094_v54  ;;  %v9196_v45 = vld [vmem:[#allocation10_spill] sm:$0xff]  ;;  %v9198_v39 = vld [vmem:[#allocation12_spill] sm:$0xff] }
 0x2de   : > { %v7407_v26 = vpop.permute.xlu0 %4521  ;;  %v7409_v4 = vpop.permute.xlu1 %4526 }
 0x2df   : > { %9172 = vst [vmem:[#allocation90_spill] sm:$0xff] %v7407_v26  ;;  %9173 = vst [vmem:[#allocation102_spill] sm:$0xff] %v7409_v4  ;;  %4846 = vrot.lane.b32.xlu1 %v4845_v0, %s5157_s25  ;;  %4841 = vrot.lane.b32.xlu0 %v4840_v24, %s5157_s25  ;;  %v9185_v24 = vld [vmem:[#allocation154_spill] sm:$0xff]  ;;  %v9188_v4 = vld [vmem:[#allocation191_spill] sm:$0xff] }
 0x2e0   : > { %v2078_v0 = vmul.f32 %v9185_v24, %v9184_v14  ;;  %v5122_v24 = vld [vmem:[%s6499_s10 + $0x38] sm:$0xff]  ;;  %v5123_v26 = vld [vmem:[%s6499_s10 + $0x30] sm:$0xff] }
 0x2e1   : > { %v2269_v48 = vmul.f32 %v5122_v24, %v9188_v4  ;;  %v2268_v34 = vmul.f32 %v5123_v26, %v9189_v56  ;;  %v9194_v4 = vld [vmem:[#allocation226_spill] sm:$0xff]  ;;  %v9195_v56 = vld [vmem:[#allocation227_spill] sm:$0xff]  ;;  %v830_v24 = vmul.f32 %v9197_v57, %v9176_v62  ;;  %v9206_v62 = vld [vmem:[#allocation57_spill] sm:$0xff] }
 0x2e2   : > { %v7421_v5 = vpop.permute.xlu0 %4531  ;;  %v7423_v25 = vpop.permute.xlu1 %4536  ;;  %v2287_v54 = vmul.f32 %v9194_v4, %v6681_v42  ;;  %v2286_v26 = vmul.f32 %v9195_v56, %v6678_v29  ;;  %v9200_v42 = vld [vmem:[#allocation55_spill] sm:$0xff]  ;;  %v9201_v4 = vld [vmem:[#allocation14_spill] sm:$0xff]  ;;  %v9207_v57 = vld [vmem:[#allocation17_spill] sm:$0xff] }
 0x2e3   : > { %9180 = vst [vmem:[#allocation104_spill] sm:$0xff] %v7421_v5  ;;  %9181 = vst [vmem:[#allocation99_spill] sm:$0xff] %v7423_v25  ;;  %4856 = vrot.lane.b32.xlu1 %v4855_v10, %s5157_s25  ;;  %4851 = vrot.lane.b32.xlu0 %v4850_v40, %s5157_s25  ;;  %v4865_v25 = vpack.i.bf16 %v2093_v50, %v2092_v38  ;;  %v4870_v40 = vpack.i.bf16 %v2079_v16, %v2078_v0  ;;  %v9191_v50 = vld [vmem:[#allocation195_spill] sm:$0xff]  ;;  %v5125_v16 = vld [vmem:[%s6499_s10 + $0x40] sm:$0xff] }
 0x2e4   : > { %v2284_v38 = vmul.f32 %v9191_v50, %v6666_v52  ;;  %v9193_v0 = vld [vmem:[#allocation194_spill] sm:$0xff]  ;;  %v831_v52 = vmul.f32 %v9196_v45, %v9174_v22  ;;  %v833_v50 = vmul.f32 %v9198_v39, %v9182_v49  ;;  %v7473_v58 = vmul.f32 %v9201_v4, %v9200_v42  ;;  %v9204_v22 = vld [vmem:[#allocation56_spill] sm:$0xff] }
 0x2e5   : > { %v2270_v18 = vmul.f32 %v5125_v16, %v9193_v0  ;;  %v9199_v0 = vld [vmem:[#allocation13_spill] sm:$0xff]  ;;  %v9202_v29 = vld [vmem:[#allocation190_spill] sm:$0xff]  ;;  %v9205_v45 = vld [vmem:[#allocation16_spill] sm:$0xff]  ;;  %v7485_v49 = vmul.f32 %v9207_v57, %v9206_v62 }
 0x2e6   : > { %v7435_v5 = vpop.permute.xlu0 %4541  ;;  %v7437_v10 = vpop.permute.xlu1 %4546  ;;  %v832_v37 = vmul.f32 %v9199_v0, %v9184_v14  ;;  %v4885_v13 = vpack.i.bf16 %v2285_v17, %v2284_v38  ;;  %v7481_v6 = vmul.f32 %v9205_v45, %v9204_v22  ;;  %v9208_v14 = vld [vmem:[#allocation26_spill] sm:$0xff]  ;;  %v9209_v0 = vld [vmem:[#allocation91_spill] sm:$0xff]  ;;  %v4895_v38 = vpack.i.bf16 %v2287_v54, %v2286_v26  ;;  %v9213_v45 = vld [vmem:[#allocation64_spill] sm:$0xff] }
 0x2e7   : > { %4866 = vrot.lane.b32.xlu1 %v4865_v25, %s5158_s26  ;;  %4861 = vrot.lane.b32.xlu0 %v4860_v44, %s5158_s26  ;;  %v7489_v39 = vmul.f32 %v9208_v14, %v7135_v59  ;;  %v7492_v4 = vmul.f32 %v5124_v31, %v9209_v0  ;;  %v4890_v17 = vpack.i.bf16 %v2271_v21, %v2270_v18  ;;  %v9214_v57 = vld [vmem:[#allocation65_spill] sm:$0xff]  ;;  %v9215_v14 = vld [vmem:[#allocation212_spill] sm:$0xff]  ;;  %v9216_v0 = vld [vmem:[#allocation66_spill] sm:$0xff]  ;;  %v4504_v26 = vunpack.i.h.bf16 %v7376_v46 }
 0x2e8   : > { %v2461_v59 = vmul.f32 %v9213_v45, %v9164_v27  ;;  %v2460_v31 = vmul.f32 %v9214_v57, %v9166_v35  ;;  %v2477_v21 = vmul.f32 %v7261_v33, %v9168_v9  ;;  %v9219_v18 = vld [vmem:[#allocation230_spill] sm:$0xff]  ;;  %v9220_v54 = vld [vmem:[#allocation231_spill] sm:$0xff]  ;;  %v9224_v45 = vld [vmem:[#allocation93_spill] sm:$0xff] }
 0x2e9   : > { %v2479_v27 = vmul.f32 %v7275_v8, %v9219_v18  ;;  %v2478_v35 = vmul.f32 %v7277_v32, %v9220_v54  ;;  %v7534_v32 = vld [vmem:[%s6499_s10 + $0x58] sm:$0xff]  ;;  %v3522_v41 = vsel %vm3512_vm4, %v831_v52, %v4504_v26  ;;  %v4513_v52 = vunpack.i.l.bf16 %v7393_v47 }
 0x2ea   : > { %v7451_v25 = vpop.permute.xlu0 %4551  ;;  %v7453_v44 = vpop.permute.xlu1 %4556  ;;  %v9225_v57 = vld [vmem:[#allocation107_spill] sm:$0xff] }
 0x2eb   : > { %4876 = vrot.lane.b32.xlu1 %v4875_v53, %s5158_s26  ;;  %4871 = vrot.lane.b32.xlu0 %v4870_v40, %s5158_s26  ;;  %v9203_v53 = vld [vmem:[#allocation15_spill] sm:$0xff]  ;;  %v4880_v40 = vpack.i.bf16 %v2269_v48, %v2268_v34  ;;  %v9212_v34 = vld [vmem:[#allocation92_spill] sm:$0xff]  ;;  %v4915_v15 = vpack.i.bf16 %v2479_v27, %v2478_v35  ;;  %v7579_v27 = vld [vmem:[%s6499_s10 + $0xd0] sm:$0xff] }
 0x2ec   : > { %v7477_v56 = vmul.f32 %v9203_v53, %v9202_v29  ;;  %v7499_v48 = vmul.f32 %v5125_v16, %v9212_v34  ;;  %v4508_v34 = vunpack.i.l.bf16 %v7378_v12 }
 0x2ee   : > { %v7494_v36 = vpop.permute.xlu0 %4561  ;;  %v7496_v53 = vpop.permute.xlu1 %4566 }
 0x2ef   : > { %9210 = vst [vmem:[#allocation101_spill] sm:$0xff] %v7494_v36  ;;  %9211 = vst [vmem:[#allocation115_spill] sm:$0xff] %v7496_v53  ;;  %4886 = vrot.lane.b32.xlu1 %v4885_v13, %s5159_s27  ;;  %4881 = vrot.lane.b32.xlu0 %v4880_v40, %s5159_s27  ;;  %v2463_v36 = vmul.f32 %v9216_v0, %v9215_v14  ;;  %v9217_v53 = vld [vmem:[#allocation213_spill] sm:$0xff]  ;;  %v2476_v13 = vmul.f32 %v7263_v19, %v9170_v30  ;;  %v4503_v40 = vunpack.i.l.bf16 %v7376_v46  ;;  %v9223_v19 = vld [vmem:[#allocation27_spill] sm:$0xff] }
 0x2f0   : > { %v2462_v16 = vmul.f32 %v9218_v7, %v9217_v53  ;;  %v4509_v7 = vunpack.i.h.bf16 %v7378_v12  ;;  %v7529_v30 = vmul.f32 %v9223_v19, %v7138_v23  ;;  %v7538_v46 = vmul.f32 %v7534_v32, %v9224_v45  ;;  %v5127_v12 = vld [vmem:[%s6499_s10 + $0xc8] sm:$0xff] }
 0x2f1   : > { %v1713_v0 = vmul.f32 %v5127_v12, %v9225_v57  ;;  %v4900_v19 = vpack.i.bf16 %v2461_v59, %v2460_v31  ;;  %v4905_v11 = vpack.i.bf16 %v2477_v21, %v2476_v13  ;;  %v3521_v45 = vsel %vm3512_vm4, %v830_v24, %v4503_v40  ;;  %v7569_v31 = vld [vmem:[%s6499_s10 + $0x50] sm:$0xff]  ;;  %v7574_v13 = vld [vmem:[%s6499_s10 + $0xd8] sm:$0xff] }
 0x2f2   : > { %v7523_v33 = vpop.permute.xlu0 %4571  ;;  %v7525_v9 = vpop.permute.xlu1 %4576  ;;  %v4910_v8 = vpack.i.bf16 %v2463_v36, %v2462_v16  ;;  %v4514_v36 = vunpack.i.h.bf16 %v7393_v47  ;;  %v4519_v24 = vunpack.i.h.bf16 %v7395_v3  ;;  %v9227_v16 = vld [vmem:[#allocation94_spill] sm:$0xff] }
 0x2f3   : > { %9221 = vst [vmem:[#allocation116_spill] sm:$0xff] %v7523_v33  ;;  %9222 = vst [vmem:[#allocation131_spill] sm:$0xff] %v7525_v9  ;;  %4896 = vrot.lane.b32.xlu1 %v4895_v38, %s5159_s27  ;;  %4891 = vrot.lane.b32.xlu0 %v4890_v17, %s5159_s27  ;;  %v5128_v9 = vld [vmem:[%s6499_s10 + $0xc0] sm:$0xff]  ;;  %v3524_v38 = vsel %vm3512_vm4, %v833_v50, %v4509_v7  ;;  %v3523_v17 = vsel %vm3512_vm4, %v832_v37, %v4508_v34  ;;  %v4518_v37 = vunpack.i.l.bf16 %v7395_v3  ;;  %v9228_v3 = vld [vmem:[#allocation109_spill] sm:$0xff] }
 0x2f4   : > { %v9226_v33 = vld [vmem:[#allocation108_spill] sm:$0xff]  ;;  %v1698_v47 = vmul.f32 %v7569_v31, %v9227_v16 }
 0x2f5   : > { %v1712_v23 = vmul.f32 %v5128_v9, %v9226_v33  ;;  %v9234_v16 = vld [vmem:[#allocation124_spill] sm:$0xff] }
 0x2f6   : > { %v4582_v61 = vpop.permute.xlu0 %4581  ;;  %v4587_v12 = vpop.permute.xlu1 %4586 }
 0x2f7   : > { %v4584_v57 = vunpack.i.h.bf16 %v4582_v61  ;;  %v4583_v1 = vunpack.i.l.bf16 %v4582_v61  ;;  %v4589_v33 = vunpack.i.h.bf16 %v4587_v12  ;;  %v4588_v9 = vunpack.i.l.bf16 %v4587_v12  ;;  %4906 = vrot.lane.b32.xlu1 %v4905_v11, %s5160_s5  ;;  %4901 = vrot.lane.b32.xlu0 %v4900_v19, %s5160_s5 }
 0x2f8   : > { %v4925_v21 = vpack.i.bf16 %v1713_v0, %v1712_v23  ;;  %v3526_v0 = vsel %vm3512_vm4, %v7473_v58, %v4514_v36  ;;  %v3525_v23 = vsel %vm3512_vm4, %v7477_v56, %v4513_v52  ;;  %v9230_v56 = vld [vmem:[#allocation28_spill] sm:$0xff]  ;;  %v9233_v36 = vld [vmem:[#allocation123_spill] sm:$0xff] }
 0x2f9   : > { %v7557_v50 = vsel %vm3545_vm5, %v3522_v41, %v4584_v57  ;;  %v7560_v61 = vsel %vm3545_vm5, %v3521_v45, %v4583_v1  ;;  %v7563_v59 = vsel %vm3545_vm5, %v3523_v17, %v4588_v9  ;;  %v7566_v11 = vsel %vm3545_vm5, %v3524_v38, %v4589_v33  ;;  %v9229_v1 = vld [vmem:[#allocation110_spill] sm:$0xff] }
 0x2fa   : > { %v1715_v41 = vmul.f32 %v7574_v13, %v9228_v3  ;;  %v1714_v35 = vmul.f32 %v7579_v27, %v9229_v1  ;;  %v4592_v26 = vpop.permute.xlu0 %4591  ;;  %v4597_v40 = vpop.permute.xlu1 %4596  ;;  %v3528_v38 = vsel %vm3512_vm4, %v7481_v6, %v4519_v24  ;;  %v3527_v17 = vsel %vm3512_vm4, %v7485_v49, %v4518_v37  ;;  %v9231_v6 = vld [vmem:[#allocation29_spill] sm:$0xff]  ;;  %v9232_v49 = vld [vmem:[#allocation30_spill] sm:$0xff]  ;;  %v9235_v1 = vld [vmem:[#allocation216_spill] sm:$0xff] }
 0x2fb   : > { %v4594_v7 = vunpack.i.h.bf16 %v4592_v26  ;;  %v4593_v34 = vunpack.i.l.bf16 %v4592_v26  ;;  %v4599_v19 = vunpack.i.h.bf16 %v4597_v40  ;;  %v4598_v45 = vunpack.i.l.bf16 %v4597_v40  ;;  %4916 = vrot.lane.b32.xlu1 %v4915_v15, %s5160_s5  ;;  %4911 = vrot.lane.b32.xlu0 %v4910_v8, %s5160_s5  ;;  %v9236_v26 = vld [vmem:[#allocation125_spill] sm:$0xff] }
 0x2fc   : > { %v849_v8 = vmul.f32 %v9230_v56, %v7151_v60  ;;  %v848_v33 = vmul.f32 %v9231_v6, %v7158_v63  ;;  %v7611_v9 = vmul.f32 %v9232_v49, %v7161_v55  ;;  %v1889_v52 = vmul.f32 %v9233_v36, %v9215_v14  ;;  %v9237_v40 = vld [vmem:[#allocation217_spill] sm:$0xff]  ;;  %v9240_v14 = vld [vmem:[#allocation139_spill] sm:$0xff]  ;;  %v9245_v56 = vld [vmem:[#allocation142_spill] sm:$0xff] }
 0x2fd   : > { %v7594_v12 = vsel %vm3545_vm5, %v3526_v0, %v4594_v7  ;;  %v7597_v57 = vsel %vm3545_vm5, %v3525_v23, %v4593_v34  ;;  %v7600_v15 = vsel %vm3545_vm5, %v3527_v17, %v4598_v45  ;;  %v7603_v58 = vsel %vm3545_vm5, %v3528_v38, %v4599_v19  ;;  %v9238_v7 = vld [vmem:[#allocation126_spill] sm:$0xff]  ;;  %v9241_v45 = vld [vmem:[#allocation140_spill] sm:$0xff]  ;;  %v9243_v23 = vld [vmem:[#allocation141_spill] sm:$0xff] }
 0x2fe   : > { %v7615_v24 = vpop.permute.xlu0 %4601  ;;  %v7617_v37 = vpop.permute.xlu1 %4606  ;;  %v1888_v3 = vmul.f32 %v9234_v16, %v9217_v53  ;;  %v1891_v60 = vmul.f32 %v9236_v26, %v9235_v1  ;;  %v1890_v63 = vmul.f32 %v9238_v7, %v9237_v40  ;;  %v9239_v34 = vpack.i.bf16 %v7492_v4, %v7499_v48  ;;  %v9242_v53 = vld [vmem:[#allocation41_spill] sm:$0xff]  ;;  %v9244_v17 = vld [vmem:[#allocation42_spill] sm:$0xff]  ;;  %v9246_v36 = vld [vmem:[#allocation155_spill] sm:$0xff] }
 0x2ff   : > { %4926 = vrot.lane.b32.xlu1 %v4925_v21, %s5156_s24  ;;  %v1905_v19 = vmul.f32 %v9240_v14, %v9219_v18  ;;  %v1904_v0 = vmul.f32 %v9241_v45, %v9220_v54  ;;  %v1907_v38 = vmul.f32 %v9243_v23, %v9242_v53  ;;  %v1906_v6 = vmul.f32 %v9245_v56, %v9244_v17  ;;  %v9247_v4 = vld [vmem:[#allocation156_spill] sm:$0xff] }
 0x300   : > { %4921 = vrot.lane.b32.xlu0 %v9239_v34, %s5156_s24  ;;  %v4930_v49 = vpack.i.bf16 %v7538_v46, %v1698_v47  ;;  %v4935_v21 = vpack.i.bf16 %v1715_v41, %v1714_v35  ;;  %v7641_v16 = vmul.f32 %v9246_v36, %v9200_v42  ;;  %v7645_v48 = vmul.f32 %v9247_v4, %v9202_v29  ;;  %v9250_v47 = vld [vmem:[#allocation31_spill] sm:$0xff]  ;;  %v9251_v41 = vld [vmem:[#allocation32_spill] sm:$0xff]  ;;  %v9252_v29 = vld [vmem:[#allocation33_spill] sm:$0xff] }
 0x301   : > { %v4544_v18 = vunpack.i.h.bf16 %v7435_v5  ;;  %v4543_v54 = vunpack.i.l.bf16 %v7435_v5  ;;  %v4549_v26 = vunpack.i.h.bf16 %v7437_v10  ;;  %v4548_v7 = vunpack.i.l.bf16 %v7437_v10  ;;  %v9253_v36 = vld [vmem:[#allocation157_spill] sm:$0xff] }
 0x302   : > { %v7651_v34 = vpop.permute.xlu0 %4611  ;;  %v7653_v46 = vpop.permute.xlu1 %4616  ;;  %v850_v42 = vmul.f32 %v9250_v47, %v7164_v51  ;;  %v853_v35 = vmul.f32 %v9251_v41, %v7192_v28  ;;  %v852_v14 = vmul.f32 %v9252_v29, %v7195_v43  ;;  %v4940_v5 = vpack.i.bf16 %v1889_v52, %v1888_v3  ;;  %v9254_v47 = vld [vmem:[#allocation171_spill] sm:$0xff] }
 0x303   : > { %9248 = vst [vmem:[#allocation132_spill] sm:$0xff] %v7651_v34  ;;  %9249 = vst [vmem:[#allocation117_spill] sm:$0xff] %v7653_v46  ;;  %4936 = vrot.lane.b32.xlu1 %v4935_v21, %s5156_s24  ;;  %v4950_v45 = vpack.i.bf16 %v1891_v60, %v1890_v63  ;;  %v4945_v10 = vpack.i.bf16 %v1905_v19, %v1904_v0  ;;  %v4955_v23 = vpack.i.bf16 %v1907_v38, %v1906_v6  ;;  %v9255_v46 = vld [vmem:[#allocation172_spill] sm:$0xff] }
 0x304   : > { %4931 = vrot.lane.b32.xlu0 %v4930_v49, %s5156_s24  ;;  %v4960_v56 = vpack.i.bf16 %v7641_v16, %v7645_v48  ;;  %v2083_v4 = vmul.f32 %v9253_v36, %v9204_v22  ;;  %v2097_v41 = vmul.f32 %v9254_v47, %v7161_v55  ;;  %v2096_v29 = vmul.f32 %v9255_v46, %v7164_v51  ;;  %v9256_v48 = vld [vmem:[#allocation158_spill] sm:$0xff] }
 0x305   : > { %v3538_v21 = vsel %vm3512_vm4, %v7489_v39, %v4544_v18  ;;  %v3537_v52 = vsel %vm3512_vm4, %v7529_v30, %v4543_v54  ;;  %v3540_v3 = vsel %vm3512_vm4, %v849_v8, %v4549_v26  ;;  %v3539_v60 = vsel %vm3512_vm4, %v848_v33, %v4548_v7  ;;  %v9257_v54 = vld [vmem:[#allocation173_spill] sm:$0xff] }
 0x306   : > { %v4622_v63 = vpop.permute.xlu0 %4621  ;;  %v4627_v19 = vpop.permute.xlu1 %4626  ;;  %v4554_v55 = vunpack.i.h.bf16 %v7451_v25  ;;  %v4553_v51 = vunpack.i.l.bf16 %v7451_v25  ;;  %v4559_v39 = vunpack.i.h.bf16 %v7453_v44  ;;  %v4558_v30 = vunpack.i.l.bf16 %v7453_v44  ;;  %v9258_v44 = vld [vmem:[#allocation174_spill] sm:$0xff] }
 0x307   : > { %v4624_v0 = vunpack.i.h.bf16 %v4622_v63  ;;  %v4623_v22 = vunpack.i.l.bf16 %v4622_v63  ;;  %v4629_v38 = vunpack.i.h.bf16 %v4627_v19  ;;  %v4628_v6 = vunpack.i.l.bf16 %v4627_v19  ;;  %4946 = vrot.lane.b32.xlu1 %v4945_v10, %s5157_s25  ;;  %v9262_v63 = vld [vmem:[#allocation197_spill] sm:$0xff] }
 0x308   : > { %4941 = vrot.lane.b32.xlu0 %v4940_v5, %s5157_s25  ;;  %v2082_v18 = vmul.f32 %v9256_v48, %v9206_v62  ;;  %v4965_v25 = vpack.i.bf16 %v2097_v41, %v2096_v29  ;;  %v2099_v26 = vmul.f32 %v9257_v54, %v7192_v28  ;;  %v2098_v7 = vmul.f32 %v9258_v44, %v7195_v43  ;;  %v9270_v54 = vld [vmem:[#allocation45_spill] sm:$0xff] }
 0x309   : > { %v7684_v8 = vsel %vm3545_vm5, %v3538_v21, %v4624_v0  ;;  %v7687_v33 = vsel %vm3545_vm5, %v3537_v52, %v4623_v22  ;;  %v7690_v49 = vsel %vm3545_vm5, %v3539_v60, %v4628_v6  ;;  %v7693_v16 = vsel %vm3545_vm5, %v3540_v3, %v4629_v38  ;;  %v9261_v3 = vld [vmem:[#allocation196_spill] sm:$0xff]  ;;  %v9263_v0 = vld [vmem:[#allocation39_spill] sm:$0xff] }
 0x30a   : > { %v4632_v46 = vpop.permute.xlu0 %4631  ;;  %v4637_v5 = vpop.permute.xlu1 %4636  ;;  %v3542_v62 = vsel %vm3512_vm4, %v7611_v9, %v4554_v55  ;;  %v3541_v41 = vsel %vm3512_vm4, %v850_v42, %v4553_v51  ;;  %v3544_v28 = vsel %vm3512_vm4, %v853_v35, %v4559_v39  ;;  %v3543_v43 = vsel %vm3512_vm4, %v852_v14, %v4558_v30  ;;  %v9264_v38 = vld [vmem:[#allocation40_spill] sm:$0xff]  ;;  %v5132_v55 = vld [vmem:[%s6499_s10 + $0x68] sm:$0xff]  ;;  %v9265_v51 = vld [vmem:[#allocation198_spill] sm:$0xff] }
 0x30b   : > { %v4634_v10 = vunpack.i.h.bf16 %v4632_v46  ;;  %v4633_v36 = vunpack.i.l.bf16 %v4632_v46  ;;  %v4639_v47 = vunpack.i.h.bf16 %v4637_v5  ;;  %v4638_v21 = vunpack.i.l.bf16 %v4637_v5  ;;  %4956 = vrot.lane.b32.xlu1 %v4955_v23, %s5157_s25  ;;  %v9272_v46 = vld [vmem:[#allocation179_spill] sm:$0xff] }
 0x30c   : > { %4951 = vrot.lane.b32.xlu0 %v4950_v45, %s5157_s25  ;;  %v4970_v35 = vpack.i.bf16 %v2083_v4, %v2082_v18  ;;  %v4975_v14 = vpack.i.bf16 %v2099_v26, %v2098_v7  ;;  %v2273_v60 = vmul.f32 %v7534_v32, %v9261_v3  ;;  %v2272_v19 = vmul.f32 %v7569_v31, %v9262_v63  ;;  %v9266_v4 = vld [vmem:[#allocation199_spill] sm:$0xff]  ;;  %v9267_v32 = vld [vmem:[#allocation44_spill] sm:$0xff]  ;;  %v5134_v7 = vld [vmem:[%s6499_s10 + $0xe8] sm:$0xff] }
 0x30d   : > { %v7709_v29 = vsel %vm3545_vm5, %v3542_v62, %v4634_v10  ;;  %v7712_v52 = vsel %vm3545_vm5, %v3541_v41, %v4633_v36  ;;  %v7715_v23 = vsel %vm3545_vm5, %v3543_v43, %v4638_v21  ;;  %v7718_v45 = vsel %vm3545_vm5, %v3544_v28, %v4639_v47  ;;  %v9271_v26 = vld [vmem:[#allocation4_spill] sm:$0xff]  ;;  %v9273_v36 = vld [vmem:[#allocation43_spill] sm:$0xff]  ;;  %v9274_v21 = vld [vmem:[#allocation5_spill] sm:$0xff] }
 0x30e   : > { %v7720_v9 = vpop.permute.xlu1 %4646  ;;  %v7722_v42 = vpop.permute.xlu0 %4641  ;;  %v2289_v22 = vmul.f32 %v7574_v13, %v9263_v0  ;;  %v2288_v6 = vmul.f32 %v7579_v27, %v9264_v38  ;;  %v2275_v39 = vmul.f32 %v5132_v55, %v9265_v51  ;;  %v9269_v13 = vld [vmem:[#allocation3_spill] sm:$0xff]  ;;  %v7754_v44 = vmul.f32 %v9271_v26, %v9270_v54  ;;  %v5135_v10 = vld [vmem:[%s6499_s10 + $0xe0] sm:$0xff]  ;;  %v9275_v41 = vld [vmem:[#allocation46_spill] sm:$0xff] }
 0x30f   : > { %9259 = vst [vmem:[#allocation118_spill] sm:$0xff] %v7720_v9  ;;  %9260 = vst [vmem:[#allocation35_spill] sm:$0xff] %v7722_v42  ;;  %4966 = vrot.lane.b32.xlu1 %v4965_v25, %s5158_s26  ;;  %v9268_v25 = vld [vmem:[#allocation2_spill] sm:$0xff]  ;;  %v7750_v27 = vmul.f32 %v9269_v13, %v7182_v2  ;;  %v2291_v5 = vmul.f32 %v5134_v7, %v9272_v46  ;;  %v2290_v47 = vmul.f32 %v5135_v10, %v9273_v36  ;;  %v9277_v3 = vld [vmem:[#allocation48_spill] sm:$0xff] }
 0x310   : > { %4961 = vrot.lane.b32.xlu0 %v4960_v56, %s5158_s26  ;;  %v5133_v56 = vld [vmem:[%s6499_s10 + $0x60] sm:$0xff]  ;;  %v7744_v31 = vmul.f32 %v9268_v25, %v9267_v32  ;;  %v7762_v62 = vmul.f32 %v9274_v21, %v7187_v20  ;;  %v9276_v28 = vld [vmem:[#allocation6_spill] sm:$0xff]  ;;  %v9278_v63 = vld [vmem:[#allocation7_spill] sm:$0xff] }
 0x311   : > { %v2274_v30 = vmul.f32 %v5133_v56, %v9266_v4  ;;  %v7766_v43 = vmul.f32 %v9276_v28, %v9275_v41  ;;  %v7770_v0 = vmul.f32 %v9278_v63, %v9277_v3  ;;  %v9279_v51 = vld [vmem:[#allocation70_spill] sm:$0xff]  ;;  %v9280_v25 = vld [vmem:[#allocation71_spill] sm:$0xff]  ;;  %v9291_v3 = vld [vmem:[#allocation72_spill] sm:$0xff] }
 0x312   : > { %v7738_v48 = vpop.permute.xlu1 %4656  ;;  %v7740_v18 = vpop.permute.xlu0 %4651  ;;  %v2465_v4 = vmul.f32 %v9279_v51, %v9235_v1  ;;  %v2464_v13 = vmul.f32 %v9280_v25, %v9237_v40  ;;  %v9289_v28 = vld [vmem:[#allocation95_spill] sm:$0xff] }
 0x313   : > { %4976 = vrot.lane.b32.xlu1 %v4975_v14, %s5158_s26  ;;  %v4985_v14 = vpack.i.bf16 %v2289_v22, %v2288_v6  ;;  %v4990_v38 = vpack.i.bf16 %v2275_v39, %v2274_v30  ;;  %v9282_v6 = vld [vmem:[#allocation79_spill] sm:$0xff] }
 0x314   : > { %4971 = vrot.lane.b32.xlu0 %v4970_v35, %s5158_s26  ;;  %v4980_v35 = vpack.i.bf16 %v2273_v60, %v2272_v19  ;;  %v4995_v60 = vpack.i.bf16 %v2291_v5, %v2290_v47  ;;  %v9281_v19 = vld [vmem:[#allocation78_spill] sm:$0xff]  ;;  %v2480_v1 = vmul.f32 %v9282_v6, %v9244_v17  ;;  %v9288_v47 = vld [vmem:[#allocation9_spill] sm:$0xff] }
 0x315   : > { %v2481_v22 = vmul.f32 %v9281_v19, %v9242_v53  ;;  %v9287_v53 = vld [vmem:[#allocation52_spill] sm:$0xff]  ;;  %v9297_v19 = vld [vmem:[#allocation81_spill] sm:$0xff] }
 0x316   : > { %v4667_v26 = vpop.permute.xlu1 %4666  ;;  %v4662_v46 = vpop.permute.xlu0 %4661  ;;  %v7800_v17 = vmul.f32 %v9288_v47, %v9287_v53 }
 0x317   : > { %v4669_v36 = vunpack.i.h.bf16 %v4667_v26  ;;  %v4668_v21 = vunpack.i.l.bf16 %v4667_v26  ;;  %v4664_v34 = vunpack.i.h.bf16 %v4662_v46  ;;  %v4663_v41 = vunpack.i.l.bf16 %v4662_v46  ;;  %4986 = vrot.lane.b32.xlu1 %v4985_v14, %s5159_s27  ;;  %v9290_v14 = vld [vmem:[#allocation218_spill] sm:$0xff]  ;;  %v9292_v26 = vld [vmem:[#allocation219_spill] sm:$0xff]  ;;  %v9293_v46 = vld [vmem:[#allocation73_spill] sm:$0xff] }
 0x318   : > { %4981 = vrot.lane.b32.xlu0 %v4980_v35, %s5159_s27  ;;  %v7803_v35 = vmul.f32 %v5132_v55, %v9289_v28  ;;  %v2466_v55 = vmul.f32 %v9293_v46, %v9292_v26  ;;  %v5136_v28 = vld [vmem:[%s6499_s10 + $0x78] sm:$0xff] }
 0x319   : > { %v7784_v40 = vsel %vm3578_vm6, %v7563_v59, %v4668_v21  ;;  %v7788_v39 = vsel %vm3578_vm6, %v7566_v11, %v4669_v36  ;;  %v7792_v30 = vsel %vm3578_vm6, %v7557_v50, %v4664_v34  ;;  %v7796_v5 = vsel %vm3578_vm6, %v7560_v61, %v4663_v41  ;;  %v9296_v41 = vld [vmem:[#allocation175_spill] sm:$0xff] }
 0x31a   : > { %9283 = vst [vmem:[#allocation133_spill] sm:$0xff] %v7784_v40  ;;  %9284 = vst [vmem:[#allocation36_spill] sm:$0xff] %v7788_v39  ;;  %v5000_v59 = vpack.i.bf16 %v2465_v4, %v2464_v13  ;;  %v2467_v11 = vmul.f32 %v9291_v3, %v9290_v14  ;;  %v4677_v63 = vpop.permute.xlu1 %4676  ;;  %v4672_v51 = vpop.permute.xlu0 %4671  ;;  %v5005_v36 = vpack.i.bf16 %v2481_v22, %v2480_v1  ;;  %v9294_v4 = vld [vmem:[#allocation178_spill] sm:$0xff]  ;;  %v9295_v13 = vld [vmem:[#allocation80_spill] sm:$0xff] }
 0x31b   : > { %9285 = vst [vmem:[#allocation134_spill] sm:$0xff] %v7792_v30  ;;  %9286 = vst [vmem:[#allocation147_spill] sm:$0xff] %v7796_v5  ;;  %v4679_v50 = vunpack.i.h.bf16 %v4677_v63  ;;  %v4678_v34 = vunpack.i.l.bf16 %v4677_v63  ;;  %v4674_v25 = vunpack.i.h.bf16 %v4672_v51  ;;  %v4673_v61 = vunpack.i.l.bf16 %v4672_v51  ;;  %4996 = vrot.lane.b32.xlu1 %v4995_v60, %s5159_s27  ;;  %v9302_v1 = vld [vmem:[#allocation96_spill] sm:$0xff]  ;;  %v9303_v3 = vld [vmem:[#allocation97_spill] sm:$0xff] }
 0x31c   : > { %4991 = vrot.lane.b32.xlu0 %v4990_v38, %s5159_s27  ;;  %v2483_v21 = vmul.f32 %v9295_v13, %v9294_v4  ;;  %v2482_v6 = vmul.f32 %v9297_v19, %v9296_v41  ;;  %v1700_v47 = vmul.f32 %v5133_v56, %v9302_v1  ;;  %v7834_v63 = vmul.f32 %v5136_v28, %v9303_v3  ;;  %v9304_v51 = vld [vmem:[#allocation98_spill] sm:$0xff] }
 0x31d   : > { %v7817_v53 = vsel %vm3578_vm6, %v7600_v15, %v4678_v34  ;;  %v7821_v60 = vsel %vm3578_vm6, %v7603_v58, %v4679_v50  ;;  %v7825_v38 = vsel %vm3578_vm6, %v7594_v12, %v4674_v25  ;;  %v7829_v22 = vsel %vm3578_vm6, %v7597_v57, %v4673_v61  ;;  %v5137_v15 = vld [vmem:[%s6499_s10 + $0x70] sm:$0xff]  ;;  %v9305_v58 = vld [vmem:[#allocation111_spill] sm:$0xff]  ;;  %v9308_v25 = vld [vmem:[#allocation112_spill] sm:$0xff] }
 0x31e   : > { %9298 = vst [vmem:[#allocation148_spill] sm:$0xff] %v7817_v53  ;;  %9299 = vst [vmem:[#allocation163_spill] sm:$0xff] %v7821_v60  ;;  %v7838_v34 = vmul.f32 %v5137_v15, %v9304_v51  ;;  %v1717_v50 = vmul.f32 %v5134_v7, %v9305_v58  ;;  %v7841_v46 = vpop.permute.xlu1 %4686  ;;  %v7843_v12 = vpop.permute.xlu0 %4681  ;;  %v1716_v13 = vmul.f32 %v5135_v10, %v9308_v25  ;;  %v7847_v57 = vld [vmem:[%s6499_s10 + $0xf8] sm:$0xff]  ;;  %v9309_v61 = vld [vmem:[#allocation113_spill] sm:$0xff] }
 0x31f   : > { %9300 = vst [vmem:[#allocation164_spill] sm:$0xff] %v7825_v38  ;;  %9301 = vst [vmem:[#allocation149_spill] sm:$0xff] %v7829_v22  ;;  %v7851_v56 = vmul.f32 %v7847_v57, %v9309_v61  ;;  %v7854_v19 = vld [vmem:[%s6499_s10 + $0xf0] sm:$0xff]  ;;  %5006 = vrot.lane.b32.xlu1 %v5005_v36, %s5160_s5  ;;  %v9311_v7 = vld [vmem:[#allocation127_spill] sm:$0xff]  ;;  %v5015_v40 = vpack.i.bf16 %v2483_v21, %v2482_v6 }
 0x320   : > { %9306 = vst [vmem:[#allocation150_spill] sm:$0xff] %v7841_v46  ;;  %9307 = vst [vmem:[#allocation165_spill] sm:$0xff] %v7843_v12  ;;  %v9310_v1 = vld [vmem:[#allocation114_spill] sm:$0xff]  ;;  %5001 = vrot.lane.b32.xlu0 %v5000_v59, %s5160_s5  ;;  %v7862_v51 = vmul.f32 %v9311_v7, %v9290_v14  ;;  %v9312_v10 = vld [vmem:[#allocation128_spill] sm:$0xff]  ;;  %v5010_v7 = vpack.i.bf16 %v2467_v11, %v2466_v55 }
 0x321   : > { %v1718_v3 = vmul.f32 %v7854_v19, %v9310_v1  ;;  %v7866_v58 = vmul.f32 %v9312_v10, %v9292_v26  ;;  %v9313_v25 = vld [vmem:[#allocation222_spill] sm:$0xff]  ;;  %v9314_v61 = vld [vmem:[#allocation129_spill] sm:$0xff]  ;;  %v9315_v60 = vld [vmem:[#allocation223_spill] sm:$0xff] }
 0x322   : > { %v7870_v53 = vmul.f32 %v9314_v61, %v9313_v25  ;;  %v9316_v38 = vld [vmem:[#allocation130_spill] sm:$0xff]  ;;  %v9317_v36 = vld [vmem:[#allocation143_spill] sm:$0xff]  ;;  %v9318_v59 = vld [vmem:[#allocation144_spill] sm:$0xff]  ;;  %v7902_v11 = vpop.permute.xlu0 %4691 }
 0x323   : > { %v7874_v22 = vmul.f32 %v9316_v38, %v9315_v60  ;;  %v7878_v1 = vmul.f32 %v9317_v36, %v9294_v4  ;;  %v7882_v14 = vmul.f32 %v9318_v59, %v9296_v41  ;;  %v9319_v26 = vld [vmem:[#allocation200_spill] sm:$0xff]  ;;  %v9320_v10 = vld [vmem:[#allocation145_spill] sm:$0xff]  ;;  %v9322_v30 = vld [vmem:[#allocation146_spill] sm:$0xff]  ;;  %v7900_v41 = vpop.permute.xlu1 %4696  ;;  %9328 = vst [vmem:[#allocation184_spill] sm:$0xff] %v7902_v11  ;;  %5016 = vrot.lane.b32.xlu1 %v5015_v40, %s5160_s5 }
 0x324   : > { %v7886_v39 = vmul.f32 %v9320_v10, %v9319_v26  ;;  %v9321_v61 = vld [vmem:[#allocation201_spill] sm:$0xff]  ;;  %v9323_v38 = vld [vmem:[#allocation58_spill] sm:$0xff]  ;;  %v9324_v12 = vld [vmem:[#allocation159_spill] sm:$0xff]  ;;  %9327 = vst [vmem:[#allocation166_spill] sm:$0xff] %v7900_v41  ;;  %5011 = vrot.lane.b32.xlu0 %v5010_v7, %s5160_s5  ;;  %v5020_v11 = vpack.i.bf16 %v7803_v35, %v1700_v47  ;;  %v5025_v40 = vpack.i.bf16 %v1717_v50, %v1716_v13 }
 0x325   : > { %v7890_v5 = vmul.f32 %v9322_v30, %v9321_v61  ;;  %v7894_v46 = vmul.f32 %v9324_v12, %v9323_v38  ;;  %v9325_v4 = vld [vmem:[#allocation59_spill] sm:$0xff]  ;;  %v9326_v36 = vld [vmem:[#allocation160_spill] sm:$0xff]  ;;  %v9329_v55 = vld [vmem:[#allocation18_spill] sm:$0xff]  ;;  %v5035_v7 = vpack.i.bf16 %v7851_v56, %v1718_v3 }
 0x326   : > { %v7898_v42 = vmul.f32 %v9326_v36, %v9325_v4  ;;  %v7906_v21 = vmul.f32 %v9329_v55, %v9323_v38  ;;  %v9330_v6 = vld [vmem:[#allocation19_spill] sm:$0xff]  ;;  %v9331_v59 = vld [vmem:[#allocation60_spill] sm:$0xff]  ;;  %v9333_v36 = vld [vmem:[#allocation61_spill] sm:$0xff] }
 0x327   : > { %v7910_v30 = vmul.f32 %v9330_v6, %v9325_v4  ;;  %v9332_v10 = vld [vmem:[#allocation20_spill] sm:$0xff]  ;;  %v9334_v41 = vld [vmem:[#allocation21_spill] sm:$0xff]  ;;  %5026 = vrot.lane.b32.xlu1 %v5025_v40, %s5156_s24 }
 0x328   : > { %v7914_v12 = vmul.f32 %v9332_v10, %v9331_v59  ;;  %v7920_v9 = vmul.f32 %v9334_v41, %v9333_v36  ;;  %v9335_v38 = vld [vmem:[#allocation176_spill] sm:$0xff]  ;;  %v9336_v4 = vld [vmem:[#allocation177_spill] sm:$0xff]  ;;  %v5030_v10 = vpack.i.bf16 %v7834_v63, %v7838_v34  ;;  %v5040_v41 = vpack.i.bf16 %v7862_v51, %v7866_v58  ;;  %v4702_v63 = vpop.permute.xlu0 %4701  ;;  %5021 = vrot.lane.b32.xlu0 %v5020_v11, %s5156_s24  ;;  %v9338_v58 = vld [vmem:[#allocation162_spill] sm:$0xff] }
 0x329   : > { %v7925_v55 = vmul.f32 %v9335_v38, %v7187_v20  ;;  %v7929_v6 = vmul.f32 %v9336_v4, %v7182_v2  ;;  %v5045_v20 = vpack.i.bf16 %v7878_v1, %v7882_v14  ;;  %v4707_v38 = vpop.permute.xlu1 %4706  ;;  %v4704_v13 = vunpack.i.h.bf16 %v4702_v63  ;;  %v9337_v3 = vld [vmem:[#allocation161_spill] sm:$0xff]  ;;  %v9339_v4 = vld [vmem:[#allocation180_spill] sm:$0xff] }
 0x32a   : > { %v4709_v34 = vunpack.i.h.bf16 %v4707_v38  ;;  %v4708_v50 = vunpack.i.l.bf16 %v4707_v38  ;;  %v4703_v56 = vunpack.i.l.bf16 %v4702_v63  ;;  %v7948_v51 = vmul.f32 %v9337_v3, %v9331_v59  ;;  %v9344_v3 = vld [vmem:[#allocation204_spill] sm:$0xff] }
 0x32b   : > { %v7952_v1 = vmul.f32 %v9338_v58, %v9333_v36  ;;  %v7958_v38 = vmul.f32 %v9339_v4, %v9270_v54  ;;  %v7970_v59 = vsel %vm3578_vm6, %v7684_v8, %v4704_v13  ;;  %v9343_v54 = vld [vmem:[#allocation181_spill] sm:$0xff]  ;;  %5036 = vrot.lane.b32.xlu1 %v5035_v7, %s5156_s24 }
 0x32c   : > { %v7962_v40 = vsel %vm3578_vm6, %v7690_v49, %v4708_v50  ;;  %v7966_v11 = vsel %vm3578_vm6, %v7693_v16, %v4709_v34  ;;  %9342 = vst [vmem:[#allocation215_spill] sm:$0xff] %v7970_v59  ;;  %v7974_v36 = vsel %vm3578_vm6, %v7687_v33, %v4703_v56  ;;  %v7978_v63 = vmul.f32 %v9343_v54, %v9267_v32  ;;  %v9345_v50 = vld [vmem:[#allocation205_spill] sm:$0xff]  ;;  %v9346_v34 = vld [vmem:[#allocation208_spill] sm:$0xff]  ;;  %v4712_v13 = vpop.permute.xlu0 %4711 }
 0x32d   : > { %9340 = vst [vmem:[#allocation185_spill] sm:$0xff] %v7962_v40  ;;  %9341 = vst [vmem:[#allocation214_spill] sm:$0xff] %v7966_v11  ;;  %v7981_v49 = vmul.f32 %v5136_v28, %v9344_v3  ;;  %v7984_v58 = vmul.f32 %v5137_v15, %v9345_v50  ;;  %v5140_v16 = vld [vmem:[%s6499_s10 + $0x88] sm:$0xff]  ;;  %v4717_v8 = vpop.permute.xlu1 %4716  ;;  %v4714_v33 = vunpack.i.h.bf16 %v4712_v13  ;;  %v4713_v56 = vunpack.i.l.bf16 %v4712_v13  ;;  %5031 = vrot.lane.b32.xlu0 %v5030_v10, %s5156_s24  ;;  %v5141_v32 = vld [vmem:[%s6499_s10 + $0x80] sm:$0xff] }
 0x32e   : > { %v7988_v4 = vmul.f32 %v5140_v16, %v9346_v34  ;;  %v4719_v2 = vunpack.i.h.bf16 %v4717_v8  ;;  %v4718_v14 = vunpack.i.l.bf16 %v4717_v8  ;;  %v9347_v28 = vld [vmem:[#allocation209_spill] sm:$0xff]  ;;  %v9348_v15 = vld [vmem:[#allocation182_spill] sm:$0xff]  ;;  %v9349_v50 = vld [vmem:[#allocation88_spill] sm:$0xff] }
 0x32f   : > { %v7994_v54 = vmul.f32 %v5141_v32, %v9347_v28  ;;  %v7998_v3 = vmul.f32 %v7847_v57, %v9348_v15  ;;  %v4494_v16 = vunpack.i.h.bf16 %v9349_v50  ;;  %v4493_v34 = vunpack.i.l.bf16 %v9349_v50  ;;  %v9354_v13 = vld [vmem:[#allocation47_spill] sm:$0xff]  ;;  %v9355_v28 = vld [vmem:[#allocation100_spill] sm:$0xff]  ;;  %5046 = vrot.lane.b32.xlu1 %v5045_v20, %s5157_s25  ;;  %v9365_v11 = vld [vmem:[#allocation77_spill] sm:$0xff] }
 0x330   : > { %v8004_v8 = vsel %vm3578_vm6, %v7715_v23, %v4718_v14  ;;  %v8008_v10 = vsel %vm3578_vm6, %v7718_v45, %v4719_v2  ;;  %v8012_v7 = vsel %vm3578_vm6, %v7709_v29, %v4714_v33  ;;  %v8016_v57 = vsel %vm3578_vm6, %v7712_v52, %v4713_v56  ;;  %v9356_v23 = vld [vmem:[#allocation116_spill] sm:$0xff]  ;;  %v8027_v2 = vpop.permute.xlu0 %4721  ;;  %v5142_v29 = vld [vmem:[%s6499_s10 + $0x8] sm:$0xff]  ;;  %v9358_v56 = vld [vmem:[#allocation50_spill] sm:$0xff] }
 0x331   : > { %9350 = vst [vmem:[#allocation188_spill] sm:$0xff] %v8004_v8  ;;  %9351 = vst [vmem:[#allocation189_spill] sm:$0xff] %v8008_v10  ;;  %v8020_v32 = vmul.f32 %v7854_v19, %v9354_v13  ;;  %v4498_v15 = vunpack.i.l.bf16 %v9355_v28  ;;  %v4574_v14 = vunpack.i.h.bf16 %v9356_v23  ;;  %v4573_v50 = vunpack.i.l.bf16 %v9356_v23  ;;  %v8025_v45 = vpop.permute.xlu1 %4726  ;;  %v9357_v33 = vld [vmem:[#allocation49_spill] sm:$0xff]  ;;  %v5143_v52 = vld [vmem:[%s6499_s10] sm:$0xff]  ;;  %5041 = vrot.lane.b32.xlu0 %v5040_v41, %s5157_s25 }
 0x332   : > { %9352 = vst [vmem:[#allocation220_spill] sm:$0xff] %v8012_v7  ;;  %9353 = vst [vmem:[#allocation221_spill] sm:$0xff] %v8016_v57  ;;  %v8031_v35 = vmul.f32 %v5142_v29, %v9357_v33  ;;  %v8035_v47 = vmul.f32 %v5143_v52, %v9358_v56  ;;  %v9359_v19 = vld [vmem:[#allocation74_spill] sm:$0xff]  ;;  %v9360_v10 = vld [vmem:[#allocation131_spill] sm:$0xff]  ;;  %v4658_v29 = vunpack.i.l.bf16 %v7738_v48  ;;  %v4654_v33 = vunpack.i.h.bf16 %v7740_v18 }
 0x333   : > { %v8039_v13 = vmul.f32 %v9359_v19, %v9313_v25  ;;  %v4578_v8 = vunpack.i.l.bf16 %v9360_v10  ;;  %v9361_v23 = vld [vmem:[#allocation75_spill] sm:$0xff]  ;;  %v4653_v52 = vunpack.i.l.bf16 %v7740_v18  ;;  %v9362_v56 = vld [vmem:[#allocation224_spill] sm:$0xff]  ;;  %v9364_v19 = vld [vmem:[#allocation225_spill] sm:$0xff]  ;;  %v3517_v41 = vsel %vm3512_vm4, %v7770_v0, %v4493_v34 }
 0x334   : > { %v8046_v7 = vmul.f32 %v9361_v23, %v9315_v60  ;;  %v9363_v57 = vld [vmem:[#allocation76_spill] sm:$0xff]  ;;  %v8057_v40 = vmul.f32 %v9365_v11, %v9364_v19  ;;  %v3518_v60 = vsel %vm3512_vm4, %v7766_v43, %v4494_v16  ;;  %v3519_v20 = vsel %vm3512_vm4, %v7800_v17, %v4498_v15  ;;  %v9368_v16 = vld [vmem:[#allocation82_spill] sm:$0xff] }
 0x335   : > { %v8053_v25 = vmul.f32 %v9363_v57, %v9362_v56  ;;  %v3551_v23 = vsel %vm3545_vm5, %v3518_v60, %v4574_v14  ;;  %v3550_v18 = vsel %vm3545_vm5, %v3517_v41, %v4573_v50  ;;  %v8067_v57 = vpop.permute.xlu1 %4736  ;;  %v4732_v56 = vpop.permute.xlu0 %4731  ;;  %v3552_v11 = vsel %vm3545_vm5, %v3519_v20, %v4578_v8  ;;  %v9369_v50 = vld [vmem:[#allocation83_spill] sm:$0xff]  ;;  %v9373_v60 = vld [vmem:[#allocation85_spill] sm:$0xff]  ;;  %v9374_v20 = vld [vmem:[#allocation86_spill] sm:$0xff] }
 0x336   : > { %v4738_v19 = vunpack.i.l.bf16 %v8067_v57  ;;  %v4734_v59 = vunpack.i.h.bf16 %v4732_v56  ;;  %v4733_v0 = vunpack.i.l.bf16 %v4732_v56  ;;  %v9366_v43 = vpack.i.bf16 %v7886_v39, %v7890_v5 }
 0x337   : > { %v9367_v17 = vpack.i.bf16 %v7870_v53, %v7874_v22  ;;  %v8081_v34 = vmul.f32 %v9368_v16, %v9319_v26  ;;  %v3585_v8 = vsel %vm3578_vm6, %v3552_v11, %v4658_v29  ;;  %v3584_v15 = vsel %vm3578_vm6, %v3551_v23, %v4654_v33  ;;  %v9370_v22 = vld [vmem:[#allocation202_spill] sm:$0xff]  ;;  %v9371_v26 = vld [vmem:[#allocation84_spill] sm:$0xff]  ;;  %v9372_v33 = vld [vmem:[#allocation203_spill] sm:$0xff] }
 0x338   : > { %5056 = vrot.lane.b32.xlu1 %v9366_v43, %s5157_s25  ;;  %v3583_v14 = vsel %vm3578_vm6, %v3550_v18, %v4653_v52  ;;  %v8088_v41 = vmul.f32 %v9369_v50, %v9321_v61  ;;  %v8091_v39 = vsel %vm3611_vm7, %v3585_v8, %v4738_v19  ;;  %v8097_v53 = vsel %vm3611_vm7, %v3584_v15, %v4734_v59  ;;  %v9379_v8 = vld [vmem:[#allocation102_spill] sm:$0xff]  ;;  %v9380_v50 = vld [vmem:[#allocation101_spill] sm:$0xff] }
 0x339   : > { %5051 = vrot.lane.b32.xlu0 %v9367_v17, %s5157_s25  ;;  %v8094_v5 = vsel %vm3611_vm7, %v3583_v14, %v4733_v0  ;;  %v8101_v29 = vmul.f32 %v9371_v26, %v9370_v22  ;;  %v8105_v52 = vmul.f32 %v9373_v60, %v9372_v33  ;;  %v4484_v61 = vunpack.i.h.bf16 %v9374_v20  ;;  %v8109_v18 = vpop.permute.xlu1 %4746  ;;  %v8111_v56 = vpop.permute.xlu0 %4741  ;;  %v9375_v0 = vld [vmem:[#allocation87_spill] sm:$0xff] }
 0x33a   : > { %v4483_v23 = vunpack.i.l.bf16 %v9374_v20  ;;  %v5070_v59 = vpack.i.bf16 %v7948_v51, %v7952_v1  ;;  %v5075_v11 = vpack.i.bf16 %v7958_v38, %v7978_v63  ;;  %v5080_v19 = vpack.i.bf16 %v7981_v49, %v7984_v58  ;;  %v9381_v26 = vld [vmem:[#allocation115_spill] sm:$0xff] }
 0x33b   : > { %v4488_v43 = vunpack.i.l.bf16 %v9375_v0  ;;  %v9376_v17 = vpack.i.bf16 %v7925_v55, %v7929_v6  ;;  %v9377_v16 = vpack.i.bf16 %v7894_v46, %v7898_v42  ;;  %v5090_v51 = vpack.i.bf16 %v7988_v4, %v7994_v54  ;;  %v9378_v46 = vld [vmem:[#allocation90_spill] sm:$0xff] }
 0x33c   : > { %v5085_v1 = vpack.i.bf16 %v7998_v3, %v8020_v32  ;;  %v5095_v38 = vpack.i.bf16 %v8031_v35, %v8035_v47  ;;  %v4489_v63 = vunpack.i.h.bf16 %v9375_v0  ;;  %v5100_v55 = vpack.i.bf16 %v8039_v13, %v8046_v7 }
 0x33d   : > { %5066 = vrot.lane.b32.xlu1 %v9376_v17, %s5158_s26  ;;  %5061 = vrot.lane.b32.xlu0 %v9377_v16, %s5158_s26  ;;  %v5110_v6 = vpack.i.bf16 %v8053_v25, %v8057_v40  ;;  %v5105_v42 = vpack.i.bf16 %v8081_v34, %v8088_v41  ;;  %v4524_v49 = vunpack.i.h.bf16 %v9378_v46  ;;  %v5115_v58 = vpack.i.bf16 %v8101_v29, %v8105_v52  ;;  %v8149_v54 = vpop.permute.xlu1 %4756  ;;  %v8151_v3 = vpop.permute.xlu0 %4751 }
 0x33e   : > { %v3513_v4 = vsel %vm3512_vm4, %v7750_v27, %v4483_v23  ;;  %v3514_v35 = vsel %vm3512_vm4, %v7762_v62, %v4484_v61  ;;  %v4523_v47 = vunpack.i.l.bf16 %v9378_v46  ;;  %v3515_v32 = vsel %vm3512_vm4, %v7744_v31, %v4488_v43  ;;  %v9383_v46 = vld [vmem:[#allocation35_spill] sm:$0xff] }
 0x33f   : > { %v4529_v15 = vunpack.i.h.bf16 %v9379_v8  ;;  %v4528_v14 = vunpack.i.l.bf16 %v9379_v8  ;;  %v4564_v22 = vunpack.i.h.bf16 %v9380_v50  ;;  %v3516_v27 = vsel %vm3512_vm4, %v7754_v44, %v4489_v63 }
 0x340   : > { %v4563_v62 = vunpack.i.l.bf16 %v9380_v50  ;;  %v4569_v33 = vunpack.i.h.bf16 %v9381_v26  ;;  %v4568_v60 = vunpack.i.l.bf16 %v9381_v26  ;;  %v3530_v31 = vsel %vm3512_vm4, %v7906_v21, %v4524_v49 }
 0x341   : > { %5076 = vrot.lane.b32.xlu1 %v5075_v11, %s5158_s26  ;;  %5071 = vrot.lane.b32.xlu0 %v5070_v59, %s5158_s26  ;;  %v4604_v20 = vunpack.i.h.bf16 %v7615_v24  ;;  %v4603_v61 = vunpack.i.l.bf16 %v7615_v24  ;;  %v4608_v23 = vunpack.i.l.bf16 %v7617_v37  ;;  %v3529_v59 = vsel %vm3512_vm4, %v7910_v30, %v4523_v47  ;;  %v9382_v11 = vld [vmem:[#allocation118_spill] sm:$0xff]  ;;  %v8175_v17 = vpop.permute.xlu1 %4766  ;;  %v8177_v16 = vpop.permute.xlu0 %4761 }
 0x342   : > { %v4609_v44 = vunpack.i.h.bf16 %v7617_v37  ;;  %v4649_v0 = vunpack.i.h.bf16 %v9382_v11  ;;  %v4648_v43 = vunpack.i.l.bf16 %v9382_v11  ;;  %v3532_v21 = vsel %vm3512_vm4, %v7914_v12, %v4529_v15  ;;  %v9384_v15 = vld [vmem:[#allocation150_spill] sm:$0xff] }
 0x343   : > { %v3531_v24 = vsel %vm3512_vm4, %v7920_v9, %v4528_v14  ;;  %v3547_v63 = vsel %vm3545_vm5, %v3514_v35, %v4564_v22  ;;  %v4644_v30 = vunpack.i.h.bf16 %v9383_v46  ;;  %v3546_v37 = vsel %vm3545_vm5, %v3513_v4, %v4563_v62  ;;  %v9385_v62 = vld [vmem:[#allocation165_spill] sm:$0xff] }
 0x344   : > { %v3548_v49 = vsel %vm3545_vm5, %v3515_v32, %v4568_v60  ;;  %v3549_v47 = vsel %vm3545_vm5, %v3516_v27, %v4569_v33  ;;  %v4643_v12 = vunpack.i.l.bf16 %v9383_v46  ;;  %v3563_v8 = vsel %vm3545_vm5, %v3530_v31, %v4604_v20 }
 0x345   : > { %5086 = vrot.lane.b32.xlu1 %v5085_v1, %s5159_s27  ;;  %5081 = vrot.lane.b32.xlu0 %v5080_v19, %s5159_s27  ;;  %v3562_v9 = vsel %vm3545_vm5, %v3529_v59, %v4603_v61  ;;  %v3564_v35 = vsel %vm3545_vm5, %v3531_v24, %v4608_v23  ;;  %v4688_v14 = vunpack.i.l.bf16 %v9384_v15  ;;  %v3565_v1 = vsel %vm3545_vm5, %v3532_v21, %v4609_v44  ;;  %v8199_v50 = vpop.permute.xlu1 %4776  ;;  %v8201_v22 = vpop.permute.xlu0 %4771 }
 0x346   : > { %v3581_v19 = vsel %vm3578_vm6, %v3548_v49, %v4648_v43  ;;  %v3582_v4 = vsel %vm3578_vm6, %v3549_v47, %v4649_v0  ;;  %v4689_v32 = vunpack.i.h.bf16 %v9384_v15  ;;  %v3580_v27 = vsel %vm3578_vm6, %v3547_v63, %v4644_v30 }
 0x347   : > { %v4684_v26 = vunpack.i.h.bf16 %v9385_v62  ;;  %v4683_v33 = vunpack.i.l.bf16 %v9385_v62  ;;  %v4728_v60 = vunpack.i.l.bf16 %v8025_v45  ;;  %v3579_v31 = vsel %vm3578_vm6, %v3546_v37, %v4643_v12 }
 0x348   : > { %v4729_v20 = vunpack.i.h.bf16 %v8025_v45  ;;  %v4724_v61 = vunpack.i.h.bf16 %v8027_v2  ;;  %v4723_v23 = vunpack.i.l.bf16 %v8027_v2  ;;  %v3597_v59 = vsel %vm3578_vm6, %v3564_v35, %v4688_v14 }
 0x349   : > { %5096 = vrot.lane.b32.xlu1 %v5095_v38, %s5159_s27  ;;  %5091 = vrot.lane.b32.xlu0 %v5090_v51, %s5159_s27  ;;  %v4739_v44 = vunpack.i.h.bf16 %v8067_v57  ;;  %v4748_v11 = vunpack.i.l.bf16 %v8109_v18  ;;  %v4743_v0 = vunpack.i.l.bf16 %v8111_v56  ;;  %v3598_v38 = vsel %vm3578_vm6, %v3565_v1, %v4689_v32  ;;  %v4787_v21 = vpop.permute.xlu1 %4786  ;;  %v8221_v24 = vpop.permute.xlu0 %4781 }
 0x34a   : > { %v4744_v51 = vunpack.i.h.bf16 %v8111_v56  ;;  %v4759_v43 = vunpack.i.h.bf16 %v8149_v54  ;;  %v4758_v45 = vunpack.i.l.bf16 %v8149_v54  ;;  %v3596_v2 = vsel %vm3578_vm6, %v3563_v8, %v4684_v26 }
 0x34b   : > { %v3595_v63 = vsel %vm3578_vm6, %v3562_v9, %v4683_v33  ;;  %v3614_v57 = vsel %vm3611_vm7, %v3581_v19, %v4728_v60  ;;  %v3615_v56 = vsel %vm3611_vm7, %v3582_v4, %v4729_v20  ;;  %v3612_v54 = vsel %vm3611_vm7, %v3579_v31, %v4723_v23 }
 0x34c   : > { %v3613_v46 = vsel %vm3611_vm7, %v3580_v27, %v4724_v61  ;;  %v4753_v30 = vunpack.i.l.bf16 %v8151_v3  ;;  %v3628_v37 = vsel %vm3611_vm7, %v3595_v63, %v4739_v44  ;;  %v3631_v49 = vsel %vm3611_vm7, %v3598_v38, %v4748_v11 }
 0x34d   : > { %5106 = vrot.lane.b32.xlu1 %v5105_v42, %s5160_s5  ;;  %5101 = vrot.lane.b32.xlu0 %v5100_v55, %s5160_s5  ;;  %v3629_v34 = vsel %vm3611_vm7, %v3596_v2, %v4743_v0  ;;  %v4754_v41 = vunpack.i.h.bf16 %v8151_v3  ;;  %v3630_v7 = vsel %vm3611_vm7, %v3597_v59, %v4744_v51  ;;  %v3661_v13 = vsel %vm3644_vm8, %v3628_v37, %v4758_v45  ;;  %v4797_v47 = vpop.permute.xlu1 %4796  ;;  %v4792_v12 = vpop.permute.xlu0 %4791 }
 0x34e   : > { %v3662_v55 = vsel %vm3644_vm8, %v3629_v34, %v4759_v43  ;;  %v4768_v42 = vunpack.i.l.bf16 %v8175_v17  ;;  %v4769_v8 = vunpack.i.h.bf16 %v8175_v17  ;;  %v4764_v9 = vunpack.i.h.bf16 %v8177_v16 }
 0x34f   : > { %v4763_v35 = vunpack.i.l.bf16 %v8177_v16  ;;  %v4778_v15 = vunpack.i.l.bf16 %v8199_v50  ;;  %v3645_v3 = vsel %vm3644_vm8, %v3612_v54, %v4753_v30  ;;  %v4779_v17 = vunpack.i.h.bf16 %v8199_v50 }
 0x350   : > { %v4774_v14 = vunpack.i.h.bf16 %v8201_v22  ;;  %v4773_v16 = vunpack.i.l.bf16 %v8201_v22  ;;  %v3646_v1 = vsel %vm3644_vm8, %v3613_v46, %v4754_v41  ;;  %v4789_v19 = vunpack.i.h.bf16 %v4787_v21 }
 0x351   : > { %5116 = vrot.lane.b32.xlu1 %v5115_v58, %s5160_s5  ;;  %5111 = vrot.lane.b32.xlu0 %v5110_v6, %s5160_s5  ;;  %v4788_v4 = vunpack.i.l.bf16 %v4787_v21  ;;  %v4783_v29 = vunpack.i.l.bf16 %v8221_v24  ;;  %v3663_v52 = vsel %vm3644_vm8, %v3630_v7, %v4768_v42  ;;  %v4798_v58 = vunpack.i.l.bf16 %v4797_v47  ;;  %v4807_v6 = vpop.permute.xlu1 %4806  ;;  %v4802_v32 = vpop.permute.xlu0 %4801 }
 0x352   : > { %v4794_v40 = vunpack.i.h.bf16 %v4792_v12  ;;  %v4793_v25 = vunpack.i.l.bf16 %v4792_v12  ;;  %v3664_v50 = vsel %vm3644_vm8, %v3631_v49, %v4769_v8  ;;  %v3647_v27 = vsel %vm3644_vm8, %v3614_v57, %v4763_v35 }
 0x353   : > { %v3648_v22 = vsel %vm3644_vm8, %v3615_v56, %v4764_v9  ;;  %v3694_v62 = vsel %vm3677_vm9, %v3661_v13, %v4778_v15  ;;  %v3695_v26 = vsel %vm3677_vm9, %v3662_v55, %v4779_v17  ;;  %v3678_v33 = vsel %vm3677_vm9, %v3645_v3, %v4773_v16 }
 0x354   : > { %v3679_v60 = vsel %vm3677_vm9, %v3646_v1, %v4774_v14  ;;  %v4799_v31 = vunpack.i.h.bf16 %v4797_v47  ;;  %v3696_v20 = vsel %vm3677_vm9, %v3663_v52, %v4788_v4  ;;  %v3697_v61 = vsel %vm3677_vm9, %v3664_v50, %v4789_v19 }
 0x355   : > { %v4784_v23 = vunpack.i.h.bf16 %v8221_v24  ;;  %v3680_v59 = vsel %vm3677_vm9, %v3647_v27, %v4783_v29  ;;  %v4808_v44 = vunpack.i.l.bf16 %v4807_v6  ;;  %v4817_v11 = vpop.permute.xlu1 %4816  ;;  %v4812_v0 = vpop.permute.xlu0 %4811  ;;  %v3711_v38 = vsel %vm3710_vm10, %v3678_v33, %v4793_v25  ;;  %v9387_v27 = vld [vmem:[#allocation99_spill] sm:$0xff] }
 0x356   : > { %v3712_v51 = vsel %vm3710_vm10, %v3679_v60, %v4794_v40  ;;  %v3727_v43 = vsel %vm3710_vm10, %v3694_v62, %v4798_v58  ;;  %v4819_v45 = vunpack.i.h.bf16 %v4817_v11  ;;  %v4818_v21 = vunpack.i.l.bf16 %v4817_v11  ;;  %v9393_v11 = vld [vmem:[#allocation23_spill] sm:$0xff] }
 0x357   : > { %v4814_v2 = vunpack.i.h.bf16 %v4812_v0  ;;  %v4813_v63 = vunpack.i.l.bf16 %v4812_v0  ;;  %v4809_v57 = vunpack.i.h.bf16 %v4807_v6  ;;  %v4804_v56 = vunpack.i.h.bf16 %v4802_v32  ;;  %v9386_v6 = vld [vmem:[#allocation104_spill] sm:$0xff] }
 0x358   : > { %v4803_v54 = vunpack.i.l.bf16 %v4802_v32  ;;  %v3728_v24 = vsel %vm3710_vm10, %v3695_v26, %v4799_v31  ;;  %v3760_v37 = vsel %vm3743_vm11, %v3727_v43, %v4818_v21  ;;  %v3681_v34 = vsel %vm3677_vm9, %v3648_v22, %v4784_v23  ;;  %v9388_v31 = vld [vmem:[#allocation51_spill] sm:$0xff]  ;;  %v9390_v23 = vld [vmem:[#allocation62_spill] sm:$0xff]  ;;  %v9397_v21 = vld [vmem:[#allocation25_spill] sm:$0xff] }
 0x359   : > { %v3744_v46 = vsel %vm3743_vm11, %v3711_v38, %v4813_v63  ;;  %v3745_v30 = vsel %vm3743_vm11, %v3712_v51, %v4814_v2  ;;  %v3761_v49 = vsel %vm3743_vm11, %v3728_v24, %v4819_v45  ;;  %v3729_v41 = vsel %vm3710_vm10, %v3696_v20, %v4808_v44  ;;  %v4827_v7 = vpop.permute.xlu1 %4826  ;;  %v4822_v13 = vpop.permute.xlu0 %4821  ;;  %v9389_v20 = vld [vmem:[#allocation8_spill] sm:$0xff]  ;;  %v9392_v44 = vld [vmem:[#allocation63_spill] sm:$0xff]  ;;  %v9396_v45 = vld [vmem:[#allocation69_spill] sm:$0xff] }
 0x35a   : > { %v3776_v55 = vpack.c.bf16 %v3745_v30, %v3744_v46  ;;  %v3784_v42 = vpack.c.bf16 %v3761_v49, %v3760_v37  ;;  %v4829_v47 = vunpack.i.h.bf16 %v4827_v7  ;;  %v4828_v12 = vunpack.i.l.bf16 %v4827_v7  ;;  %v9394_v38 = vld [vmem:[#allocation68_spill] sm:$0xff]  ;;  %v9399_v49 = vld [vmem:[#allocation117_spill] sm:$0xff] }
 0x35b   : > { %v4824_v8 = vunpack.i.h.bf16 %v4822_v13  ;;  %v4823_v9 = vunpack.i.l.bf16 %v4822_v13  ;;  %v3730_v35 = vsel %vm3710_vm10, %v3697_v61, %v4809_v57  ;;  %v3713_v15 = vsel %vm3710_vm10, %v3680_v59, %v4803_v54  ;;  %v9391_v59 = vld [vmem:[#allocation22_spill] sm:$0xff]  ;;  %v9395_v51 = vld [vmem:[#allocation24_spill] sm:$0xff] }
 0x35c   : > { %v3714_v3 = vsel %vm3710_vm10, %v3681_v34, %v4804_v56  ;;  %4424 = vmatprep.mubr.msk.bf16.mxu0 %vm3809_vm12, %v3776_v55  ;;  %4440 = vmatprep.mubr.msk.bf16.mxu1 %vm3809_vm12, %v3784_v42  ;;  %v3762_v17 = vsel %vm3743_vm11, %v3729_v41, %v4828_v12  ;;  %v3763_v14 = vsel %vm3743_vm11, %v3730_v35, %v4829_v47  ;;  %v4499_v25 = vunpack.i.h.bf16 %v9355_v28  ;;  %v9400_v42 = vld [vmem:[#allocation166_spill] sm:$0xff]  ;;  %v9401_v12 = vld [vmem:[#allocation184_spill] sm:$0xff] }
 0x35d   : > { %v3746_v16 = vsel %vm3743_vm11, %v3713_v15, %v4823_v9  ;;  %v3747_v1 = vsel %vm3743_vm11, %v3714_v3, %v4824_v8  ;;  %v3785_v19 = vpack.c.bf16 %v3763_v14, %v3762_v17  ;;  %v4837_v29 = vpop.permute.xlu1 %4836  ;;  %v4832_v52 = vpop.permute.xlu0 %4831  ;;  %v4534_v32 = vunpack.i.h.bf16 %v9386_v6 }
 0x35e   : > { %v3777_v4 = vpack.c.bf16 %v3747_v1, %v3746_v16  ;;  %v4533_v50 = vunpack.i.l.bf16 %v9386_v6  ;;  %v4539_v22 = vunpack.i.h.bf16 %v9387_v27  ;;  %v4538_v62 = vunpack.i.l.bf16 %v9387_v27 }
 0x35f   : > { %4441 = vmatmul.mubr.msk.bf16.vlgmr.msra.gmra.mrb[0].mxu1 %vm3809_vm12, %v3785_v19  ;;  %v4579_v26 = vunpack.i.h.bf16 %v9360_v10  ;;  %v829_v61 = vmul.f32 %v9389_v20, %v9388_v31  ;;  %v843_v28 = vmul.f32 %v9391_v59, %v9390_v23  ;;  %v842_v0 = vmul.f32 %v9393_v11, %v9392_v44  ;;  %v9398_v10 = vld [vmem:[#allocation132_spill] sm:$0xff] }
 0x360   : > { %4425 = vmatmul.mubr.msk.bf16.vlgmr.msra.gmra.mrb[0].mxu0 %vm3809_vm12, %v3777_v4  ;;  %v845_v43 = vmul.f32 %v9395_v51, %v9394_v38  ;;  %v844_v2 = vmul.f32 %v9397_v21, %v9396_v45  ;;  %v4614_v63 = vunpack.i.h.bf16 %v9398_v10  ;;  %v4613_v24 = vunpack.i.l.bf16 %v9398_v10 }
 0x361   : > { %v4847_v58 = vpop.permute.xlu1 %4846  ;;  %v8297_v40 = vpop.permute.xlu0 %4841  ;;  %v3520_v57 = vsel %vm3512_vm4, %v829_v61, %v4499_v25  ;;  %v3534_v56 = vsel %vm3512_vm4, %v843_v28, %v4534_v32  ;;  %v3533_v54 = vsel %vm3512_vm4, %v842_v0, %v4533_v50  ;;  %v4618_v34 = vunpack.i.l.bf16 %v9399_v49 }
 0x362   : > { %v3536_v46 = vsel %vm3512_vm4, %v845_v43, %v4539_v22  ;;  %v3535_v30 = vsel %vm3512_vm4, %v844_v2, %v4538_v62  ;;  %v3553_v37 = vsel %vm3545_vm5, %v3520_v57, %v4579_v26  ;;  %v4619_v13 = vunpack.i.h.bf16 %v9399_v49 }
 0x363   : > { %v4659_v55 = vunpack.i.h.bf16 %v7738_v48  ;;  %v4698_v47 = vunpack.i.l.bf16 %v9400_v42  ;;  %v4693_v8 = vunpack.i.l.bf16 %v9401_v12  ;;  %v3567_v9 = vsel %vm3545_vm5, %v3534_v56, %v4614_v63 }
 0x364   : > { %v4699_v35 = vunpack.i.h.bf16 %v9400_v42  ;;  %v4694_v15 = vunpack.i.h.bf16 %v9401_v12  ;;  %v4749_v3 = vunpack.i.h.bf16 %v8109_v18  ;;  %v3566_v17 = vsel %vm3545_vm5, %v3533_v54, %v4613_v24 }
 0x365   : > { %v8305_v33 = vpop.permute.xlu1 %4856  ;;  %v8307_v60 = vpop.permute.xlu0 %4851  ;;  %v4839_v14 = vunpack.i.h.bf16 %v4837_v29  ;;  %v4838_v16 = vunpack.i.l.bf16 %v4837_v29  ;;  %v4833_v1 = vunpack.i.l.bf16 %v4832_v52  ;;  %v3568_v19 = vsel %vm3545_vm5, %v3535_v30, %v4618_v34 }
 0x366   : > { %v4834_v48 = vunpack.i.h.bf16 %v4832_v52  ;;  %v4849_v4 = vunpack.i.h.bf16 %v4847_v58  ;;  %v4848_v25 = vunpack.i.l.bf16 %v4847_v58  ;;  %v3569_v50 = vsel %vm3545_vm5, %v3536_v46, %v4619_v13 }
 0x367   : > { %v3586_v27 = vsel %vm3578_vm6, %v3553_v37, %v4659_v55  ;;  %v3601_v22 = vsel %vm3578_vm6, %v3568_v19, %v4698_v47  ;;  %v3599_v18 = vsel %vm3578_vm6, %v3566_v17, %v4693_v8  ;;  %v3602_v62 = vsel %vm3578_vm6, %v3569_v50, %v4699_v35 }
 0x368   : > { %v3600_v29 = vsel %vm3578_vm6, %v3567_v9, %v4694_v15  ;;  %v3632_v26 = vsel %vm3611_vm7, %v3599_v18, %v4749_v3  ;;  %v4843_v52 = vunpack.i.l.bf16 %v8297_v40  ;;  %v3634_v58 = vsel %vm3611_vm7, %v3601_v22, %v4838_v16 }
 0x369   : > { %v4867_v41 = vpop.permute.xlu1 %4866  ;;  %v8328_v7 = vpop.permute.xlu0 %4861  ;;  %v3635_v31 = vsel %vm3611_vm7, %v3602_v62, %v4839_v14  ;;  %v3633_v20 = vsel %vm3611_vm7, %v3600_v29, %v4833_v1  ;;  %v4844_v61 = vunpack.i.h.bf16 %v8297_v40  ;;  %v3619_v23 = vsel %vm3611_vm7, %v3586_v27, %v4834_v48 }
 0x36a   : > { %v3665_v59 = vsel %vm3644_vm8, %v3632_v26, %v4848_v25  ;;  %v3666_v28 = vsel %vm3644_vm8, %v3633_v20, %v4849_v4  ;;  %v4858_v44 = vunpack.i.l.bf16 %v8305_v33  ;;  %v4859_v38 = vunpack.i.h.bf16 %v8305_v33 }
 0x36b   : > { %v4854_v51 = vunpack.i.h.bf16 %v8307_v60  ;;  %v4853_v43 = vunpack.i.l.bf16 %v8307_v60  ;;  %v4868_v45 = vunpack.i.l.bf16 %v4867_v41  ;;  %v3649_v40 = vsel %vm3644_vm8, %v8094_v5, %v4843_v52 }
 0x36c   : > { %v4869_v21 = vunpack.i.h.bf16 %v4867_v41  ;;  %v4864_v2 = vunpack.i.h.bf16 %v8328_v7  ;;  %v4863_v10 = vunpack.i.l.bf16 %v8328_v7  ;;  %v3650_v63 = vsel %vm3644_vm8, %v8097_v53, %v4844_v61 }
 0x36d   : > { %v4877_v6 = vpop.permute.xlu1 %4876  ;;  %v8340_v32 = vpop.permute.xlu0 %4871  ;;  %v3667_v54 = vsel %vm3644_vm8, %v3634_v58, %v4858_v44  ;;  %v3668_v5 = vsel %vm3644_vm8, %v3635_v31, %v4859_v38  ;;  %v3651_v49 = vsel %vm3644_vm8, %v8091_v39, %v4853_v43  ;;  %v3652_v34 = vsel %vm3644_vm8, %v3619_v23, %v4854_v51 }
 0x36e   : > { %v4879_v57 = vunpack.i.h.bf16 %v4877_v6  ;;  %v4878_v56 = vunpack.i.l.bf16 %v4877_v6  ;;  %v4873_v33 = vunpack.i.l.bf16 %v8340_v32  ;;  %v3698_v53 = vsel %vm3677_vm9, %v3665_v59, %v4868_v45 }
 0x36f   : > { %v3699_v41 = vsel %vm3677_vm9, %v3666_v28, %v4869_v21  ;;  %v3682_v7 = vsel %vm3677_vm9, %v3649_v40, %v4863_v10  ;;  %v3683_v13 = vsel %vm3677_vm9, %v3650_v63, %v4864_v2  ;;  %v4874_v12 = vunpack.i.h.bf16 %v8340_v32 }
 0x370   : > { %v3700_v42 = vsel %vm3677_vm9, %v3667_v54, %v4878_v56  ;;  %v3701_v47 = vsel %vm3677_vm9, %v3668_v5, %v4879_v57  ;;  %v3684_v8 = vsel %vm3677_vm9, %v3651_v49, %v4873_v33 }
 0x371   : > { %v4887_v11 = vpop.permute.xlu1 %4886  ;;  %v4882_v0 = vpop.permute.xlu0 %4881  ;;  %v3685_v18 = vsel %vm3677_vm9, %v3652_v34, %v4874_v12 }
 0x372   : > { %v4889_v24 = vunpack.i.h.bf16 %v4887_v11  ;;  %v4888_v60 = vunpack.i.l.bf16 %v4887_v11  ;;  %v4883_v46 = vunpack.i.l.bf16 %v4882_v0  ;;  %v4884_v55 = vunpack.i.h.bf16 %v4882_v0 }
 0x374   : > { %v3731_v39 = vsel %vm3710_vm10, %v3698_v53, %v4888_v60  ;;  %v3732_v9 = vsel %vm3710_vm10, %v3699_v41, %v4889_v24  ;;  %v3715_v35 = vsel %vm3710_vm10, %v3682_v7, %v4883_v46  ;;  %v3716_v48 = vsel %vm3710_vm10, %v3683_v13, %v4884_v55 }
 0x375   : > { %v4897_v30 = vpop.permute.xlu1 %4896  ;;  %v4892_v37 = vpop.permute.xlu0 %4891 }
 0x376   : > { %v4898_v15 = vunpack.i.l.bf16 %v4897_v30  ;;  %v4899_v4 = vunpack.i.h.bf16 %v4897_v30  ;;  %v4894_v25 = vunpack.i.h.bf16 %v4892_v37  ;;  %v4893_v6 = vunpack.i.l.bf16 %v4892_v37 }
 0x378   : > { %v3733_v62 = vsel %vm3710_vm10, %v3700_v42, %v4898_v15  ;;  %v3734_v59 = vsel %vm3710_vm10, %v3701_v47, %v4899_v4  ;;  %v3717_v28 = vsel %vm3710_vm10, %v3684_v8, %v4893_v6  ;;  %v3718_v44 = vsel %vm3710_vm10, %v3685_v18, %v4894_v25  ;;  %v9402_v47 = vld [vmem:[#allocation215_spill] sm:$0xff] }
 0x379   : > { %v4907_v3 = vpop.permute.xlu1 %4906  ;;  %v4902_v17 = vpop.permute.xlu0 %4901  ;;  %v9403_v8 = vld [vmem:[#allocation147_spill] sm:$0xff] }
 0x37a   : > { %v4909_v14 = vunpack.i.h.bf16 %v4907_v3  ;;  %v4908_v16 = vunpack.i.l.bf16 %v4907_v3  ;;  %v4904_v1 = vunpack.i.h.bf16 %v4902_v17  ;;  %v4903_v19 = vunpack.i.l.bf16 %v4902_v17  ;;  %v9405_v3 = vld [vmem:[#allocation185_spill] sm:$0xff] }
 0x37c   : > { %v3764_v32 = vsel %vm3743_vm11, %v3731_v39, %v4908_v16  ;;  %v3765_v50 = vsel %vm3743_vm11, %v3732_v9, %v4909_v14  ;;  %v3748_v27 = vsel %vm3743_vm11, %v3715_v35, %v4903_v19  ;;  %v3749_v22 = vsel %vm3743_vm11, %v3716_v48, %v4904_v1  ;;  %v9404_v9 = vld [vmem:[#allocation134_spill] sm:$0xff]  ;;  %v9407_v1 = vld [vmem:[#allocation36_spill] sm:$0xff]  ;;  %v9408_v48 = vld [vmem:[#allocation133_spill] sm:$0xff] }
 0x37d   : > { %v3786_v29 = vpack.c.bf16 %v3765_v50, %v3764_v32  ;;  %v3778_v26 = vpack.c.bf16 %v3749_v22, %v3748_v27  ;;  %v4917_v52 = vpop.permute.xlu1 %4916  ;;  %v4912_v58 = vpop.permute.xlu0 %4911  ;;  %v9406_v14 = vld [vmem:[#allocation214_spill] sm:$0xff] }
 0x37e   : > { %v4919_v31 = vunpack.i.h.bf16 %v4917_v52  ;;  %v4918_v20 = vunpack.i.l.bf16 %v4917_v52  ;;  %v4914_v61 = vunpack.i.h.bf16 %v4912_v58  ;;  %v4913_v23 = vunpack.i.l.bf16 %v4912_v58 }
 0x37f   : > { %4428 = vmatprep.mubr.msk.bf16.mxu0 %vm3809_vm12, %v3778_v26  ;;  %4444 = vmatprep.mubr.msk.bf16.mxu1 %vm3809_vm12, %v3786_v29 }
 0x380   : > { %v3766_v11 = vsel %vm3743_vm11, %v3733_v62, %v4918_v20  ;;  %v3767_v0 = vsel %vm3743_vm11, %v3734_v59, %v4919_v31  ;;  %v3750_v38 = vsel %vm3743_vm11, %v3717_v28, %v4913_v23  ;;  %v3751_v51 = vsel %vm3743_vm11, %v3718_v44, %v4914_v61 }
 0x381   : > { %v3787_v43 = vpack.c.bf16 %v3767_v0, %v3766_v11  ;;  %v3779_v45 = vpack.c.bf16 %v3751_v51, %v3750_v38  ;;  %v4927_v40 = vpop.permute.xlu1 %4926  ;;  %v4922_v21 = vpop.permute.xlu0 %4921 }
 0x382   : > { %v4928_v60 = vunpack.i.l.bf16 %v4927_v40  ;;  %v4929_v46 = vunpack.i.h.bf16 %v4927_v40  ;;  %v4924_v30 = vunpack.i.h.bf16 %v4922_v21  ;;  %v4923_v37 = vunpack.i.l.bf16 %v4922_v21 }
 0x383   : > { %4429 = vmatmul.mubr.msk.bf16.gmra.mrb[4].mxu0 %vm3809_vm12, %v3779_v45  ;;  %4445 = vmatmul.mubr.msk.bf16.gmra.mrb[4].mxu1 %vm3809_vm12, %v3787_v43 }
 0x384   : > { %v3636_v42 = vsel %vm3611_vm7, %v7974_v36, %v4928_v60  ;;  %v3637_v12 = vsel %vm3611_vm7, %v9402_v47, %v4929_v46  ;;  %v3620_v39 = vsel %vm3611_vm7, %v9403_v8, %v4923_v37  ;;  %v3621_v35 = vsel %vm3611_vm7, %v9404_v9, %v4924_v30 }
 0x385   : > { %v4937_v2 = vpop.permute.xlu1 %4936  ;;  %v4932_v10 = vpop.permute.xlu0 %4931 }
 0x386   : > { %v4939_v5 = vunpack.i.h.bf16 %v4937_v2  ;;  %v4938_v49 = vunpack.i.l.bf16 %v4937_v2  ;;  %v4934_v34 = vunpack.i.h.bf16 %v4932_v10  ;;  %v4933_v53 = vunpack.i.l.bf16 %v4932_v10 }
 0x388   : > { %v3638_v17 = vsel %vm3611_vm7, %v9405_v3, %v4938_v49  ;;  %v3639_v16 = vsel %vm3611_vm7, %v9406_v14, %v4939_v5  ;;  %v3623_v19 = vsel %vm3611_vm7, %v9407_v1, %v4934_v34  ;;  %v3622_v4 = vsel %vm3611_vm7, %v9408_v48, %v4933_v53 }
 0x389   : > { %v4947_v63 = vpop.permute.xlu1 %4946  ;;  %v4942_v57 = vpop.permute.xlu0 %4941 }
 0x38a   : > { %v4949_v41 = vunpack.i.h.bf16 %v4947_v63  ;;  %v4948_v7 = vunpack.i.l.bf16 %v4947_v63  ;;  %v4943_v15 = vunpack.i.l.bf16 %v4942_v57  ;;  %v4944_v36 = vunpack.i.h.bf16 %v4942_v57 }
 0x38c   : > { %v3669_v25 = vsel %vm3644_vm8, %v3636_v42, %v4948_v7  ;;  %v3670_v6 = vsel %vm3644_vm8, %v3637_v12, %v4949_v41  ;;  %v3653_v26 = vsel %vm3644_vm8, %v3620_v39, %v4943_v15  ;;  %v3654_v20 = vsel %vm3644_vm8, %v3621_v35, %v4944_v36 }
 0x38d   : > { %v4957_v56 = vpop.permute.xlu1 %4956  ;;  %v4952_v33 = vpop.permute.xlu0 %4951 }
 0x38e   : > { %v4958_v32 = vunpack.i.l.bf16 %v4957_v56  ;;  %v4959_v22 = vunpack.i.h.bf16 %v4957_v56  ;;  %v4954_v18 = vunpack.i.h.bf16 %v4952_v33  ;;  %v4953_v62 = vunpack.i.l.bf16 %v4952_v33 }
 0x390   : > { %v3671_v28 = vsel %vm3644_vm8, %v3638_v17, %v4958_v32  ;;  %v3672_v43 = vsel %vm3644_vm8, %v3639_v16, %v4959_v22  ;;  %v3655_v45 = vsel %vm3644_vm8, %v3622_v4, %v4953_v62  ;;  %v3656_v40 = vsel %vm3644_vm8, %v3623_v19, %v4954_v18 }
 0x391   : > { %v4967_v54 = vpop.permute.xlu1 %4966  ;;  %v4962_v24 = vpop.permute.xlu0 %4961 }
 0x392   : > { %v4968_v29 = vunpack.i.l.bf16 %v4967_v54  ;;  %v4969_v52 = vunpack.i.h.bf16 %v4967_v54  ;;  %v4964_v58 = vunpack.i.h.bf16 %v4962_v24  ;;  %v4963_v31 = vunpack.i.l.bf16 %v4962_v24 }
 0x394   : > { %v3702_v21 = vsel %vm3677_vm9, %v3669_v25, %v4968_v29  ;;  %v3703_v2 = vsel %vm3677_vm9, %v3670_v6, %v4969_v52  ;;  %v3686_v10 = vsel %vm3677_vm9, %v3653_v26, %v4963_v31  ;;  %v3687_v63 = vsel %vm3677_vm9, %v3654_v20, %v4964_v58 }
 0x395   : > { %v4977_v13 = vpop.permute.xlu1 %4976  ;;  %v8402_v55 = vpop.permute.xlu0 %4971 }
 0x396   : > { %v4979_v61 = vunpack.i.h.bf16 %v4977_v13  ;;  %v4978_v23 = vunpack.i.l.bf16 %v4977_v13  ;;  %v4973_v59 = vunpack.i.l.bf16 %v8402_v55  ;;  %v4974_v54 = vunpack.i.h.bf16 %v8402_v55 }
 0x398   : > { %v3704_v56 = vsel %vm3677_vm9, %v3671_v28, %v4978_v23  ;;  %v3705_v33 = vsel %vm3677_vm9, %v3672_v43, %v4979_v61  ;;  %v3688_v24 = vsel %vm3677_vm9, %v3655_v45, %v4973_v59  ;;  %v3689_v35 = vsel %vm3677_vm9, %v3656_v40, %v4974_v54 }
 0x399   : > { %v4987_v50 = vpop.permute.xlu1 %4986  ;;  %v4982_v27 = vpop.permute.xlu0 %4981 }
 0x39a   : > { %v4989_v44 = vunpack.i.h.bf16 %v4987_v50  ;;  %v4988_v11 = vunpack.i.l.bf16 %v4987_v50  ;;  %v4983_v0 = vunpack.i.l.bf16 %v4982_v27  ;;  %v4984_v57 = vunpack.i.h.bf16 %v4982_v27 }
 0x39c   : > { %v3735_v60 = vsel %vm3710_vm10, %v3702_v21, %v4988_v11  ;;  %v3736_v46 = vsel %vm3710_vm10, %v3703_v2, %v4989_v44  ;;  %v3719_v30 = vsel %vm3710_vm10, %v3686_v10, %v4983_v0  ;;  %v3720_v13 = vsel %vm3710_vm10, %v3687_v63, %v4984_v57  ;;  %v9409_v57 = vld [vmem:[#allocation221_spill] sm:$0xff] }
 0x39d   : > { %v4997_v38 = vpop.permute.xlu1 %4996  ;;  %v4992_v51 = vpop.permute.xlu0 %4991 }
 0x39e   : > { %v4998_v37 = vunpack.i.l.bf16 %v4997_v38  ;;  %v4999_v42 = vunpack.i.h.bf16 %v4997_v38  ;;  %v4994_v47 = vunpack.i.h.bf16 %v4992_v51  ;;  %v4993_v55 = vunpack.i.l.bf16 %v4992_v51 }
 0x3a0   : > { %v3737_v15 = vsel %vm3710_vm10, %v3704_v56, %v4998_v37  ;;  %v3738_v4 = vsel %vm3710_vm10, %v3705_v33, %v4999_v42  ;;  %v3721_v25 = vsel %vm3710_vm10, %v3688_v24, %v4993_v55  ;;  %v3722_v6 = vsel %vm3710_vm10, %v3689_v35, %v4994_v47  ;;  %v9410_v33 = vld [vmem:[#allocation220_spill] sm:$0xff]  ;;  %v9411_v24 = vld [vmem:[#allocation149_spill] sm:$0xff] }
 0x3a1   : > { %v5007_v5 = vpop.permute.xlu1 %5006  ;;  %v5002_v49 = vpop.permute.xlu0 %5001  ;;  %v9416_v42 = vld [vmem:[#allocation148_spill] sm:$0xff] }
 0x3a2   : > { %v5009_v34 = vunpack.i.h.bf16 %v5007_v5  ;;  %v5008_v53 = vunpack.i.l.bf16 %v5007_v5  ;;  %v5004_v41 = vunpack.i.h.bf16 %v5002_v49  ;;  %v5003_v7 = vunpack.i.l.bf16 %v5002_v49  ;;  %v9413_v5 = vld [vmem:[#allocation188_spill] sm:$0xff] }
 0x3a4   : > { %v3768_v12 = vsel %vm3743_vm11, %v3735_v60, %v5008_v53  ;;  %v3769_v8 = vsel %vm3743_vm11, %v3736_v46, %v5009_v34  ;;  %v3752_v39 = vsel %vm3743_vm11, %v3719_v30, %v5003_v7  ;;  %v3753_v9 = vsel %vm3743_vm11, %v3720_v13, %v5004_v41  ;;  %v9412_v46 = vld [vmem:[#allocation164_spill] sm:$0xff]  ;;  %v9414_v34 = vld [vmem:[#allocation189_spill] sm:$0xff]  ;;  %v9415_v41 = vld [vmem:[#allocation163_spill] sm:$0xff] }
 0x3a5   : > { %v3788_v3 = vpack.c.bf16 %v3769_v8, %v3768_v12  ;;  %v3780_v17 = vpack.c.bf16 %v3753_v9, %v3752_v39  ;;  %v5017_v14 = vpop.permute.xlu1 %5016  ;;  %v5012_v16 = vpop.permute.xlu0 %5011 }
 0x3a6   : > { %v5019_v1 = vunpack.i.h.bf16 %v5017_v14  ;;  %v5018_v19 = vunpack.i.l.bf16 %v5017_v14  ;;  %v5014_v36 = vunpack.i.h.bf16 %v5012_v16  ;;  %v5013_v48 = vunpack.i.l.bf16 %v5012_v16 }
 0x3a7   : > { %4432 = vmatprep.mubr.msk.bf16.mxu0 %vm3809_vm12, %v3780_v17  ;;  %4448 = vmatprep.mubr.msk.bf16.mxu1 %vm3809_vm12, %v3788_v3 }
 0x3a8   : > { %v3770_v32 = vsel %vm3743_vm11, %v3737_v15, %v5018_v19  ;;  %v3771_v50 = vsel %vm3743_vm11, %v3738_v4, %v5019_v1  ;;  %v3754_v27 = vsel %vm3743_vm11, %v3721_v25, %v5013_v48  ;;  %v3755_v22 = vsel %vm3743_vm11, %v3722_v6, %v5014_v36 }
 0x3a9   : > { %v3789_v18 = vpack.c.bf16 %v3771_v50, %v3770_v32  ;;  %v3781_v62 = vpack.c.bf16 %v3755_v22, %v3754_v27  ;;  %v5027_v29 = vpop.permute.xlu1 %5026  ;;  %v5022_v26 = vpop.permute.xlu0 %5021 }
 0x3aa   : > { %v5028_v44 = vunpack.i.l.bf16 %v5027_v29  ;;  %v5029_v11 = vunpack.i.h.bf16 %v5027_v29  ;;  %v5024_v0 = vunpack.i.h.bf16 %v5022_v26  ;;  %v5023_v38 = vunpack.i.l.bf16 %v5022_v26 }
 0x3ab   : > { %4433 = vmatmul.mubr.msk.bf16.gmra.mrb[8].mxu0 %vm3809_vm12, %v3781_v62  ;;  %4449 = vmatmul.mubr.msk.bf16.gmra.mrb[8].mxu1 %vm3809_vm12, %v3789_v18 }
 0x3ac   : > { %v3640_v56 = vsel %vm3611_vm7, %v9409_v57, %v5028_v44  ;;  %v3641_v54 = vsel %vm3611_vm7, %v9410_v33, %v5029_v11  ;;  %v3624_v60 = vsel %vm3611_vm7, %v9411_v24, %v5023_v38  ;;  %v3625_v30 = vsel %vm3611_vm7, %v9412_v46, %v5024_v0 }
 0x3ad   : > { %v5037_v52 = vpop.permute.xlu1 %5036  ;;  %v5032_v58 = vpop.permute.xlu0 %5031 }
 0x3ae   : > { %v5039_v51 = vunpack.i.h.bf16 %v5037_v52  ;;  %v5038_v43 = vunpack.i.l.bf16 %v5037_v52  ;;  %v5034_v45 = vunpack.i.h.bf16 %v5032_v58  ;;  %v5033_v40 = vunpack.i.l.bf16 %v5032_v58 }
 0x3b0   : > { %v3642_v49 = vsel %vm3611_vm7, %v9413_v5, %v5038_v43  ;;  %v3643_v53 = vsel %vm3611_vm7, %v9414_v34, %v5039_v51  ;;  %v3627_v7 = vsel %vm3611_vm7, %v9415_v41, %v5034_v45  ;;  %v3626_v47 = vsel %vm3611_vm7, %v9416_v42, %v5033_v40 }
 0x3b1   : > { %v5047_v31 = vpop.permute.xlu1 %5046  ;;  %v5042_v20 = vpop.permute.xlu0 %5041 }
 0x3b2   : > { %v5049_v21 = vunpack.i.h.bf16 %v5047_v31  ;;  %v5048_v2 = vunpack.i.l.bf16 %v5047_v31  ;;  %v5043_v37 = vunpack.i.l.bf16 %v5042_v20  ;;  %v5044_v13 = vunpack.i.h.bf16 %v5042_v20 }
 0x3b4   : > { %v3673_v55 = vsel %vm3644_vm8, %v3640_v56, %v5048_v2  ;;  %v3674_v12 = vsel %vm3644_vm8, %v3641_v54, %v5049_v21  ;;  %v3657_v14 = vsel %vm3644_vm8, %v3624_v60, %v5043_v37  ;;  %v3658_v36 = vsel %vm3644_vm8, %v3625_v30, %v5044_v13 }
 0x3b5   : > { %v5057_v61 = vpop.permute.xlu1 %5056  ;;  %v5052_v23 = vpop.permute.xlu0 %5051 }
 0x3b6   : > { %v5058_v8 = vunpack.i.l.bf16 %v5057_v61  ;;  %v5059_v35 = vunpack.i.h.bf16 %v5057_v61  ;;  %v5054_v15 = vunpack.i.h.bf16 %v5052_v23  ;;  %v5053_v3 = vunpack.i.l.bf16 %v5052_v23 }
 0x3b8   : > { %v3675_v6 = vsel %vm3644_vm8, %v3642_v49, %v5058_v8  ;;  %v3676_v62 = vsel %vm3644_vm8, %v3643_v53, %v5059_v35  ;;  %v3659_v29 = vsel %vm3644_vm8, %v3626_v47, %v5053_v3  ;;  %v3660_v26 = vsel %vm3644_vm8, %v3627_v7, %v5054_v15 }
 0x3b9   : > { %v5067_v59 = vpop.permute.xlu1 %5066  ;;  %v5062_v28 = vpop.permute.xlu0 %5061 }
 0x3ba   : > { %v5068_v17 = vunpack.i.l.bf16 %v5067_v59  ;;  %v5069_v16 = vunpack.i.h.bf16 %v5067_v59  ;;  %v5064_v1 = vunpack.i.h.bf16 %v5062_v28  ;;  %v5063_v19 = vunpack.i.l.bf16 %v5062_v28 }
 0x3bc   : > { %v3706_v52 = vsel %vm3677_vm9, %v3673_v55, %v5068_v17  ;;  %v3707_v58 = vsel %vm3677_vm9, %v3674_v12, %v5069_v16  ;;  %v3690_v31 = vsel %vm3677_vm9, %v3657_v14, %v5063_v19  ;;  %v3691_v20 = vsel %vm3677_vm9, %v3658_v36, %v5064_v1  ;;  %v8517_v17 = vld [vmem:[%s8628_s3] ss:$0 sm:$0xff] }
 0x3bd   : > { %v5077_v10 = vpop.permute.xlu1 %5076  ;;  %v8458_v63 = vpop.permute.xlu0 %5071 }
 0x3be   : > { %v5079_v48 = vunpack.i.h.bf16 %v5077_v10  ;;  %v5078_v4 = vunpack.i.l.bf16 %v5077_v10  ;;  %v5073_v25 = vunpack.i.l.bf16 %v8458_v63  ;;  %v5074_v28 = vunpack.i.h.bf16 %v8458_v63 }
 0x3c0   : > { %v3709_v23 = vsel %vm3677_vm9, %v3676_v62, %v5079_v48  ;;  %v3708_v59 = vsel %vm3677_vm9, %v3675_v6, %v5078_v4  ;;  %v3692_v44 = vsel %vm3677_vm9, %v3659_v29, %v5073_v25  ;;  %v3693_v30 = vsel %vm3677_vm9, %v3660_v26, %v5074_v28 }
 0x3c1   : > { %v5087_v39 = vpop.permute.xlu1 %5086  ;;  %v5082_v9 = vpop.permute.xlu0 %5081 }
 0x3c2   : > { %v5089_v32 = vunpack.i.h.bf16 %v5087_v39  ;;  %v5088_v50 = vunpack.i.l.bf16 %v5087_v39  ;;  %v5083_v27 = vunpack.i.l.bf16 %v5082_v9  ;;  %v5084_v61 = vunpack.i.h.bf16 %v5082_v9 }
 0x3c4   : > { %v3739_v11 = vsel %vm3710_vm10, %v3706_v52, %v5088_v50  ;;  %v3740_v0 = vsel %vm3710_vm10, %v3707_v58, %v5089_v32  ;;  %v3723_v38 = vsel %vm3710_vm10, %v3690_v31, %v5083_v27  ;;  %v3724_v57 = vsel %vm3710_vm10, %v3691_v20, %v5084_v61 }
 0x3c5   : > { %v5097_v22 = vpop.permute.xlu1 %5096  ;;  %v5092_v18 = vpop.permute.xlu0 %5091 }
 0x3c6   : > { %v5098_v51 = vunpack.i.l.bf16 %v5097_v22  ;;  %v5099_v56 = vunpack.i.h.bf16 %v5097_v22  ;;  %v5094_v33 = vunpack.i.h.bf16 %v5092_v18  ;;  %v5093_v63 = vunpack.i.l.bf16 %v5092_v18 }
 0x3c8   : > { %v3741_v37 = vsel %vm3710_vm10, %v3708_v59, %v5098_v51  ;;  %v3742_v47 = vsel %vm3710_vm10, %v3709_v23, %v5099_v56  ;;  %v3725_v55 = vsel %vm3710_vm10, %v3692_v44, %v5093_v63  ;;  %v3726_v12 = vsel %vm3710_vm10, %v3693_v30, %v5094_v33 }
 0x3c9   : > { %v5107_v43 = vpop.permute.xlu1 %5106  ;;  %v5102_v45 = vpop.permute.xlu0 %5101 }
 0x3ca   : > { %v5109_v40 = vunpack.i.h.bf16 %v5107_v43  ;;  %v5108_v21 = vunpack.i.l.bf16 %v5107_v43  ;;  %v5104_v2 = vunpack.i.h.bf16 %v5102_v45  ;;  %v5103_v10 = vunpack.i.l.bf16 %v5102_v45 }
 0x3cc   : > { %v3772_v54 = vsel %vm3743_vm11, %v3739_v11, %v5108_v21  ;;  %v3773_v24 = vsel %vm3743_vm11, %v3740_v0, %v5109_v40  ;;  %v3756_v60 = vsel %vm3743_vm11, %v3723_v38, %v5103_v10  ;;  %v3757_v46 = vsel %vm3743_vm11, %v3724_v57, %v5104_v2 }
 0x3cd   : > { %v3790_v5 = vpack.c.bf16 %v3773_v24, %v3772_v54  ;;  %v3782_v49 = vpack.c.bf16 %v3757_v46, %v3756_v60  ;;  %v5117_v34 = vpop.permute.xlu1 %5116  ;;  %v5112_v53 = vpop.permute.xlu0 %5111 }
 0x3ce   : > { %v5119_v41 = vunpack.i.h.bf16 %v5117_v34  ;;  %v5118_v7 = vunpack.i.l.bf16 %v5117_v34  ;;  %v5114_v13 = vunpack.i.h.bf16 %v5112_v53  ;;  %v5113_v42 = vunpack.i.l.bf16 %v5112_v53 }
 0x3cf   : > { %4436 = vmatprep.mubr.msk.bf16.mxu0 %vm3809_vm12, %v3782_v49  ;;  %4452 = vmatprep.mubr.msk.bf16.mxu1 %vm3809_vm12, %v3790_v5 }
 0x3d0   : > { %v3774_v8 = vsel %vm3743_vm11, %v3741_v37, %v5118_v7  ;;  %v3775_v39 = vsel %vm3743_vm11, %v3742_v47, %v5119_v41  ;;  %v3758_v9 = vsel %vm3743_vm11, %v3725_v55, %v5113_v42  ;;  %v3759_v35 = vsel %vm3743_vm11, %v3726_v12, %v5114_v13 }
 0x3d1   : > { %v3791_v15 = vpack.c.bf16 %v3775_v39, %v3774_v8  ;;  %v3783_v3 = vpack.c.bf16 %v3759_v35, %v3758_v9 }
 0x3d3   : > { %4437 = vmatmul.mubr.msk.bf16.gmra.mrb[12].mxu0 %vm3809_vm12, %v3783_v3  ;;  %4453 = vmatmul.mubr.msk.bf16.gmra.mrb[12].mxu1 %vm3809_vm12, %v3791_v15 }
 0x432   : > { %v4442_v16 = vpop.f32.mrb[0].mxu1 }
 0x433   : > { %v4426_v14 = vpop.f32.mrb[0].mxu0  ;;  %v3972_v19 = vadd.f32 %v4442_v16, %v8517_v17  ;;  %v3963_v48 = vpop.f32.mrb[1].mxu1 }
 0x434   : > { %v3908_v1 = vadd.f32 %v4426_v14, %v8517_v17  ;;  %v3899_v36 = vpop.f32.mrb[1].mxu0  ;;  %v3964_v25 = vadd.f32 %v8517_v17, %v3963_v48  ;;  %v4443_v32 = vpop.f32.mrb[2].mxu1 }
 0x435   : > { %v3900_v4 = vadd.f32 %v8517_v17, %v3899_v36  ;;  %v4427_v6 = vpop.f32.mrb[2].mxu0  ;;  %4045 = vst.msk [vmem:[%s8524_s12 + $0x90] sm:$0xff] %vm4026_vm13, %v3972_v19  ;;  %v3975_v27 = vadd.f32 %v4443_v32, %v8517_v17  ;;  %v3966_v18 = vpop.f32.mrb[3].mxu1 }
 0x436   : > { %4029 = vst.msk [vmem:[%s8524_s12 + $0x10] sm:$0xff] %vm4026_vm13, %v3908_v1  ;;  %v3911_v50 = vadd.f32 %v4427_v6, %v8517_v17  ;;  %v3902_v22 = vpop.f32.mrb[3].mxu0  ;;  %4043 = vst.msk [vmem:[%s8524_s12 + $0x80] sm:$0xff] %vm4026_vm13, %v3964_v25  ;;  %v3967_v29 = vadd.f32 %v8517_v17, %v3966_v18 }
 0x437   : > { %4027 = vst.msk [vmem:[%s8524_s12] sm:$0xff] %vm4026_vm13, %v3900_v4  ;;  %v3903_v62 = vadd.f32 %v8517_v17, %v3902_v22  ;;  %4046 = vst.msk [vmem:[%s8524_s12 + $0x98] sm:$0xff] %vm4026_vm13, %v3975_v27 }
 0x438   : > { %4030 = vst.msk [vmem:[%s8524_s12 + $0x18] sm:$0xff] %vm4026_vm13, %v3911_v50  ;;  %4044 = vst.msk [vmem:[%s8524_s12 + $0x88] sm:$0xff] %vm4026_vm13, %v3967_v29 }
 0x439   : > { %4028 = vst.msk [vmem:[%s8524_s12 + $0x8] sm:$0xff] %vm4026_vm13, %v3903_v62 }
 0x456   : > { %v4430_v26 = vpop.f32.mrb[4].mxu0  ;;  %v4446_v52 = vpop.f32.mrb[4].mxu1 }
 0x457   : > { %v3924_v58 = vadd.f32 %v4430_v26, %v8517_v17  ;;  %v3988_v31 = vadd.f32 %v4446_v52, %v8517_v17  ;;  %v3915_v20 = vpop.f32.mrb[5].mxu0  ;;  %v3979_v61 = vpop.f32.mrb[5].mxu1 }
 0x458   : > { %v3916_v23 = vadd.f32 %v8517_v17, %v3915_v20  ;;  %v3980_v59 = vadd.f32 %v8517_v17, %v3979_v61  ;;  %v4431_v28 = vpop.f32.mrb[6].mxu0  ;;  %v4447_v44 = vpop.f32.mrb[6].mxu1 }
 0x459   : > { %4033 = vst.msk [vmem:[%s8524_s12 + $0x30] sm:$0xff] %vm4026_vm13, %v3924_v58  ;;  %4049 = vst.msk [vmem:[%s8524_s12 + $0xb0] sm:$0xff] %vm4026_vm13, %v3988_v31  ;;  %v3927_v11 = vadd.f32 %v4431_v28, %v8517_v17  ;;  %v3991_v0 = vadd.f32 %v4447_v44, %v8517_v17  ;;  %v3918_v38 = vpop.f32.mrb[7].mxu0  ;;  %v3982_v51 = vpop.f32.mrb[7].mxu1 }
 0x45a   : > { %4031 = vst.msk [vmem:[%s8524_s12 + $0x20] sm:$0xff] %vm4026_vm13, %v3916_v23  ;;  %4047 = vst.msk [vmem:[%s8524_s12 + $0xa0] sm:$0xff] %vm4026_vm13, %v3980_v59  ;;  %v3919_v43 = vadd.f32 %v8517_v17, %v3918_v38  ;;  %v3983_v45 = vadd.f32 %v8517_v17, %v3982_v51 }
 0x45b   : > { %4034 = vst.msk [vmem:[%s8524_s12 + $0x38] sm:$0xff] %vm4026_vm13, %v3927_v11  ;;  %4050 = vst.msk [vmem:[%s8524_s12 + $0xb8] sm:$0xff] %vm4026_vm13, %v3991_v0 }
 0x45c   : > { %4032 = vst.msk [vmem:[%s8524_s12 + $0x28] sm:$0xff] %vm4026_vm13, %v3919_v43  ;;  %4048 = vst.msk [vmem:[%s8524_s12 + $0xa8] sm:$0xff] %vm4026_vm13, %v3983_v45 }
 0x47e   : > { %v4434_v40 = vpop.f32.mrb[8].mxu0  ;;  %v4450_v21 = vpop.f32.mrb[8].mxu1 }
 0x47f   : > { %v3940_v2 = vadd.f32 %v4434_v40, %v8517_v17  ;;  %v4004_v10 = vadd.f32 %v4450_v21, %v8517_v17  ;;  %v3931_v57 = vpop.f32.mrb[9].mxu0  ;;  %v3995_v56 = vpop.f32.mrb[9].mxu1 }
 0x480   : > { %v3932_v33 = vadd.f32 %v8517_v17, %v3931_v57  ;;  %v3996_v63 = vadd.f32 %v8517_v17, %v3995_v56  ;;  %v4435_v54 = vpop.f32.mrb[10].mxu0  ;;  %v4451_v24 = vpop.f32.mrb[10].mxu1 }
 0x481   : > { %4037 = vst.msk [vmem:[%s8524_s12 + $0x50] sm:$0xff] %vm4026_vm13, %v3940_v2  ;;  %4053 = vst.msk [vmem:[%s8524_s12 + $0xd0] sm:$0xff] %vm4026_vm13, %v4004_v10  ;;  %v3943_v60 = vadd.f32 %v4435_v54, %v8517_v17  ;;  %v4007_v46 = vadd.f32 %v4451_v24, %v8517_v17  ;;  %v3934_v30 = vpop.f32.mrb[11].mxu0  ;;  %v3998_v37 = vpop.f32.mrb[11].mxu1 }
 0x482   : > { %4035 = vst.msk [vmem:[%s8524_s12 + $0x40] sm:$0xff] %vm4026_vm13, %v3932_v33  ;;  %4051 = vst.msk [vmem:[%s8524_s12 + $0xc0] sm:$0xff] %vm4026_vm13, %v3996_v63  ;;  %v3935_v5 = vadd.f32 %v8517_v17, %v3934_v30  ;;  %v3999_v49 = vadd.f32 %v8517_v17, %v3998_v37 }
 0x483   : > { %4038 = vst.msk [vmem:[%s8524_s12 + $0x58] sm:$0xff] %vm4026_vm13, %v3943_v60  ;;  %4054 = vst.msk [vmem:[%s8524_s12 + $0xd8] sm:$0xff] %vm4026_vm13, %v4007_v46 }
 0x484   : > { %4036 = vst.msk [vmem:[%s8524_s12 + $0x48] sm:$0xff] %vm4026_vm13, %v3935_v5  ;;  %4052 = vst.msk [vmem:[%s8524_s12 + $0xc8] sm:$0xff] %vm4026_vm13, %v3999_v49 }
 0x4a6   : > { %v4438_v34 = vpop.f32.mrb[12].mxu0  ;;  %v4454_v53 = vpop.f32.mrb[12].mxu1 }
 0x4a7   : > { %v3956_v41 = vadd.f32 %v4438_v34, %v8517_v17  ;;  %v4020_v7 = vadd.f32 %v4454_v53, %v8517_v17  ;;  %v3947_v13 = vpop.f32.mrb[13].mxu0  ;;  %v4011_v42 = vpop.f32.mrb[13].mxu1 }
 0x4a8   : > { %v3948_v47 = vadd.f32 %v8517_v17, %v3947_v13  ;;  %v4012_v55 = vadd.f32 %v8517_v17, %v4011_v42  ;;  %v4439_v12 = vpop.f32.mrb[14].mxu0  ;;  %v4455_v8 = vpop.f32.mrb[14].mxu1 }
 0x4a9   : > { %4041 = vst.msk [vmem:[%s8524_s12 + $0x70] sm:$0xff] %vm4026_vm13, %v3956_v41  ;;  %4057 = vst.msk [vmem:[%s8524_s12 + $0xf0] sm:$0xff] %vm4026_vm13, %v4020_v7  ;;  %v3959_v39 = vadd.f32 %v4439_v12, %v8517_v17  ;;  %v4023_v9 = vadd.f32 %v4455_v8, %v8517_v17  ;;  %v3950_v35 = vpop.f32.mrb[15].mxu0  ;;  %v4014_v15 = vpop.f32.mrb[15].mxu1 }
 0x4aa   : > { %4039 = vst.msk [vmem:[%s8524_s12 + $0x60] sm:$0xff] %vm4026_vm13, %v3948_v47  ;;  %4055 = vst.msk [vmem:[%s8524_s12 + $0xe0] sm:$0xff] %vm4026_vm13, %v4012_v55  ;;  %v3951_v3 = vadd.f32 %v8517_v17, %v3950_v35  ;;  %v4015_v14 = vadd.f32 %v8517_v17, %v4014_v15 }
 0x4ab   : > { %4042 = vst.msk [vmem:[%s8524_s12 + $0x78] sm:$0xff] %vm4026_vm13, %v3959_v39  ;;  %4058 = vst.msk [vmem:[%s8524_s12 + $0xf8] sm:$0xff] %vm4026_vm13, %v4023_v9 }
 0x4ac   : > { %4040 = vst.msk [vmem:[%s8524_s12 + $0x68] sm:$0xff] %vm4026_vm13, %v3951_v3  ;;  %4056 = vst.msk [vmem:[%s8524_s12 + $0xe8] sm:$0xff] %vm4026_vm13, %v4015_v14 }
 0x4ad PF: > { %s14_s15 = sadd.s32 1, %s5150_s15  }
 0x4ae   : > { %p11_p4 = scmp.ge.s32.totalorder %s14_s15, 4  }
 0x4b0   :  { %13 = sbr.rel (!%p11_p4) target bundleno = 1 (0x1), region = 74 }

</bundles_post_ra>
